<compile_context>
chip_gen: v6e
topology: v6e:2x2x1
jax: 0.10.0
libtpu: 0.0.40
codegen_flags: <defaults>
</compile_context>

<pallas_src>
import functools

import numpy as np
import jax
import jax.numpy as jnp
from jax import lax
from jax.experimental import pallas as pl
from jax.experimental.pallas import tpu as pltpu

LANE = 128


def _round_up(n, m):
    return ((n + m - 1) // m) * m


def _pad2(x, rows, cols):
    out = np.zeros((rows, cols), np.float32)
    x = np.asarray(x, np.float32)
    out[:x.shape[0], :x.shape[1]] = x
    return out


# ---------------------------------------------------------------------------
# Kernel: one grid point == one molecule pair.
#   proj_atom -> depth x (gen_fp + relu + adj@h + row L2 norm)
#   -> masked per-molecule row sums -> merge_fp -> 2x(Linear+relu) -> output
# ---------------------------------------------------------------------------
def _pair_kernel(sizes_ref,                                   # scalar prefetch
                 atoms_ref, adj_ref,
                 w_proj_ref, b_proj_ref, w_gen_ref, b_gen_ref,
                 w_merge_ref, w0_ref, b0_ref, w1_ref, b1_ref,
                 w_out_ref, b_out_ref,
                 out_ref, *, depth, tile):
    pair = pl.program_id(0)

    # proj_atom for both molecules of the pair at once: (2*tile, a_pad) rows.
    v = jnp.dot(atoms_ref[...], w_proj_ref[...],
                preferred_element_type=jnp.float32) + b_proj_ref[...]

    def layer_body(layer, v):
        # update(): h = relu(gen_fp[layer](v)); hs = h + adj @ h
        h = jnp.dot(v.astype(jnp.bfloat16), w_gen_ref[layer],
                    preferred_element_type=jnp.float32) + b_gen_ref[layer]
        h = jnp.maximum(h, 0.0)
        hb = h.astype(jnp.bfloat16)
        # adjacency is block-diagonal per molecule: two clean (tile,tile) dots,
        # adj read from the ref at point of use (not hoisted).
        a1h = jnp.dot(adj_ref[0], hb[:tile], preferred_element_type=jnp.float32)
        a2h = jnp.dot(adj_ref[1], hb[tile:], preferred_element_type=jnp.float32)
        hs = h + jnp.concatenate([a1h, a2h], axis=0)
        # F.normalize(hs, p=2, dim=1); eps clamp on the squared norm (1e-12^2)
        # preserves torch semantics; rsqrt goes to the EUP slot.
        sumsq = jnp.sum(hs * hs, axis=1, keepdims=True)
        return hs * lax.rsqrt(jnp.maximum(sumsq, 1e-24))

    if depth <= 4:
        for layer in range(depth):          # short static unroll
            v = layer_body(layer, v)
    else:
        # deeper networks: fori_loop bounds per-layer live ranges
        v = lax.fori_loop(0, depth, layer_body, v)

    # self.sum(): masked per-molecule row reduction (padded "ghost" rows carry
    # bias-propagated junk but zero adjacency, so masking here is exact).
    row = lax.broadcasted_iota(jnp.int32, (tile, 1), 0)
    sz1 = sizes_ref[pair, 0]
    sz2 = sizes_ref[pair, 1]
    v1 = jnp.sum(jnp.where(row < sz1, v[:tile], 0.0), axis=0, keepdims=True)
    v2 = jnp.sum(jnp.where(row < sz2, v[tile:], 0.0), axis=0, keepdims=True)

    # merge_fp (bias=False): concat((v1, v2), 1) @ W == v1 @ W[:H] + v2 @ W[H:]
    m = (jnp.dot(v1.astype(jnp.bfloat16), w_merge_ref[0],
                 preferred_element_type=jnp.float32)
         + jnp.dot(v2.astype(jnp.bfloat16), w_merge_ref[1],
                   preferred_element_type=jnp.float32))
    m = jnp.maximum(jnp.dot(m.astype(jnp.bfloat16), w0_ref[...],
                            preferred_element_type=jnp.float32) + b0_ref[...],
                    0.0)
    # F.dropout with p=0.0 (module default) is the identity -> omitted.
    m = jnp.maximum(jnp.dot(m.astype(jnp.bfloat16), w1_ref[...],
                            preferred_element_type=jnp.float32) + b1_ref[...],
                    0.0)
    out_ref[...] = jnp.dot(m.astype(jnp.bfloat16), w_out_ref[...],
                           preferred_element_type=jnp.float32) + b_out_ref[...]


# ---------------------------------------------------------------------------
# Host wrapper: per-pair compact layout (no dense batch-wide adjacency).
# ---------------------------------------------------------------------------
def graph_cage_forward(params, m1_atoms, adj1, m2_atoms, adj2, *, depth):
    n_pairs = len(m1_atoms)
    assert len(m2_atoms) == n_pairs == len(adj1) == len(adj2), \
        "paired batch: same number of molecules per set"
    atom_dim = int(np.asarray(m1_atoms[0]).shape[1])
    hidden = int(np.asarray(params["w_proj"]).shape[1])
    out_dim = int(np.asarray(params["w_out"]).shape[1])

    max_atoms = max(max(int(np.asarray(a).shape[0]) for a in m1_atoms),
                    max(int(np.asarray(a).shape[0]) for a in m2_atoms))
    tile = _round_up(max_atoms, LANE)          # 128-aligned row tile
    a_pad = _round_up(atom_dim, LANE)
    h_pad = _round_up(hidden, LANE)
    o_pad = _round_up(out_dim, LANE)

    atoms = np.zeros((n_pairs, 2 * tile, a_pad), np.float32)
    adj = np.zeros((n_pairs, 2, tile, tile), np.float32)
    sizes = np.zeros((n_pairs, 2), np.int32)
    for p in range(n_pairs):
        a1 = np.asarray(m1_atoms[p], np.float32)
        a2 = np.asarray(m2_atoms[p], np.float32)
        A1 = np.asarray(adj1[p], np.float32)
        A2 = np.asarray(adj2[p], np.float32)
        s1, s2 = a1.shape[0], a2.shape[0]
        atoms[p, :s1, :atom_dim] = a1
        atoms[p, tile:tile + s2, :atom_dim] = a2
        adj[p, 0, :s1, :s1] = A1
        adj[p, 1, :s2, :s2] = A2
        sizes[p, 0], sizes[p, 1] = s1, s2

    # Zero-padded parameters (exact: relu(0)=0, row-wise L2 norm ignores the
    # zero columns; padded lanes of the output are sliced off below).
    w_proj = _pad2(params["w_proj"], a_pad, h_pad)
    b_proj = _pad2(params["b_proj"], 1, h_pad)
    w_gen = np.zeros((depth, h_pad, h_pad), np.float32)
    w_gen[:, :hidden, :hidden] = np.asarray(params["w_gen"], np.float32)
    b_gen = np.zeros((depth, 1, h_pad), np.float32)
    b_gen[:, :, :hidden] = np.asarray(params["b_gen"], np.float32)
    wm = np.asarray(params["w_merge"], np.float32)
    w_merge = np.zeros((2, h_pad, h_pad), np.float32)
    w_merge[0, :hidden, :hidden] = wm[:hidden]
    w_merge[1, :hidden, :hidden] = wm[hidden:]
    w0 = _pad2(params["w_mlp0"], h_pad, h_pad)
    b0 = _pad2(params["b_mlp0"], 1, h_pad)
    w1 = _pad2(params["w_mlp1"], h_pad, h_pad)
    b1 = _pad2(params["b_mlp1"], 1, h_pad)
    w_out = _pad2(params["w_out"], h_pad, o_pad)
    b_out = _pad2(params["b_out"], 1, o_pad)

    # bf16 operands for all matmuls (adj is exactly 0/1 -> lossless cast);
    # accumulation, biases and elementwise math stay f32 inside the kernel.
    args = (
        jnp.asarray(sizes, jnp.int32),          # scalar prefetch (SMEM)
        jnp.asarray(atoms, jnp.bfloat16),
        jnp.asarray(adj, jnp.bfloat16),
        jnp.asarray(w_proj, jnp.bfloat16),
        jnp.asarray(b_proj, jnp.float32),
        jnp.asarray(w_gen, jnp.bfloat16),
        jnp.asarray(b_gen, jnp.float32),
        jnp.asarray(w_merge, jnp.bfloat16),
        jnp.asarray(w0, jnp.bfloat16),
        jnp.asarray(b0, jnp.float32),
        jnp.asarray(w1, jnp.bfloat16),
        jnp.asarray(b1, jnp.float32),
        jnp.asarray(w_out, jnp.bfloat16),
        jnp.asarray(b_out, jnp.float32),
    )

    # Explicit VMEM budget: double-buffered per-step blocks + live f32 values.
    def nbytes(shape, itemsize):
        return int(np.prod(shape)) * itemsize

    per_step_blocks = (
        nbytes((2 * tile, a_pad), 2)            # atoms block (bf16)
        + nbytes((2, tile, tile), 2)            # adj block (bf16)
        + nbytes((a_pad, h_pad), 2)
        + nbytes((depth, h_pad, h_pad), 2)
        + nbytes((2, h_pad, h_pad), 2)
        + 2 * nbytes((h_pad, h_pad), 2)
        + nbytes((h_pad, o_pad), 2)
        + nbytes((depth + 5, h_pad), 4)         # biases (f32)
        + nbytes((1, o_pad), 4)                 # output block
    )
    live_values = 8 * nbytes((2 * tile, h_pad), 4)
    vmem_limit = int(min(64 * 1024 * 1024,
                         max(32 * 1024 * 1024,
                             2 * per_step_blocks + live_values + (4 << 20))))

    grid_spec = pltpu.PrefetchScalarGridSpec(
        num_scalar_prefetch=1,
        grid=(n_pairs,),
        in_specs=[
            pl.BlockSpec((None, 2 * tile, a_pad), lambda i, sz: (i, 0, 0)),
            pl.BlockSpec((None, 2, tile, tile), lambda i, sz: (i, 0, 0, 0)),
            pl.BlockSpec((a_pad, h_pad), lambda i, sz: (0, 0)),
            pl.BlockSpec((1, h_pad), lambda i, sz: (0, 0)),
            pl.BlockSpec((depth, h_pad, h_pad), lambda i, sz: (0, 0, 0)),
            pl.BlockSpec((depth, 1, h_pad), lambda i, sz: (0, 0, 0)),
            pl.BlockSpec((2, h_pad, h_pad), lambda i, sz: (0, 0, 0)),
            pl.BlockSpec((h_pad, h_pad), lambda i, sz: (0, 0)),
            pl.BlockSpec((1, h_pad), lambda i, sz: (0, 0)),
            pl.BlockSpec((h_pad, h_pad), lambda i, sz: (0, 0)),
            pl.BlockSpec((1, h_pad), lambda i, sz: (0, 0)),
            pl.BlockSpec((h_pad, o_pad), lambda i, sz: (0, 0)),
            pl.BlockSpec((1, o_pad), lambda i, sz: (0, 0)),
        ],
        out_specs=pl.BlockSpec((None, 1, o_pad), lambda i, sz: (i, 0, 0)),
    )

    out = pl.pallas_call(
        functools.partial(_pair_kernel, depth=depth, tile=tile),
        out_shape=jax.ShapeDtypeStruct((n_pairs, 1, o_pad), jnp.float32),
        grid_spec=grid_spec,
        compiler_params=pltpu.CompilerParams(
            dimension_semantics=("parallel",),       # pair axis -> 2 TCs on v7x
            vmem_limit_bytes=vmem_limit),
    )(*args)
    # Slice the lane-padded output back to the real logits.
    return out[:, 0, :out_dim]


# ---------------------------------------------------------------------------
# Pure-JAX f32 reference mirroring the torch forward (dense block-diag batch).
# ---------------------------------------------------------------------------
def _dense_batch(atom_list, adj_list):
    atoms = np.concatenate([np.asarray(a, np.float32) for a in atom_list], 0)
    sizes = [int(np.asarray(a).shape[0]) for a in adj_list]
    n = int(sum(sizes))
    A = np.zeros((n, n), np.float32)
    S = np.zeros((len(sizes), n), np.float32)
    i = 0
    for k, a in enumerate(adj_list):
        m = sizes[k]
        A[i:i + m, i:i + m] = np.asarray(a, np.float32)
        S[k, i:i + m] = 1.0
        i += m
    return atoms, A, S


def reference_forward(params, m1_atoms, adj1, m2_atoms, adj2, *, depth):
    def gnn(atom_list, adj_list):
        a, A, s = _dense_batch(atom_list, adj_list)
        a, A, s = jnp.asarray(a), jnp.asarray(A), jnp.asarray(s)
        v = a @ params["w_proj"] + params["b_proj"]
        for l in range(depth):
            h = jnp.maximum(v @ params["w_gen"][l] + params["b_gen"][l], 0.0)
            hs = h + A @ h
            v = hs / jnp.maximum(
                jnp.sqrt(jnp.sum(hs * hs, axis=1, keepdims=True)), 1e-12)
        return s @ v
    m = jnp.concatenate([gnn(m1_atoms, adj1), gnn(m2_atoms, adj2)],
                        axis=1) @ params["w_merge"]
    m = jnp.maximum(m @ params["w_mlp0"] + params["b_mlp0"], 0.0)
    m = jnp.maximum(m @ params["w_mlp1"] + params["b_mlp1"], 0.0)
    return m @ params["w_out"] + params["b_out"]


if __name__ == "__main__":
    ATOM_DIM, HIDDEN, DEPTH = 8, 32, 2
    key = jax.random.PRNGKey(0)
    ks = list(jax.random.split(key, 20))

    def init_w(k, shape, fan_in):
        bound = 1.0 / np.sqrt(fan_in)
        return jax.random.uniform(k, shape, jnp.float32, -bound, bound)

    params = {
        "w_proj": init_w(ks[0], (ATOM_DIM, HIDDEN), ATOM_DIM),
        "b_proj": init_w(ks[1], (1, HIDDEN), ATOM_DIM),
        "w_gen":  init_w(ks[2], (DEPTH, HIDDEN, HIDDEN), HIDDEN),
        "b_gen":  init_w(ks[3], (DEPTH, 1, HIDDEN), HIDDEN),
        "w_merge": init_w(ks[4], (2 * HIDDEN, HIDDEN), 2 * HIDDEN),  # bias=False
        "w_mlp0": init_w(ks[5], (HIDDEN, HIDDEN), HIDDEN),
        "b_mlp0": init_w(ks[6], (1, HIDDEN), HIDDEN),
        "w_mlp1": init_w(ks[7], (HIDDEN, HIDDEN), HIDDEN),
        "b_mlp1": init_w(ks[8], (1, HIDDEN), HIDDEN),
        "w_out":  init_w(ks[9], (HIDDEN, 2), HIDDEN),  # task='classification'
        "b_out":  init_w(ks[10], (1, 2), HIDDEN),
    }

    # Two "molecule pairs" (batch of 2): ragged atom counts per molecule.
    m1_sizes, m2_sizes = [6, 10], [8, 8]
    m1_atoms = [jax.random.normal(ks[11 + i], (n, ATOM_DIM), jnp.float32)
                for i, n in enumerate(m1_sizes)]
    m2_atoms = [jax.random.normal(ks[13 + i], (n, ATOM_DIM), jnp.float32)
                for i, n in enumerate(m2_sizes)]
    adj1 = [(jax.random.uniform(ks[15 + i], (n, n)) > 0.5).astype(jnp.float32)
            for i, n in enumerate(m1_sizes)]
    adj2 = [(jax.random.uniform(ks[17 + i], (n, n)) > 0.5).astype(jnp.float32)
            for i, n in enumerate(m2_sizes)]

    score = graph_cage_forward(params, m1_atoms, adj1, m2_atoms, adj2,
                               depth=DEPTH)
    score = jax.block_until_ready(score)

    ref = reference_forward(params, m1_atoms, adj1, m2_atoms, adj2, depth=DEPTH)
    # Kernel runs all matmuls with bf16 operands (f32 accumulate); compare
    # against the f32 reference with a bf16-appropriate tolerance.
    np.testing.assert_allclose(np.asarray(score), np.asarray(ref),
                               rtol=5e-2, atol=5e-2)

    print("KERNEL_OK")
</pallas_src>

<mosaic_0001>
module attributes {stable_mosaic.version = 11 : i64} {
  func.func @_pair_kernel(%arg0: i32, %arg1: memref<2x2xi32, #tpu.memory_space<smem>>, %arg2: memref<1x256x128xbf16, #tpu.memory_space<vmem>>, %arg3: memref<1x2x128x128xbf16, #tpu.memory_space<vmem>>, %arg4: memref<128x128xbf16, #tpu.memory_space<vmem>>, %arg5: memref<1x128xf32, #tpu.memory_space<vmem>>, %arg6: memref<2x128x128xbf16, #tpu.memory_space<vmem>>, %arg7: memref<2x1x128xf32, #tpu.memory_space<vmem>>, %arg8: memref<2x128x128xbf16, #tpu.memory_space<vmem>>, %arg9: memref<128x128xbf16, #tpu.memory_space<vmem>>, %arg10: memref<1x128xf32, #tpu.memory_space<vmem>>, %arg11: memref<128x128xbf16, #tpu.memory_space<vmem>>, %arg12: memref<1x128xf32, #tpu.memory_space<vmem>>, %arg13: memref<128x128xbf16, #tpu.memory_space<vmem>>, %arg14: memref<1x128xf32, #tpu.memory_space<vmem>>, %arg15: memref<1x1x128xf32, #tpu.memory_space<vmem>>) attributes {dimension_semantics = [#tpu.dimension_semantics<parallel>], iteration_bounds = array<i64: 2>, scalar_prefetch = 1 : i64, scratch_operands = 0 : i64, tpu.core_type = #tpu.core_type<tc>, window_params = [{transform_indices = @transform_0, window_bounds = array<i64: 1, 256, 128>}, {transform_indices = @transform_1, window_bounds = array<i64: 1, 2, 128, 128>}, {pipeline_mode = #tpu.pipeline_mode<synchronous>, transform_indices = @transform_2, window_bounds = array<i64: 128, 128>}, {pipeline_mode = #tpu.pipeline_mode<synchronous>, transform_indices = @transform_3, window_bounds = array<i64: 1, 128>}, {pipeline_mode = #tpu.pipeline_mode<synchronous>, transform_indices = @transform_4, window_bounds = array<i64: 2, 128, 128>}, {pipeline_mode = #tpu.pipeline_mode<synchronous>, transform_indices = @transform_5, window_bounds = array<i64: 2, 1, 128>}, {pipeline_mode = #tpu.pipeline_mode<synchronous>, transform_indices = @transform_6, window_bounds = array<i64: 2, 128, 128>}, {pipeline_mode = #tpu.pipeline_mode<synchronous>, transform_indices = @transform_7, window_bounds = array<i64: 128, 128>}, {pipeline_mode = #tpu.pipeline_mode<synchronous>, transform_indices = @transform_8, window_bounds = array<i64: 1, 128>}, {pipeline_mode = #tpu.pipeline_mode<synchronous>, transform_indices = @transform_9, window_bounds = array<i64: 128, 128>}, {pipeline_mode = #tpu.pipeline_mode<synchronous>, transform_indices = @transform_10, window_bounds = array<i64: 1, 128>}, {pipeline_mode = #tpu.pipeline_mode<synchronous>, transform_indices = @transform_11, window_bounds = array<i64: 128, 128>}, {pipeline_mode = #tpu.pipeline_mode<synchronous>, transform_indices = @transform_12, window_bounds = array<i64: 1, 128>}, {transform_indices = @transform_13, window_bounds = array<i64: 1, 1, 128>}]} {
    %c0 = arith.constant 0 : index
    %c0_0 = arith.constant 0 : index
    %c0_1 = arith.constant 0 : index
    %0 = vector.load %arg2[%c0, %c0_0, %c0_1] : memref<1x256x128xbf16, #tpu.memory_space<vmem>>, vector<1x256x128xbf16>
    %1 = vector.shape_cast %0 : vector<1x256x128xbf16> to vector<256x128xbf16>
    %c0_2 = arith.constant 0 : index
    %c0_3 = arith.constant 0 : index
    %2 = vector.load %arg4[%c0_2, %c0_3] : memref<128x128xbf16, #tpu.memory_space<vmem>>, vector<128x128xbf16>
    %cst = arith.constant dense<0.000000e+00> : vector<256x128xf32>
    %3 = tpu.matmul %1, %2, %cst {dimension_numbers = #tpu.dot_dimension_numbers<[1], [0], [0], [1], [0, 0, 1, 1], [], []>} : vector<256x128xbf16>, vector<128x128xbf16>, vector<256x128xf32> -> vector<256x128xf32>
    %c0_4 = arith.constant 0 : index
    %c0_5 = arith.constant 0 : index
    %4 = vector.load %arg5[%c0_4, %c0_5] : memref<1x128xf32, #tpu.memory_space<vmem>>, vector<1x128xf32>
    %5 = vector.broadcast %4 : vector<1x128xf32> to vector<256x128xf32>
    %6 = arith.addf %3, %5 : vector<256x128xf32>
    %7 = arith.truncf %6 : vector<256x128xf32> to vector<256x128xbf16>
    %c0_6 = arith.constant 0 : index
    %c0_7 = arith.constant 0 : index
    %c0_8 = arith.constant 0 : index
    %8 = vector.load %arg6[%c0_6, %c0_7, %c0_8] : memref<2x128x128xbf16, #tpu.memory_space<vmem>>, vector<1x128x128xbf16>
    %9 = vector.shape_cast %8 : vector<1x128x128xbf16> to vector<128x128xbf16>
    %cst_9 = arith.constant dense<0.000000e+00> : vector<256x128xf32>
    %10 = tpu.matmul %7, %9, %cst_9 {dimension_numbers = #tpu.dot_dimension_numbers<[1], [0], [0], [1], [0, 0, 1, 1], [], []>} : vector<256x128xbf16>, vector<128x128xbf16>, vector<256x128xf32> -> vector<256x128xf32>
    %c0_10 = arith.constant 0 : index
    %c0_11 = arith.constant 0 : index
    %c0_12 = arith.constant 0 : index
    %11 = vector.load %arg7[%c0_10, %c0_11, %c0_12] : memref<2x1x128xf32, #tpu.memory_space<vmem>>, vector<1x1x128xf32>
    %12 = vector.shape_cast %11 : vector<1x1x128xf32> to vector<1x128xf32>
    %13 = vector.broadcast %12 : vector<1x128xf32> to vector<256x128xf32>
    %14 = arith.addf %10, %13 : vector<256x128xf32>
    %cst_13 = arith.constant 0.000000e+00 : f32
    %15 = vector.broadcast %cst_13 : f32 to vector<256x128xf32>
    %16 = arith.maximumf %14, %15 : vector<256x128xf32>
    %17 = arith.truncf %16 : vector<256x128xf32> to vector<256x128xbf16>
    %c0_14 = arith.constant 0 : index
    %c0_15 = arith.constant 0 : index
    %c0_16 = arith.constant 0 : index
    %c0_17 = arith.constant 0 : index
    %18 = vector.load %arg3[%c0_14, %c0_15, %c0_16, %c0_17] : memref<1x2x128x128xbf16, #tpu.memory_space<vmem>>, vector<1x1x128x128xbf16>
    %19 = vector.shape_cast %18 : vector<1x1x128x128xbf16> to vector<128x128xbf16>
    %20 = vector.extract_strided_slice %17 {offsets = [0, 0], sizes = [128, 128], strides = [1, 1]} : vector<256x128xbf16> to vector<128x128xbf16>
    %cst_18 = arith.constant dense<0.000000e+00> : vector<128x128xf32>
    %21 = tpu.matmul %19, %20, %cst_18 {dimension_numbers = #tpu.dot_dimension_numbers<[1], [0], [0], [1], [0, 0, 1, 1], [], []>} : vector<128x128xbf16>, vector<128x128xbf16>, vector<128x128xf32> -> vector<128x128xf32>
    %c0_19 = arith.constant 0 : index
    %c1 = arith.constant 1 : index
    %c0_20 = arith.constant 0 : index
    %c0_21 = arith.constant 0 : index
    %22 = vector.load %arg3[%c0_19, %c1, %c0_20, %c0_21] : memref<1x2x128x128xbf16, #tpu.memory_space<vmem>>, vector<1x1x128x128xbf16>
    %23 = vector.shape_cast %22 : vector<1x1x128x128xbf16> to vector<128x128xbf16>
    %24 = vector.extract_strided_slice %17 {offsets = [128, 0], sizes = [128, 128], strides = [1, 1]} : vector<256x128xbf16> to vector<128x128xbf16>
    %cst_22 = arith.constant dense<0.000000e+00> : vector<128x128xf32>
    %25 = tpu.matmul %23, %24, %cst_22 {dimension_numbers = #tpu.dot_dimension_numbers<[1], [0], [0], [1], [0, 0, 1, 1], [], []>} : vector<128x128xbf16>, vector<128x128xbf16>, vector<128x128xf32> -> vector<128x128xf32>
    %26 = tpu.concatenate %21, %25 in 0 : vector<128x128xf32>, vector<128x128xf32> -> vector<256x128xf32>
    %27 = arith.addf %16, %26 : vector<256x128xf32>
    %28 = arith.mulf %27, %27 : vector<256x128xf32>
    %cst_23 = arith.constant dense<0.000000e+00> : vector<256xf32>
    %29 = vector.multi_reduction <add>, %28, %cst_23 [1] : vector<256x128xf32> to vector<256xf32>
    %30 = vector.shape_cast %29 : vector<256xf32> to vector<256x1xf32>
    %cst_24 = arith.constant 1.000000e-24 : f32
    %31 = vector.broadcast %cst_24 : f32 to vector<256x1xf32>
    %32 = arith.maximumf %30, %31 : vector<256x1xf32>
    %33 = math.rsqrt %32 : vector<256x1xf32>
    %34 = vector.broadcast %33 : vector<256x1xf32> to vector<256x128xf32>
    %35 = arith.mulf %27, %34 : vector<256x128xf32>
    %36 = arith.truncf %35 : vector<256x128xf32> to vector<256x128xbf16>
    %c1_25 = arith.constant 1 : index
    %c0_26 = arith.constant 0 : index
    %c0_27 = arith.constant 0 : index
    %37 = vector.load %arg6[%c1_25, %c0_26, %c0_27] : memref<2x128x128xbf16, #tpu.memory_space<vmem>>, vector<1x128x128xbf16>
    %38 = vector.shape_cast %37 : vector<1x128x128xbf16> to vector<128x128xbf16>
    %cst_28 = arith.constant dense<0.000000e+00> : vector<256x128xf32>
    %39 = tpu.matmul %36, %38, %cst_28 {dimension_numbers = #tpu.dot_dimension_numbers<[1], [0], [0], [1], [0, 0, 1, 1], [], []>} : vector<256x128xbf16>, vector<128x128xbf16>, vector<256x128xf32> -> vector<256x128xf32>
    %c1_29 = arith.constant 1 : index
    %c0_30 = arith.constant 0 : index
    %c0_31 = arith.constant 0 : index
    %40 = vector.load %arg7[%c1_29, %c0_30, %c0_31] : memref<2x1x128xf32, #tpu.memory_space<vmem>>, vector<1x1x128xf32>
    %41 = vector.shape_cast %40 : vector<1x1x128xf32> to vector<1x128xf32>
    %42 = vector.broadcast %41 : vector<1x128xf32> to vector<256x128xf32>
    %43 = arith.addf %39, %42 : vector<256x128xf32>
    %cst_32 = arith.constant 0.000000e+00 : f32
    %44 = vector.broadcast %cst_32 : f32 to vector<256x128xf32>
    %45 = arith.maximumf %43, %44 : vector<256x128xf32>
    %46 = arith.truncf %45 : vector<256x128xf32> to vector<256x128xbf16>
    %c0_33 = arith.constant 0 : index
    %c0_34 = arith.constant 0 : index
    %c0_35 = arith.constant 0 : index
    %c0_36 = arith.constant 0 : index
    %47 = vector.load %arg3[%c0_33, %c0_34, %c0_35, %c0_36] : memref<1x2x128x128xbf16, #tpu.memory_space<vmem>>, vector<1x1x128x128xbf16>
    %48 = vector.shape_cast %47 : vector<1x1x128x128xbf16> to vector<128x128xbf16>
    %49 = vector.extract_strided_slice %46 {offsets = [0, 0], sizes = [128, 128], strides = [1, 1]} : vector<256x128xbf16> to vector<128x128xbf16>
    %cst_37 = arith.constant dense<0.000000e+00> : vector<128x128xf32>
    %50 = tpu.matmul %48, %49, %cst_37 {dimension_numbers = #tpu.dot_dimension_numbers<[1], [0], [0], [1], [0, 0, 1, 1], [], []>} : vector<128x128xbf16>, vector<128x128xbf16>, vector<128x128xf32> -> vector<128x128xf32>
    %c0_38 = arith.constant 0 : index
    %c1_39 = arith.constant 1 : index
    %c0_40 = arith.constant 0 : index
    %c0_41 = arith.constant 0 : index
    %51 = vector.load %arg3[%c0_38, %c1_39, %c0_40, %c0_41] : memref<1x2x128x128xbf16, #tpu.memory_space<vmem>>, vector<1x1x128x128xbf16>
    %52 = vector.shape_cast %51 : vector<1x1x128x128xbf16> to vector<128x128xbf16>
    %53 = vector.extract_strided_slice %46 {offsets = [128, 0], sizes = [128, 128], strides = [1, 1]} : vector<256x128xbf16> to vector<128x128xbf16>
    %cst_42 = arith.constant dense<0.000000e+00> : vector<128x128xf32>
    %54 = tpu.matmul %52, %53, %cst_42 {dimension_numbers = #tpu.dot_dimension_numbers<[1], [0], [0], [1], [0, 0, 1, 1], [], []>} : vector<128x128xbf16>, vector<128x128xbf16>, vector<128x128xf32> -> vector<128x128xf32>
    %55 = tpu.concatenate %50, %54 in 0 : vector<128x128xf32>, vector<128x128xf32> -> vector<256x128xf32>
    %56 = arith.addf %45, %55 : vector<256x128xf32>
    %57 = arith.mulf %56, %56 : vector<256x128xf32>
    %cst_43 = arith.constant dense<0.000000e+00> : vector<256xf32>
    %58 = vector.multi_reduction <add>, %57, %cst_43 [1] : vector<256x128xf32> to vector<256xf32>
    %59 = vector.shape_cast %58 : vector<256xf32> to vector<256x1xf32>
    %cst_44 = arith.constant 1.000000e-24 : f32
    %60 = vector.broadcast %cst_44 : f32 to vector<256x1xf32>
    %61 = arith.maximumf %59, %60 : vector<256x1xf32>
    %62 = math.rsqrt %61 : vector<256x1xf32>
    %63 = vector.broadcast %62 : vector<256x1xf32> to vector<256x128xf32>
    %64 = arith.mulf %56, %63 : vector<256x128xf32>
    %65 = tpu.iota {dimensions = array<i32: 0>} : vector<128x1xi32>
    %66 = arith.index_cast %arg0 : i32 to index
    %c0_45 = arith.constant 0 : index
    %67 = memref.load %arg1[%66, %c0_45] : memref<2x2xi32, #tpu.memory_space<smem>>
    %68 = arith.index_cast %arg0 : i32 to index
    %c1_46 = arith.constant 1 : index
    %69 = memref.load %arg1[%68, %c1_46] : memref<2x2xi32, #tpu.memory_space<smem>>
    %70 = vector.broadcast %67 : i32 to vector<128x1xi32>
    %71 = arith.cmpi slt, %65, %70 : vector<128x1xi32>
    %72 = vector.extract_strided_slice %64 {offsets = [0, 0], sizes = [128, 128], strides = [1, 1]} : vector<256x128xf32> to vector<128x128xf32>
    %cst_47 = arith.constant 0.000000e+00 : f32
    %73 = vector.shape_cast %71 : vector<128x1xi1> to vector<128x1xi1>
    %74 = vector.broadcast %73 : vector<128x1xi1> to vector<128x128xi1>
    %75 = vector.broadcast %cst_47 : f32 to vector<128x128xf32>
    %76 = arith.select %74, %72, %75 : vector<128x128xi1>, vector<128x128xf32>
    %cst_48 = arith.constant dense<0.000000e+00> : vector<128xf32>
    %77 = vector.multi_reduction <add>, %76, %cst_48 [0] : vector<128x128xf32> to vector<128xf32>
    %78 = vector.shape_cast %77 : vector<128xf32> to vector<1x128xf32>
    %79 = vector.broadcast %69 : i32 to vector<128x1xi32>
    %80 = arith.cmpi slt, %65, %79 : vector<128x1xi32>
    %81 = vector.extract_strided_slice %64 {offsets = [128, 0], sizes = [128, 128], strides = [1, 1]} : vector<256x128xf32> to vector<128x128xf32>
    %cst_49 = arith.constant 0.000000e+00 : f32
    %82 = vector.shape_cast %80 : vector<128x1xi1> to vector<128x1xi1>
    %83 = vector.broadcast %82 : vector<128x1xi1> to vector<128x128xi1>
    %84 = vector.broadcast %cst_49 : f32 to vector<128x128xf32>
    %85 = arith.select %83, %81, %84 : vector<128x128xi1>, vector<128x128xf32>
    %cst_50 = arith.constant dense<0.000000e+00> : vector<128xf32>
    %86 = vector.multi_reduction <add>, %85, %cst_50 [0] : vector<128x128xf32> to vector<128xf32>
    %87 = vector.shape_cast %86 : vector<128xf32> to vector<1x128xf32>
    %88 = arith.truncf %78 : vector<1x128xf32> to vector<1x128xbf16>
    %c0_51 = arith.constant 0 : index
    %c0_52 = arith.constant 0 : index
    %c0_53 = arith.constant 0 : index
    %89 = vector.load %arg8[%c0_51, %c0_52, %c0_53] : memref<2x128x128xbf16, #tpu.memory_space<vmem>>, vector<1x128x128xbf16>
    %90 = vector.shape_cast %89 : vector<1x128x128xbf16> to vector<128x128xbf16>
    %cst_54 = arith.constant dense<0.000000e+00> : vector<1x128xf32>
    %91 = tpu.matmul %88, %90, %cst_54 {dimension_numbers = #tpu.dot_dimension_numbers<[1], [0], [0], [1], [0, 0, 1, 1], [], []>} : vector<1x128xbf16>, vector<128x128xbf16>, vector<1x128xf32> -> vector<1x128xf32>
    %92 = arith.truncf %87 : vector<1x128xf32> to vector<1x128xbf16>
    %c1_55 = arith.constant 1 : index
    %c0_56 = arith.constant 0 : index
    %c0_57 = arith.constant 0 : index
    %93 = vector.load %arg8[%c1_55, %c0_56, %c0_57] : memref<2x128x128xbf16, #tpu.memory_space<vmem>>, vector<1x128x128xbf16>
    %94 = vector.shape_cast %93 : vector<1x128x128xbf16> to vector<128x128xbf16>
    %cst_58 = arith.constant dense<0.000000e+00> : vector<1x128xf32>
    %95 = tpu.matmul %92, %94, %cst_58 {dimension_numbers = #tpu.dot_dimension_numbers<[1], [0], [0], [1], [0, 0, 1, 1], [], []>} : vector<1x128xbf16>, vector<128x128xbf16>, vector<1x128xf32> -> vector<1x128xf32>
    %96 = arith.addf %91, %95 : vector<1x128xf32>
    %97 = arith.truncf %96 : vector<1x128xf32> to vector<1x128xbf16>
    %c0_59 = arith.constant 0 : index
    %c0_60 = arith.constant 0 : index
    %98 = vector.load %arg9[%c0_59, %c0_60] : memref<128x128xbf16, #tpu.memory_space<vmem>>, vector<128x128xbf16>
    %cst_61 = arith.constant dense<0.000000e+00> : vector<1x128xf32>
    %99 = tpu.matmul %97, %98, %cst_61 {dimension_numbers = #tpu.dot_dimension_numbers<[1], [0], [0], [1], [0, 0, 1, 1], [], []>} : vector<1x128xbf16>, vector<128x128xbf16>, vector<1x128xf32> -> vector<1x128xf32>
    %c0_62 = arith.constant 0 : index
    %c0_63 = arith.constant 0 : index
    %100 = vector.load %arg10[%c0_62, %c0_63] : memref<1x128xf32, #tpu.memory_space<vmem>>, vector<1x128xf32>
    %101 = arith.addf %99, %100 : vector<1x128xf32>
    %cst_64 = arith.constant 0.000000e+00 : f32
    %102 = vector.broadcast %cst_64 : f32 to vector<1x128xf32>
    %103 = arith.maximumf %101, %102 : vector<1x128xf32>
    %104 = arith.truncf %103 : vector<1x128xf32> to vector<1x128xbf16>
    %c0_65 = arith.constant 0 : index
    %c0_66 = arith.constant 0 : index
    %105 = vector.load %arg11[%c0_65, %c0_66] : memref<128x128xbf16, #tpu.memory_space<vmem>>, vector<128x128xbf16>
    %cst_67 = arith.constant dense<0.000000e+00> : vector<1x128xf32>
    %106 = tpu.matmul %104, %105, %cst_67 {dimension_numbers = #tpu.dot_dimension_numbers<[1], [0], [0], [1], [0, 0, 1, 1], [], []>} : vector<1x128xbf16>, vector<128x128xbf16>, vector<1x128xf32> -> vector<1x128xf32>
    %c0_68 = arith.constant 0 : index
    %c0_69 = arith.constant 0 : index
    %107 = vector.load %arg12[%c0_68, %c0_69] : memref<1x128xf32, #tpu.memory_space<vmem>>, vector<1x128xf32>
    %108 = arith.addf %106, %107 : vector<1x128xf32>
    %cst_70 = arith.constant 0.000000e+00 : f32
    %109 = vector.broadcast %cst_70 : f32 to vector<1x128xf32>
    %110 = arith.maximumf %108, %109 : vector<1x128xf32>
    %111 = arith.truncf %110 : vector<1x128xf32> to vector<1x128xbf16>
    %c0_71 = arith.constant 0 : index
    %c0_72 = arith.constant 0 : index
    %112 = vector.load %arg13[%c0_71, %c0_72] : memref<128x128xbf16, #tpu.memory_space<vmem>>, vector<128x128xbf16>
    %cst_73 = arith.constant dense<0.000000e+00> : vector<1x128xf32>
    %113 = tpu.matmul %111, %112, %cst_73 {dimension_numbers = #tpu.dot_dimension_numbers<[1], [0], [0], [1], [0, 0, 1, 1], [], []>} : vector<1x128xbf16>, vector<128x128xbf16>, vector<1x128xf32> -> vector<1x128xf32>
    %c0_74 = arith.constant 0 : index
    %c0_75 = arith.constant 0 : index
    %114 = vector.load %arg14[%c0_74, %c0_75] : memref<1x128xf32, #tpu.memory_space<vmem>>, vector<1x128xf32>
    %115 = arith.addf %113, %114 : vector<1x128xf32>
    %c0_76 = arith.constant 0 : index
    %c0_77 = arith.constant 0 : index
    %c0_78 = arith.constant 0 : index
    %116 = vector.load %arg15[%c0_76, %c0_77, %c0_78] : memref<1x1x128xf32, #tpu.memory_space<vmem>>, vector<1x1x128xf32>
    %117 = vector.shape_cast %116 : vector<1x1x128xf32> to vector<1x128xf32>
    %118 = vector.shape_cast %115 : vector<1x128xf32> to vector<1x1x128xf32>
    tpu.vector_store %arg15[%c0_76, %c0_77, %c0_78], %118 {strides = array<i32>} : memref<1x1x128xf32, #tpu.memory_space<vmem>>, vector<1x1x128xf32>,
    return
  }
  func.func @transform_0(%arg0: i32, %arg1: memref<2x2xi32, #tpu.memory_space<smem>>) -> (i32, i32, i32) {
    %c0_i32 = arith.constant 0 : i32
    %c0_i32_0 = arith.constant 0 : i32
    %c0_i32_1 = arith.constant 0 : i32
    return %arg0, %c0_i32, %c0_i32_0 : i32, i32, i32
  }
  func.func @transform_1(%arg0: i32, %arg1: memref<2x2xi32, #tpu.memory_space<smem>>) -> (i32, i32, i32, i32) {
    %c0_i32 = arith.constant 0 : i32
    %c0_i32_0 = arith.constant 0 : i32
    %c0_i32_1 = arith.constant 0 : i32
    %c0_i32_2 = arith.constant 0 : i32
    return %arg0, %c0_i32, %c0_i32_0, %c0_i32_1 : i32, i32, i32, i32
  }
  func.func @transform_2(%arg0: i32, %arg1: memref<2x2xi32, #tpu.memory_space<smem>>) -> (i32, i32) {
    %c0_i32 = arith.constant 0 : i32
    %c0_i32_0 = arith.constant 0 : i32
    %c0_i32_1 = arith.constant 0 : i32
    return %c0_i32, %c0_i32_0 : i32, i32
  }
  func.func @transform_3(%arg0: i32, %arg1: memref<2x2xi32, #tpu.memory_space<smem>>) -> (i32, i32) {
    %c0_i32 = arith.constant 0 : i32
    %c0_i32_0 = arith.constant 0 : i32
    %c0_i32_1 = arith.constant 0 : i32
    return %c0_i32, %c0_i32_0 : i32, i32
  }
  func.func @transform_4(%arg0: i32, %arg1: memref<2x2xi32, #tpu.memory_space<smem>>) -> (i32, i32, i32) {
    %c0_i32 = arith.constant 0 : i32
    %c0_i32_0 = arith.constant 0 : i32
    %c0_i32_1 = arith.constant 0 : i32
    %c0_i32_2 = arith.constant 0 : i32
    return %c0_i32, %c0_i32_0, %c0_i32_1 : i32, i32, i32
  }
  func.func @transform_5(%arg0: i32, %arg1: memref<2x2xi32, #tpu.memory_space<smem>>) -> (i32, i32, i32) {
    %c0_i32 = arith.constant 0 : i32
    %c0_i32_0 = arith.constant 0 : i32
    %c0_i32_1 = arith.constant 0 : i32
    %c0_i32_2 = arith.constant 0 : i32
    return %c0_i32, %c0_i32_0, %c0_i32_1 : i32, i32, i32
  }
  func.func @transform_6(%arg0: i32, %arg1: memref<2x2xi32, #tpu.memory_space<smem>>) -> (i32, i32, i32) {
    %c0_i32 = arith.constant 0 : i32
    %c0_i32_0 = arith.constant 0 : i32
    %c0_i32_1 = arith.constant 0 : i32
    %c0_i32_2 = arith.constant 0 : i32
    return %c0_i32, %c0_i32_0, %c0_i32_1 : i32, i32, i32
  }
  func.func @transform_7(%arg0: i32, %arg1: memref<2x2xi32, #tpu.memory_space<smem>>) -> (i32, i32) {
    %c0_i32 = arith.constant 0 : i32
    %c0_i32_0 = arith.constant 0 : i32
    %c0_i32_1 = arith.constant 0 : i32
    return %c0_i32, %c0_i32_0 : i32, i32
  }
  func.func @transform_8(%arg0: i32, %arg1: memref<2x2xi32, #tpu.memory_space<smem>>) -> (i32, i32) {
    %c0_i32 = arith.constant 0 : i32
    %c0_i32_0 = arith.constant 0 : i32
    %c0_i32_1 = arith.constant 0 : i32
    return %c0_i32, %c0_i32_0 : i32, i32
  }
  func.func @transform_9(%arg0: i32, %arg1: memref<2x2xi32, #tpu.memory_space<smem>>) -> (i32, i32) {
    %c0_i32 = arith.constant 0 : i32
    %c0_i32_0 = arith.constant 0 : i32
    %c0_i32_1 = arith.constant 0 : i32
    return %c0_i32, %c0_i32_0 : i32, i32
  }
  func.func @transform_10(%arg0: i32, %arg1: memref<2x2xi32, #tpu.memory_space<smem>>) -> (i32, i32) {
    %c0_i32 = arith.constant 0 : i32
    %c0_i32_0 = arith.constant 0 : i32
    %c0_i32_1 = arith.constant 0 : i32
    return %c0_i32, %c0_i32_0 : i32, i32
  }
  func.func @transform_11(%arg0: i32, %arg1: memref<2x2xi32, #tpu.memory_space<smem>>) -> (i32, i32) {
    %c0_i32 = arith.constant 0 : i32
    %c0_i32_0 = arith.constant 0 : i32
    %c0_i32_1 = arith.constant 0 : i32
    return %c0_i32, %c0_i32_0 : i32, i32
  }
  func.func @transform_12(%arg0: i32, %arg1: memref<2x2xi32, #tpu.memory_space<smem>>) -> (i32, i32) {
    %c0_i32 = arith.constant 0 : i32
    %c0_i32_0 = arith.constant 0 : i32
    %c0_i32_1 = arith.constant 0 : i32
    return %c0_i32, %c0_i32_0 : i32, i32
  }
  func.func @transform_13(%arg0: i32, %arg1: memref<2x2xi32, #tpu.memory_space<smem>>) -> (i32, i32, i32) {
    %c0_i32 = arith.constant 0 : i32
    %c0_i32_0 = arith.constant 0 : i32
    %c0_i32_1 = arith.constant 0 : i32
    return %arg0, %c0_i32, %c0_i32_0 : i32, i32, i32
  }
}

</mosaic_0001>

<bundles_post_ra>
// kernel: tpu_custom_call.1
= control target key start
LH: loop header
LB: loop body
LE: loop exit
PB: predicated region body
PF: predicated region fallthrough
CT: control target
= control target key end

     0   :  { %s4752_s29 = smov [#allocation3]   ;;  %s6395_s0 = inlined_call_operand.hbm [shape: s32[2,2], index: 0, kind: input, shape index: {}]   ;;  %s6396_s1 = inlined_call_operand.hbm [shape: bf16[2,256,128], index: 1, kind: input, shape index: {}]   ;;  %s6397_s2 = inlined_call_operand.hbm [shape: bf16[2,2,128,128], index: 2, kind: input, shape index: {}]   ;;  %s6398_s3 = inlined_call_operand.hbm [shape: bf16[128,128], index: 3, kind: input, shape index: {}]   ;;  %s6399_s4 = inlined_call_operand.vmem [shape: f32[1,128], index: 4, kind: input, shape index: {}]   ;;  %s6400_s5 = inlined_call_operand.hbm [shape: bf16[2,128,128], index: 5, kind: input, shape index: {}]   ;;  %s6401_s6 = inlined_call_operand.vmem [shape: f32[2,1,128], index: 6, kind: input, shape index: {}]   ;;  %s6402_s7 = inlined_call_operand.hbm [shape: bf16[2,128,128], index: 7, kind: input, shape index: {}]   ;;  %s6403_s8 = inlined_call_operand.hbm [shape: bf16[128,128], index: 8, kind: input, shape index: {}]   ;;  %s6404_s9 = inlined_call_operand.vmem [shape: f32[1,128], index: 9, kind: input, shape index: {}]   ;;  %s6405_s10 = inlined_call_operand.hbm [shape: bf16[128,128], index: 10, kind: input, shape index: {}]   ;;  %s6406_s11 = inlined_call_operand.vmem [shape: f32[1,128], index: 11, kind: input, shape index: {}]   ;;  %s6407_s12 = inlined_call_operand.hbm [shape: bf16[128,128], index: 12, kind: input, shape index: {}]   ;;  %s6408_s13 = inlined_call_operand.vmem [shape: f32[1,128], index: 13, kind: input, shape index: {}]   ;;  %s6409_s14 = inlined_call_operand.hbm [shape: f32[2,1,128], index: 14, kind: output, shape index: {}]  }
   0x1   :  { %6446 = sst [smem:[#allocation30_spill]] %s6396_s1 }
   0x2   :  { %6447 = sst [smem:[#allocation31_spill]] %s6398_s3 }
   0x3   :  { %6448 = sst [smem:[#allocation32_spill]] %s6400_s5 }
   0x4   :  { %6449 = sst [smem:[#allocation33_spill]] %s6402_s7 }
   0x5   :  { %6450 = sst [smem:[#allocation34_spill]] %s6403_s8 }
   0x6   :  { %6451 = sst [smem:[#allocation35_spill]] %s6405_s10 }
   0x7   :  { %6452 = sst [smem:[#allocation36_spill]] %s6407_s12 }
   0x8   :  { %20 = dma.hbm_to_smem %s6395_s0, 32, %s4752_s29, [#allocation2] }
   0x9   :  { %4706 = dma.done.wait [#allocation2], 32 }
   0xa   :  { %4707 = vsyncadd [#allocation2], 4294967264 }
   0xb   :  { %22 = sfence }
   0xc   :  { %23 = vsyncpa [#allocation5], 0 }
   0xd   :  { %25 = vsyncpa [#allocation5 + $0x1], 0 }
   0xe   :  { %26 = vsyncpa [#allocation8], 0 }
   0xf   :  { %28 = vsyncpa [#allocation8 + $0x1], 0 }
  0x10   :  { %29 = vsyncpa [#allocation11], 0 }
  0x11   :  { %30 = vsyncpa [#allocation14], 0 }
  0x12   :  { %31 = vsyncpa [#allocation17], 0 }
  0x13   :  { %32 = vsyncpa [#allocation6], 0 }
  0x14   :  { %34 = vsyncpa [#allocation6 + $0x1], 0  ;;  %s4844_s16 = smov 0   ;;  %s4846_s17 = smov 0  }
  0x15   :  { %s4848_s18 = smov 0   ;;  %s4850_s19 = smov 0  }
  0x16 LB: > { %6453 = sst [smem:[#allocation27_spill]] %s4746_s18  ;;  %s4753_s0 = smov [#allocation9]   ;;  %s4750_s19 = sphi %s4850_s19, %s6511_s19   ;;  %s4746_s18 = sphi %s4848_s18, %s6513_s18   ;;  %s4742_s17 = sphi %s4846_s17, %s6515_s17   ;;  %s4738_s16 = sphi %s4844_s16, %s6514_s16  }
  0x17   : > { %s366_s20 = sshll.u32 %s4753_s0, 4  ;;  %s4865_s21 = sadd.s32 4294967295, %s4750_s19   ;;  %s367_s20 = int_to_ptr.vmem [resolvable:$true] %s366_s20 }
  0x18   : > { %p3395_p0 = scmp.ge.s32.totalorder %s4750_s19, 1  ;;  %p6417_p1 = scmp.eq.s32.totalorder %s4865_s21, 0 }
  0x19   : > { %p354_p2 = scmp.lt.s32.totalorder %s4750_s19, 3  ;;  %s4754_s23 = smov [#allocation10]  }
  0x1a   : > { %s382_s24 = sshll.u32 %s4754_s23, 4  ;;  %s4755_s26 = smov [#allocation13]   ;;  %s4883_s24 = int_to_ptr.vmem [resolvable:$true] %s382_s24 }
  0x1b   : > { %p4870_p3 = pnand %p3395_p0, %p354_p2  ;;  %s411_s27 = sshll.u32 %s4755_s26, 4  ;;  %s4885_s27 = int_to_ptr.vmem [resolvable:$true] %s411_s27 }
  0x1c   : > { %s4463_s29 = scalar_lea.vmem %s367_s20, 1024  ;;  %p4471_p11 = scmp.lt.s32.totalorder %s367_s20, %s367_s20 }
  0x1d   : > { %p4123_p5 = pneg %p4870_p3  ;;  %p4464_p8 = scmp.ne.s32.totalorder %s367_s20, %s4463_s29 }
  0x1e   : > { %p4472_p12 = scmp.lt.s32.totalorder %s4463_s29, %s4463_s29 }
  0x1f   : > { %p4879_p6 = pnand %p4123_p5, %p6417_p1 }
  0x20   : > { %p4473_p13 = por %p4472_p12, %p4471_p11 }
  0x21   : > { %p4889_p7 = pneg %p4879_p6 }
  0x23   : > { %p4466_p9 = pnand %p4464_p8, %p4889_p7 }
  0x25   : > { %p4467_p10 = pneg %p4466_p9 }
  0x27   : > { %p4474_p0 = pnand %p4473_p13, %p4467_p10 }
  0x29   : > { %4477 = shalt.err (!%p4474_p0)
}
  0x2a   : > { %s6410_s30 = smov 64   ;;  %s6412_s15 = smov 4  }
  0x2b   : > { %s6457_s3 = sld [smem:[#allocation31_spill]]  ;;  %s4489_s26 = scalar_lea.vmem %s4883_s24, 2048 }
  0x2c   : > { %p4490_p2 = scmp.ne.s32.totalorder %s4883_s24, %s4489_s26  ;;  %p4497_p9 = scmp.lt.s32.totalorder %s4883_s24, %s4883_s24 }
  0x2d   : > { %p4498_p10 = scmp.lt.s32.totalorder %s4489_s26, %s4489_s26 }
  0x2e   : > { %p4492_p5 = pnand %p4490_p2, %p4889_p7 }
  0x2f   : > { %p4499_p11 = por %p4498_p10, %p4497_p9 }
  0x30   : > { %p4493_p8 = pneg %p4492_p5 }
  0x31   : > { %4126 = dma.hbm_to_vmem [thread:$0]  (!%p4879_p6), %s6457_s3, 1024, %s367_s20, [#allocation8], %s6410_s30, %s6410_s30, %s6412_s15  }
  0x32   : > { %p4500_p12 = pnand %p4499_p11, %p4493_p8 }
  0x34   : > { %4503 = shalt.err (!%p4500_p12)
}
  0x35   : > { %s6458_s5 = sld [smem:[#allocation32_spill]]  ;;  %s4515_s20 = scalar_lea.vmem %s4885_s27, 1024 }
  0x36   : > { %p4516_p13 = scmp.ne.s32.totalorder %s4885_s27, %s4515_s20  ;;  %p4523_p5 = scmp.lt.s32.totalorder %s4885_s27, %s4885_s27 }
  0x37   : > { %p4524_p8 = scmp.lt.s32.totalorder %s4515_s20, %s4515_s20 }
  0x38   : > { %p4518_p0 = pnand %p4516_p13, %p4889_p7 }
  0x39   : > { %p4525_p9 = por %p4524_p8, %p4523_p5 }
  0x3a   : > { %p4519_p2 = pneg %p4518_p0 }
  0x3b   : > { %4129 = dma.hbm_to_vmem [thread:$0]  (!%p4879_p6), %s6458_s5, 2048, %s4883_s24, [#allocation11], %s6410_s30, %s6410_s30, %s6412_s15  }
  0x3c   : > { %p4526_p10 = pnand %p4525_p9, %p4519_p2 }
  0x3e   : > { %4529 = shalt.err (!%p4526_p10)
}
  0x3f   : > { %s6459_s8 = sld [smem:[#allocation34_spill]]  ;;  %s4758_s24 = smov [#allocation12]  }
  0x40   : > { %s398_s29 = sshll.u32 %s4758_s24, 4  ;;  %s4759_s0 = smov [#allocation15]   ;;  %s399_s29 = int_to_ptr.vmem [resolvable:$true] %s398_s29 }
  0x41   : > { %s427_s3 = sshll.u32 %s4759_s0, 4  ;;  %s4541_s20 = scalar_lea.vmem %s399_s29, 2048  ;;  %s428_s3 = int_to_ptr.vmem [resolvable:$true] %s427_s3 }
  0x42   : > { %p4542_p11 = scmp.ne.s32.totalorder %s399_s29, %s4541_s20  ;;  %p4549_p0 = scmp.lt.s32.totalorder %s399_s29, %s399_s29 }
  0x43   : > { %p4550_p2 = scmp.lt.s32.totalorder %s4541_s20, %s4541_s20 }
  0x44   : > { %p4544_p12 = pnand %p4542_p11, %p4889_p7 }
  0x45   : > { %4135 = dma.hbm_to_vmem [thread:$0]  (!%p4879_p6), %s6459_s8, 1024, %s4885_s27, [#allocation14], %s6410_s30, %s6410_s30, %s6412_s15  }
  0x46   : > { %p4545_p13 = pneg %p4544_p12  ;;  %p4551_p5 = por %p4550_p2, %p4549_p0 }
  0x48   : > { %p4552_p8 = pnand %p4551_p5, %p4545_p13 }
  0x4a   : > { %4555 = shalt.err (!%p4552_p8)
}
  0x4b   : > { %s6460_s7 = sld [smem:[#allocation33_spill]]  ;;  %s4567_s26 = scalar_lea.vmem %s428_s3, 1024 }
  0x4c   : > { %p4568_p9 = scmp.ne.s32.totalorder %s428_s3, %s4567_s26  ;;  %p4575_p12 = scmp.lt.s32.totalorder %s428_s3, %s428_s3 }
  0x4d   : > { %p4576_p0 = scmp.lt.s32.totalorder %s4567_s26, %s4567_s26 }
  0x4e   : > { %p4570_p10 = pnand %p4568_p9, %p4889_p7 }
  0x4f   : > { %p4577_p13 = por %p4576_p0, %p4575_p12 }
  0x50   : > { %p4571_p11 = pneg %p4570_p10 }
  0x51   : > { %4132 = dma.hbm_to_vmem [thread:$0]  (!%p4879_p6), %s6460_s7, 2048, %s399_s29, [#allocation11], %s6410_s30, %s6410_s30, %s6412_s15  }
  0x52   : > { %p4578_p2 = pnand %p4577_p13, %p4571_p11 }
  0x54   : > { %4581 = shalt.err (!%p4578_p2)
}
  0x55   : > { %s6461_s10 = sld [smem:[#allocation35_spill]]  ;;  %s4760_s29 = smov [#allocation16]  }
  0x56   : > { %s443_s20 = sshll.u32 %s4760_s29, 4  ;;  %s444_s20 = int_to_ptr.vmem [resolvable:$true] %s443_s20 }
  0x57   : > { %s4593_s27 = scalar_lea.vmem %s444_s20, 1024  ;;  %p4601_p10 = scmp.lt.s32.totalorder %s444_s20, %s444_s20 }
  0x58   : > { %p4594_p5 = scmp.ne.s32.totalorder %s444_s20, %s4593_s27  ;;  %p4602_p11 = scmp.lt.s32.totalorder %s4593_s27, %s4593_s27 }
  0x5a   : > { %p4596_p8 = pnand %p4594_p5, %p4889_p7  ;;  %p4603_p12 = por %p4602_p11, %p4601_p10 }
  0x5b   : > { %4138 = dma.hbm_to_vmem [thread:$0]  (!%p4879_p6), %s6461_s10, 1024, %s428_s3, [#allocation14], %s6410_s30, %s6410_s30, %s6412_s15  }
  0x5c   : > { %p4597_p9 = pneg %p4596_p8 }
  0x5e   : > { %p4604_p0 = pnand %p4603_p12, %p4597_p9 }
  0x60   : > { %4607 = shalt.err (!%p4604_p0)
}
  0x61   : > { %s6462_s12 = sld [smem:[#allocation36_spill]]  ;;  %s3394_s25 = sadd.s32 4294967294, %s4750_s19  }
  0x62   : > { %s4965_s28 = sadd.s32 1, %s4750_s19   ;;  %s47_s24 = sadd.s32 1, %s4746_s18 }
  0x63   : > { %6463 = sst [smem:[#allocation28_spill]] %s4965_s28  ;;  %s44_s26 = ssub.s32 %s4750_s19, %s4965_s28 }
  0x64   : > { %p45_p7 = scmp.eq.s32.totalorder %s44_s26, 0  ;;  %p54_p13 = scmp.ne.s32.totalorder %s4746_s18, %s4742_s17 }
  0x65   : > { %p55_p2 = scmp.eq.s32.totalorder %s4750_s19, 0  ;;  %p60_p5 = scmp.ne.s32.totalorder %s4742_s17, %s4738_s16 }
  0x66   : > { %s4976_s0 = scalar_select %p45_p7, %s4746_s18, %s47_s24  }
  0x67   : > { %4141 = dma.hbm_to_vmem [thread:$0]  (!%p4879_p6), %s6462_s12, 1024, %s444_s20, [#allocation17], %s6410_s30, %s6410_s30, %s6412_s15  }
  0x68   : > { %6464 = sst [smem:[#allocation29_spill]] %s4976_s0  ;;  %p4978_p8 = por %p55_p2, %p54_p13 }
  0x69   : > { %p4984_p6 = por %p6417_p1, %p60_p5  ;;  %p341_p9 = scmp.eq.s32.totalorder %s4865_s21, 1 }
  0x6a   : > { %p347_p10 = scmp.eq.s32.totalorder %s3394_s25, 1  ;;  %p4159_p11 = scmp.lt.s32.totalorder %s4750_s19, 2 }
  0x6b   : > { %s6466_s20 = scalar_select %p4984_p6, 1, 0 }
  0x6c   : > { %s460_s27 = sand.u32 1, %s4746_s18   ;;  %p4991_p12 = por %p341_p9, %p54_p13 }
  0x6d   : > { %p4995_p0 = por %p347_p10, %p60_p5  ;;  %s3403_s26 = sshll.u32 %s460_s27, 7 }
  0x6e   : > { %s6467_s23 = scalar_select %p4991_p12, 1, 0 }
  0x6f   : > { %s6468_s3 = scalar_select %p4995_p0, 1, 0 }
  0x70   : > { %s3538_s24 = sshll.u32 %s4750_s19, 11  ;;  %s6469_s1 = sld [smem:[#allocation30_spill]] }
  0x71   : > { %s464_s25 = scalar_lea.vmem [#allocation4], %s3403_s26  ;;  %p5009_p7 = pnand %p4159_p11, %p4978_p8 }
  0x72   : > { %s471_s7 = sshll.u32 %s464_s25, 4  ;;  %s5016_s30 = scalar_lea.hbm %s6397_s2, %s3538_s24  ;;  %s5005_s7 = int_to_ptr.vmem [resolvable:$true] %s471_s7 }
  0x73   : > { %s485_s15 = scalar_lea.vmem [#allocation7], %s3403_s26  ;;  %s5020_s18 = scalar_lea.sflag [#allocation5], %s460_s27 }
  0x74   : > { %s5018_s0 = sshll.u32 %s485_s15, 4  ;;  %p4610_p2 = pneg %p5009_p7  ;;  %s5051_s0 = int_to_ptr.vmem [resolvable:$true] %s5018_s0 }
  0x76   : > { %s5003_s5 = scalar_lea.hbm %s6469_s1, %s3538_s24  ;;  %s4613_s10 = scalar_lea.hbm %s6469_s1, 4096 }
  0x77   : > { %s4608_s25 = scalar_lea.hbm %s5003_s5, 2048  ;;  %p4614_p9 = scmp.lt.s32.totalorder %s5003_s5, %s6469_s1 }
  0x78   : > { %p4609_p13 = scmp.ne.s32.totalorder %s5003_s5, %s4608_s25  ;;  %p4615_p10 = scmp.lt.s32.totalorder %s4613_s10, %s4608_s25 }
  0x7a   : > { %p4611_p5 = pnand %p4610_p2, %p4609_p13  ;;  %p4616_p11 = por %p4615_p10, %p4614_p9 }
  0x7c   : > { %p4612_p8 = pneg %p4611_p5 }
  0x7e   : > { %p4617_p4 = pnand %p4616_p11, %p4612_p8 }
  0x80   : > { %4620 = shalt.err (!%p4617_p4)
}
  0x81   : > { %s4621_s27 = scalar_lea.vmem %s5005_s7, 2048  ;;  %s4761_s28 = smov [#allocation4]  }
  0x82   : > { %p4622_p1 = scmp.ne.s32.totalorder %s5005_s7, %s4621_s27  ;;  %s4626_s26 = sshll.u32 %s4761_s28, 4  ;;  %s4627_s26 = int_to_ptr.vmem [resolvable:$false] %s4626_s26 }
  0x83   : > { %s4628_s15 = scalar_lea.vmem %s4627_s26, 4096  ;;  %p4629_p0 = scmp.lt.s32.totalorder %s5005_s7, %s4627_s26 }
  0x84   : > { %p4624_p13 = pnand %p4622_p1, %p4610_p2  ;;  %p4630_p12 = scmp.lt.s32.totalorder %s4628_s15, %s4621_s27 }
  0x86   : > { %p4625_p5 = pneg %p4624_p13  ;;  %p4631_p6 = por %p4630_p12, %p4629_p0 }
  0x88   : > { %p4632_p9 = pnand %p4631_p6, %p4625_p5 }
  0x8a   : > { %4635 = shalt.err (!%p4632_p9)
}
  0x8b   : > { %s6471_s25 = smov 4   ;;  %s6472_s29 = smov 64  }
  0x8c   : > { %4145 = dma.hbm_to_vmem [thread:$0]  (!%p5009_p7), %s5003_s5, 2048, %s5005_s7, %s5020_s18, %s6472_s29, %s6472_s29, %s6471_s25  }
  0x8d   : > { %s481_s10 = sand.u32 1, %s4750_s19   ;;  %s4636_s24 = scalar_lea.hbm %s5016_s30, 2048 }
  0x8e   : > { %s482_s12 = scalar_lea.sflag [#allocation8], %s481_s10  ;;  %p4637_p1 = scmp.ne.s32.totalorder %s5016_s30, %s4636_s24 }
  0x8f   : > { %s4641_s26 = scalar_lea.hbm %s6397_s2, 4096  ;;  %p4642_p12 = scmp.lt.s32.totalorder %s5016_s30, %s6397_s2 }
  0x90   : > { %p4639_p4 = pnand %p4637_p1, %p4610_p2  ;;  %p4643_p0 = scmp.lt.s32.totalorder %s4641_s26, %s4636_s24 }
  0x92   : > { %p4640_p6 = pneg %p4639_p4  ;;  %p4644_p8 = por %p4643_p0, %p4642_p12 }
  0x94   : > { %p4645_p10 = pnand %p4644_p8, %p4640_p6 }
  0x96   : > { %4648 = shalt.err (!%p4645_p10)
}
  0x97   : > { %s4649_s5 = scalar_lea.vmem %s5051_s0, 2048  ;;  %s4762_s7 = smov [#allocation7]  }
  0x98   : > { %p4650_p11 = scmp.ne.s32.totalorder %s5051_s0, %s4649_s5  ;;  %s4654_s18 = sshll.u32 %s4762_s7, 4  ;;  %s4655_s18 = int_to_ptr.vmem [resolvable:$false] %s4654_s18 }
  0x99   : > { %s4656_s10 = scalar_lea.vmem %s4655_s18, 4096  ;;  %p4657_p9 = scmp.lt.s32.totalorder %s5051_s0, %s4655_s18 }
  0x9a   : > { %p4652_p13 = pnand %p4650_p11, %p4610_p2  ;;  %p4658_p1 = scmp.lt.s32.totalorder %s4656_s10, %s4649_s5 }
  0x9c   : > { %p4653_p5 = pneg %p4652_p13  ;;  %p4659_p4 = por %p4658_p1, %p4657_p9 }
  0x9e   : > { %p4660_p12 = pnand %p4659_p4, %p4653_p5 }
  0xa0   : > { %4663 = shalt.err (!%p4660_p12)
}
  0xa1   : > { %4148 = dma.hbm_to_vmem [thread:$0]  (!%p5009_p7), %s5016_s30, 2048, %s5051_s0, %s482_s12, %s6472_s29, %s6472_s29, %s6471_s25  }
  0xa2   : > { %504 = sbr.rel (%p4870_p3) target bundleno = 2567 (0xa07), region = 72  ;;  %s5082_s1 = sand.u32 (!%p4870_p3), 1, %s4742_s17  }
  0xa3   : > { %s3410_s24 = sshll.u32 (!%p4870_p3), %s5082_s1, 7  ;;  %s507_s27 = scalar_lea.sflag (!%p4870_p3), [#allocation5], %s5082_s1 }
  0xa4   : > { %s5086_s28 = scalar_lea.vmem (!%p4870_p3), [#allocation4], %s3410_s24  ;;  %p6473_p2 = scmp.ne.s32.totalorder (!%p4870_p3), %s6466_s20, 0 }
  0xa7   : > { %4709 = dma.done.wait (%p6473_p2), %s507_s27, 2048  }
  0xa8   : > { %4711 = vsyncadd (%p6473_p2), %s507_s27, 4294965248  ;;  %s515_s8 = sand.u32 1, %s4865_s21   ;;  %s5093_s0 = scalar_lea.vmem [#allocation7], %s3410_s24 }
  0xa9   : > { %s516_s22 = scalar_lea.sflag [#allocation8], %s515_s8 }
  0xaa   : > { %4713 = dma.done.wait (%p6473_p2), %s516_s22, 2048  }
  0xab   : > { %4715 = vsyncadd (%p6473_p2), %s516_s22, 4294965248  ;;  %p6474_p3 = scmp.eq.s32.totalorder %s4865_s21, 0 }
  0xad   : > { %4717 = dma.done.wait (%p6474_p3), [#allocation8], 1024   ;;  %p6475_p7 = pmov %p6474_p3 }
  0xae   : > { %p6476_p6 = pmov %p6474_p3 }
  0xaf   : > { %4719 = vsyncadd (%p6475_p7), [#allocation8], 4294966272 }
  0xb0   : > { %4721 = dma.done.wait (%p6476_p6), [#allocation11], 4096   ;;  %p6477_p0 = pmov %p6474_p3 }
  0xb2   : > { %4723 = vsyncadd (%p6477_p0), [#allocation11], 4294963200  ;;  %p6478_p8 = pmov %p6477_p0 }
  0xb3   : > { %p6479_p10 = pmov %p6477_p0 }
  0xb4   : > { %4725 = dma.done.wait (%p6478_p8), [#allocation14], 2048  }
  0xb5   : > { %4727 = vsyncadd (%p6479_p10), [#allocation14], 4294965248  ;;  %p6480_p11 = pmov %p6477_p0 }
  0xb6   : > { %p6481_p13 = pmov %p6477_p0 }
  0xb7   : > { %4729 = dma.done.wait (%p6480_p11), [#allocation17], 1024  }
  0xb8   : > { %4731 = vsyncadd (%p6481_p13), [#allocation17], 4294966272  ;;  %v4210_v0 = vld [vmem:[#allocation9 + $0x38] sm:$0xff]   ;;  %v4211_v1 = vld [vmem:[#allocation9 + $0x30] sm:$0xff]   ;;  %vm4764_vm0 = vmmov 0   ;;  %s3494_s15 = sshll.u32 %s4865_s21, 7 }
  0xb9   : > { %3721 = vmatprep.subr.bf16.mxu0 %v4210_v0  ;;  %v4212_v2 = vld [vmem:[#allocation9 + $0x28] sm:$0xff]   ;;  %v4213_v3 = vld [vmem:[#allocation9 + $0x20] sm:$0xff]   ;;  %v4214_v5 = vld [vmem:[#allocation9 + $0x18] sm:$0xff]   ;;  %s2528_s5 = sld [smem:[#allocation3 + %s3494_s15]]  ;;  %s2529_s7 = sadd.s32 1, %s3494_s15 }
  0xba   : > { %3722 = vmatpush3.bf16.msra.mxu0 %v4210_v0  ;;  %v4218_v4 = vld [vmem:[%s5086_s28] sm:$0xff]   ;;  %v4215_v6 = vld [vmem:[#allocation9 + $0x10] sm:$0xff]   ;;  %v4216_v7 = vld [vmem:[#allocation9 + $0x8] sm:$0xff]   ;;  %s2530_s18 = sld [smem:[#allocation3 + %s2529_s7]]  ;;  %s589_s20 = scalar_lea.vmem [#allocation18], %s5082_s1 }
  0xbb   : > { %3723 = vmatprep.subr.bf16.mxu0 %v4211_v1  ;;  %3737 = vmatprep.mubr.bf16.mxu0 %v4218_v4  ;;  %v4217_v8 = vld [vmem:[#allocation9] sm:$0xff]   ;;  %v4234_v9 = vld [vmem:[#allocation10 + $0x38] sm:$0xff]   ;;  %v4235_v10 = vld [vmem:[#allocation10 + $0x30] sm:$0xff]   ;;  %s3248_s30 = sshll.u32 %s589_s20, 4  ;;  %s3236_s26 = scalar_lea.sflag [#allocation6], %s5082_s1  ;;  %s6354_s30 = int_to_ptr.vmem [resolvable:$true] %s3248_s30 }
  0xbc   : > { %3769 = vmatprep.subr.bf16.mxu1 %v4234_v9  ;;  %v4219_v11 = vld [vmem:[%s5086_s28 + $0x8] sm:$0xff]   ;;  %v4220_v13 = vld [vmem:[%s5086_s28 + $0x10] sm:$0xff]   ;;  %v4237_v14 = vld [vmem:[#allocation10 + $0x20] sm:$0xff]   ;;  %s4664_s15 = scalar_lea.vmem %s6354_s30, 16  ;;  %p6508_p9 = scmp.ne.s32.totalorder %s6467_s23, 0 }
  0xbd   : > { %3770 = vmatpush3.bf16.msra.mxu1 %v4234_v9  ;;  %v4236_v12 = vld [vmem:[#allocation10 + $0x28] sm:$0xff]   ;;  %v4238_v15 = vld [vmem:[#allocation10 + $0x18] sm:$0xff]   ;;  %v4222_v17 = vld [vmem:[%s5086_s28 + $0x20] sm:$0xff]   ;;  %p4665_p5 = scmp.ne.s32.totalorder %s6354_s30, %s4664_s15 }
  0xbe   : > { %3724 = vmatpush3.bf16.msra.mxu0 %v4211_v1  ;;  %3771 = vmatprep.subr.bf16.mxu1 %v4235_v10  ;;  %v4221_v16 = vld [vmem:[%s5086_s28 + $0x18] sm:$0xff]   ;;  %v4223_v18 = vld [vmem:[%s5086_s28 + $0x28] sm:$0xff]   ;;  %v4224_v19 = vld [vmem:[%s5086_s28 + $0x30] sm:$0xff]  }
  0xbf   : > { %3725 = vmatprep.subr.bf16.mxu0 %v4212_v2  ;;  %v4225_v20 = vld [vmem:[%s5086_s28 + $0x38] sm:$0xff]   ;;  %v4226_v21 = vld [vmem:[%s5086_s28 + $0x40] sm:$0xff]   ;;  %v4227_v22 = vld [vmem:[%s5086_s28 + $0x48] sm:$0xff]   ;;  %p4666_p1 = pnand %p4665_p5, %p6508_p9 }
  0xc0   : > { %v4228_v23 = vld [vmem:[%s5086_s28 + $0x50] sm:$0xff]   ;;  %v4229_v24 = vld [vmem:[%s5086_s28 + $0x58] sm:$0xff]   ;;  %v4230_v25 = vld [vmem:[%s5086_s28 + $0x60] sm:$0xff]  }
  0xc1   : > { %3772 = vmatpush3.bf16.msra.mxu1 %v4235_v10  ;;  %v4231_v26 = vld [vmem:[%s5086_s28 + $0x68] sm:$0xff]   ;;  %v4232_v27 = vld [vmem:[%s5086_s28 + $0x70] sm:$0xff]   ;;  %v4233_v28 = vld [vmem:[%s5086_s28 + $0x78] sm:$0xff]   ;;  %p4667_p4 = pneg %p4666_p1 }
  0xc2   : > { %3726 = vmatpush3.bf16.msra.mxu0 %v4212_v2  ;;  %3773 = vmatprep.subr.bf16.mxu1 %v4236_v12  ;;  %v4239_v29 = vld [vmem:[#allocation10 + $0x10] sm:$0xff]   ;;  %v4240_v30 = vld [vmem:[#allocation10 + $0x8] sm:$0xff]   ;;  %v4241_v31 = vld [vmem:[#allocation10] sm:$0xff]  }
  0xc3   : > { %3727 = vmatprep.subr.bf16.mxu0 %v4213_v3  ;;  %v5134_v35 = vld [vmem:[%s6399_s4] ss:$0 sm:$0xff] }
  0xc5   : > { %3774 = vmatpush3.bf16.msra.mxu1 %v4236_v12 }
  0xc6   : > { %3728 = vmatpush3.bf16.msra.mxu0 %v4213_v3  ;;  %3775 = vmatprep.subr.bf16.mxu1 %v4237_v14 }
  0xc7   : > { %3729 = vmatprep.subr.bf16.mxu0 %v4214_v5 }
  0xc9   : > { %3776 = vmatpush3.bf16.msra.mxu1 %v4237_v14 }
  0xca   : > { %3730 = vmatpush3.bf16.msra.mxu0 %v4214_v5  ;;  %3777 = vmatprep.subr.bf16.mxu1 %v4238_v15 }
  0xcb   : > { %3731 = vmatprep.subr.bf16.mxu0 %v4215_v6 }
  0xcd   : > { %3778 = vmatpush3.bf16.msra.mxu1 %v4238_v15 }
  0xce   : > { %3732 = vmatpush3.bf16.msra.mxu0 %v4215_v6  ;;  %3779 = vmatprep.subr.bf16.mxu1 %v4239_v29 }
  0xcf   : > { %3733 = vmatprep.subr.bf16.mxu0 %v4216_v7 }
  0xd1   : > { %3780 = vmatpush3.bf16.msra.mxu1 %v4239_v29 }
  0xd2   : > { %3734 = vmatpush3.bf16.msra.mxu0 %v4216_v7  ;;  %3781 = vmatprep.subr.bf16.mxu1 %v4240_v30 }
  0xd3   : > { %3735 = vmatprep.subr.bf16.mxu0 %v4217_v8 }
  0xd5   : > { %3782 = vmatpush3.bf16.msra.mxu1 %v4240_v30 }
  0xd6   : > { %3736 = vmatpush3.bf16.msra.mxu0 %v4217_v8  ;;  %3783 = vmatprep.subr.bf16.mxu1 %v4241_v31 }
  0xd9   : > { %3738 = vmatmul.mubr.bf16.vlgmr.msra.gmra.mxu0 %v4219_v11  ;;  %3784 = vmatpush3.bf16.msra.mxu1 %v4241_v31 }
  0xda   : > { %3741 = vmatprep.mubr.bf16.mxu0 %v4220_v13 }
  0xe1   : > { %3742 = vmatmul.mubr.bf16.gmra.mxu0 %v4221_v16 }
  0xe2   : > { %3745 = vmatprep.mubr.bf16.mxu0 %v4222_v17 }
  0xe9   : > { %3746 = vmatmul.mubr.bf16.gmra.mxu0 %v4223_v18 }
  0xea   : > { %3749 = vmatprep.mubr.bf16.mxu0 %v4224_v19 }
  0xf1   : > { %3750 = vmatmul.mubr.bf16.gmra.mxu0 %v4225_v20 }
  0xf2   : > { %3753 = vmatprep.mubr.bf16.mxu0 %v4226_v21 }
  0xf9   : > { %3754 = vmatmul.mubr.bf16.gmra.mxu0 %v4227_v22 }
  0xfa   : > { %3757 = vmatprep.mubr.bf16.mxu0 %v4228_v23 }
 0x101   : > { %3758 = vmatmul.mubr.bf16.gmra.mxu0 %v4229_v24 }
 0x102   : > { %3761 = vmatprep.mubr.bf16.mxu0 %v4230_v25 }
 0x109   : > { %3762 = vmatmul.mubr.bf16.gmra.mxu0 %v4231_v26 }
 0x10a   : > { %3765 = vmatprep.mubr.bf16.mxu0 %v4232_v27 }
 0x111   : > { %3766 = vmatmul.mubr.bf16.gmra.mxu0 %v4233_v28 }
 0x199   : > { %v3739_v32 = vpop.f32.mrf.mxu0 }
 0x19a   : > { %v833_v40 = vadd.f32 %v3739_v32, %v5134_v35 }
 0x19b   : > { %v824_v33 = vpop.f32.mrf.mxu0 }
 0x19c   : > { %v825_v38 = vadd.f32 %v5134_v35, %v824_v33 }
 0x19d   : > { %v3740_v34 = vpop.f32.mrf.mxu0 }
 0x19e   : > { %v836_v36 = vadd.f32 %v3740_v34, %v5134_v35 }
 0x19f   : > { %v827_v37 = vpop.f32.mrf.mxu0 }
 0x1a0   : > { %v828_v39 = vadd.f32 %v5134_v35, %v827_v37  ;;  %v952_v43 = vpack.c.bf16 %v836_v36, %v833_v40 }
 0x1a1   : > { %v3743_v41 = vpop.f32.mrf.mxu0 }
 0x1a2   : > { %v951_v42 = vpack.c.bf16 %v828_v39, %v825_v38  ;;  %v849_v50 = vadd.f32 %v3743_v41, %v5134_v35 }
 0x1a3   : > { %v840_v44 = vpop.f32.mrf.mxu0 }
 0x1a4   : > { %3785 = vmatprep.mubr.bf16.mxu1 %v951_v42  ;;  %v841_v48 = vadd.f32 %v5134_v35, %v840_v44 }
 0x1a5   : > { %v3744_v45 = vpop.f32.mrf.mxu0  ;;  %3786 = vmatmul.mubr.bf16.vlgmr.msra.gmra.mxu1 %v952_v43 }
 0x1a6   : > { %v852_v46 = vadd.f32 %v3744_v45, %v5134_v35 }
 0x1a7   : > { %v843_v47 = vpop.f32.mrf.mxu0 }
 0x1a8   : > { %v844_v49 = vadd.f32 %v5134_v35, %v843_v47  ;;  %v954_v53 = vpack.c.bf16 %v852_v46, %v849_v50  ;;  %v5169_v50 = vld [vmem:[%s5093_s0] sm:$0xff]  }
 0x1a9   : > { %v3747_v51 = vpop.f32.mrf.mxu0  ;;  %3833 = vmatprep.mubr.bf16.mxu0 %v5169_v50 }
 0x1aa   : > { %v953_v52 = vpack.c.bf16 %v844_v49, %v841_v48  ;;  %v865_v60 = vadd.f32 %v3747_v51, %v5134_v35  ;;  %v4250_v51 = vld [vmem:[%s5093_s0 + $0x40] sm:$0xff]  }
 0x1ab   : > { %v856_v54 = vpop.f32.mrf.mxu0 }
 0x1ac   : > { %3789 = vmatprep.mubr.bf16.mxu1 %v953_v52  ;;  %v857_v58 = vadd.f32 %v5134_v35, %v856_v54 }
 0x1ad   : > { %v3748_v55 = vpop.f32.mrf.mxu0  ;;  %3790 = vmatmul.mubr.bf16.gmra.mxu1 %v954_v53 }
 0x1ae   : > { %v868_v56 = vadd.f32 %v3748_v55, %v5134_v35 }
 0x1af   : > { %v859_v57 = vpop.f32.mrf.mxu0 }
 0x1b0   : > { %v860_v59 = vadd.f32 %v5134_v35, %v859_v57  ;;  %v956_v63 = vpack.c.bf16 %v868_v56, %v865_v60 }
 0x1b1   : > { %v3751_v61 = vpop.f32.mrf.mxu0 }
 0x1b2   : > { %v955_v62 = vpack.c.bf16 %v860_v59, %v857_v58  ;;  %v881_v6 = vadd.f32 %v3751_v61, %v5134_v35 }
 0x1b3   : > { %v872_v0 = vpop.f32.mrf.mxu0 }
 0x1b4   : > { %3793 = vmatprep.mubr.bf16.mxu1 %v955_v62  ;;  %v873_v4 = vadd.f32 %v5134_v35, %v872_v0  ;;  %v5182_v0 = vld [vmem:[%s6401_s6] ss:$0 sm:$0xff] }
 0x1b5   : > { %v3752_v1 = vpop.f32.mrf.mxu0  ;;  %3794 = vmatmul.mubr.bf16.gmra.mxu1 %v956_v63 }
 0x1b6   : > { %v884_v2 = vadd.f32 %v3752_v1, %v5134_v35 }
 0x1b7   : > { %v875_v3 = vpop.f32.mrf.mxu0 }
 0x1b8   : > { %v876_v5 = vadd.f32 %v5134_v35, %v875_v3  ;;  %v958_v9 = vpack.c.bf16 %v884_v2, %v881_v6 }
 0x1b9   : > { %v3755_v7 = vpop.f32.mrf.mxu0 }
 0x1ba   : > { %v957_v8 = vpack.c.bf16 %v876_v5, %v873_v4  ;;  %v897_v16 = vadd.f32 %v3755_v7, %v5134_v35 }
 0x1bb   : > { %v888_v10 = vpop.f32.mrf.mxu0 }
 0x1bc   : > { %3797 = vmatprep.mubr.bf16.mxu1 %v957_v8  ;;  %v889_v14 = vadd.f32 %v5134_v35, %v888_v10 }
 0x1bd   : > { %v3756_v11 = vpop.f32.mrf.mxu0  ;;  %3798 = vmatmul.mubr.bf16.gmra.mxu1 %v958_v9 }
 0x1be   : > { %v900_v12 = vadd.f32 %v3756_v11, %v5134_v35 }
 0x1bf   : > { %v891_v13 = vpop.f32.mrf.mxu0 }
 0x1c0   : > { %v892_v15 = vadd.f32 %v5134_v35, %v891_v13  ;;  %v960_v19 = vpack.c.bf16 %v900_v12, %v897_v16 }
 0x1c1   : > { %v3759_v17 = vpop.f32.mrf.mxu0 }
 0x1c2   : > { %v959_v18 = vpack.c.bf16 %v892_v15, %v889_v14  ;;  %v913_v26 = vadd.f32 %v3759_v17, %v5134_v35 }
 0x1c3   : > { %v904_v20 = vpop.f32.mrf.mxu0 }
 0x1c4   : > { %3801 = vmatprep.mubr.bf16.mxu1 %v959_v18  ;;  %v905_v24 = vadd.f32 %v5134_v35, %v904_v20 }
 0x1c5   : > { %v3760_v21 = vpop.f32.mrf.mxu0  ;;  %3802 = vmatmul.mubr.bf16.gmra.mxu1 %v960_v19 }
 0x1c6   : > { %v916_v22 = vadd.f32 %v3760_v21, %v5134_v35 }
 0x1c7   : > { %v907_v23 = vpop.f32.mrf.mxu0 }
 0x1c8   : > { %v908_v25 = vadd.f32 %v5134_v35, %v907_v23  ;;  %v962_v29 = vpack.c.bf16 %v916_v22, %v913_v26 }
 0x1c9   : > { %v3763_v27 = vpop.f32.mrf.mxu0 }
 0x1ca   : > { %v961_v28 = vpack.c.bf16 %v908_v25, %v905_v24  ;;  %v929_v37 = vadd.f32 %v3763_v27, %v5134_v35 }
 0x1cb   : > { %v920_v30 = vpop.f32.mrf.mxu0 }
 0x1cc   : > { %3805 = vmatprep.mubr.bf16.mxu1 %v961_v28  ;;  %v921_v34 = vadd.f32 %v5134_v35, %v920_v30 }
 0x1cd   : > { %v3764_v31 = vpop.f32.mrf.mxu0  ;;  %3806 = vmatmul.mubr.bf16.gmra.mxu1 %v962_v29 }
 0x1ce   : > { %v932_v32 = vadd.f32 %v3764_v31, %v5134_v35 }
 0x1cf   : > { %v923_v33 = vpop.f32.mrf.mxu0 }
 0x1d0   : > { %v924_v36 = vadd.f32 %v5134_v35, %v923_v33  ;;  %v964_v40 = vpack.c.bf16 %v932_v32, %v929_v37 }
 0x1d1   : > { %v3767_v38 = vpop.f32.mrf.mxu0 }
 0x1d2   : > { %v963_v39 = vpack.c.bf16 %v924_v36, %v921_v34  ;;  %v945_v47 = vadd.f32 %v3767_v38, %v5134_v35 }
 0x1d3   : > { %v936_v41 = vpop.f32.mrf.mxu0 }
 0x1d4   : > { %3809 = vmatprep.mubr.bf16.mxu1 %v963_v39  ;;  %v937_v45 = vadd.f32 %v5134_v35, %v936_v41 }
 0x1d5   : > { %v3768_v42 = vpop.f32.mrf.mxu0  ;;  %3810 = vmatmul.mubr.bf16.gmra.mxu1 %v964_v40 }
 0x1d6   : > { %v948_v43 = vadd.f32 %v3768_v42, %v5134_v35 }
 0x1d7   : > { %v939_v44 = vpop.f32.mrf.mxu0 }
 0x1d8   : > { %v940_v46 = vadd.f32 %v5134_v35, %v939_v44  ;;  %v966_v49 = vpack.c.bf16 %v948_v43, %v945_v47 }
 0x1da   : > { %v965_v48 = vpack.c.bf16 %v940_v46, %v937_v45 }
 0x1dc   : > { %3813 = vmatprep.mubr.bf16.mxu1 %v965_v48 }
 0x1dd   : > { %3814 = vmatmul.mubr.bf16.gmra.mxu1 %v966_v49 }
 0x1de   : > { %3865 = vmatprep.mubr.bf16.mxu1 %v4250_v51 }
 0x265   : > { %v5173_v52 = vpop.f32.mrf.mxu1 }
 0x266   : > { %v5270_v43 = vadd.f32 %v5173_v52, %v5182_v0 }
 0x267   : > { %v5175_v53 = vpop.f32.mrf.mxu1 }
 0x268   : > { %v1201_v51 = vmax.f32 %v5270_v43, 0.0  ;;  %v5285_v52 = vadd.f32 %v5182_v0, %v5175_v53 }
 0x269   : > { %v3788_v54 = vpop.f32.mrf.mxu1 }
 0x26a   : > { %v5261_v39 = vadd.f32 %v3788_v54, %v5182_v0 }
 0x26b   : > { %v5177_v55 = vpop.f32.mrf.mxu1 }
 0x26c   : > { %v1202_v46 = vmax.f32 %v5261_v39, 0.0  ;;  %v5276_v47 = vadd.f32 %v5182_v0, %v5177_v55 }
 0x26d   : > { %v3791_v56 = vpop.f32.mrf.mxu1 }
 0x26e   : > { %v5241_v28 = vadd.f32 %v3791_v56, %v5182_v0  ;;  %v1232_v55 = vpack.c.bf16 %v1202_v46, %v1201_v51  ;;  %v1200_v56 = vmax.f32 %v5276_v47, 0.0 }
 0x26f   : > { %v1088_v57 = vpop.f32.mrf.mxu1 }
 0x270   : > { %v1205_v36 = vmax.f32 %v5241_v28, 0.0  ;;  %v5256_v37 = vadd.f32 %v5182_v0, %v1088_v57 }
 0x271   : > { %v3792_v35 = vpop.f32.mrf.mxu1 }
 0x272   : > { %v5231_v24 = vadd.f32 %v3792_v35, %v5182_v0  ;;  %v1203_v44 = vmax.f32 %v5256_v37, 0.0  ;;  %v1199_v35 = vmax.f32 %v5285_v52, 0.0 }
 0x273   : > { %v1091_v58 = vpop.f32.mrf.mxu1 }
 0x274   : > { %v1206_v31 = vmax.f32 %v5231_v24, 0.0  ;;  %v5248_v32 = vadd.f32 %v5182_v0, %v1091_v58  ;;  %v1231_v53 = vpack.c.bf16 %v1200_v56, %v1199_v35 }
 0x275   : > { %v3795_v59 = vpop.f32.mrf.mxu1 }
 0x276   : > { %v5204_v12 = vadd.f32 %v3795_v59, %v5182_v0  ;;  %v1234_v40 = vpack.c.bf16 %v1206_v31, %v1205_v36  ;;  %v1204_v41 = vmax.f32 %v5248_v32, 0.0 }
 0x277   : > { %v1104_v60 = vpop.f32.mrf.mxu1 }
 0x278   : > { %v1209_v21 = vmax.f32 %v5204_v12, 0.0  ;;  %v5226_v22 = vadd.f32 %v5182_v0, %v1104_v60  ;;  %v1233_v48 = vpack.c.bf16 %v1204_v41, %v1203_v44 }
 0x279   : > { %v3796_v61 = vpop.f32.mrf.mxu1 }
 0x27a   : > { %v5194_v7 = vadd.f32 %v3796_v61, %v5182_v0  ;;  %v1207_v29 = vmax.f32 %v5226_v22, 0.0 }
 0x27b   : > { %v1107_v62 = vpop.f32.mrf.mxu1 }
 0x27c   : > { %v1210_v17 = vmax.f32 %v5194_v7, 0.0  ;;  %v5216_v18 = vadd.f32 %v5182_v0, %v1107_v62 }
 0x27d   : > { %v3799_v63 = vpop.f32.mrf.mxu1 }
 0x27e   : > { %v5185_v2 = vadd.f32 %v3799_v63, %v5182_v0  ;;  %v1236_v25 = vpack.c.bf16 %v1210_v17, %v1209_v21  ;;  %v1208_v26 = vmax.f32 %v5216_v18, 0.0 }
 0x27f   : > { %v1120_v1 = vpop.f32.mrf.mxu1 }
 0x280   : > { %v5188_v4 = vadd.f32 %v5182_v0, %v1120_v1  ;;  %v1213_v8 = vmax.f32 %v5185_v2, 0.0  ;;  %v1235_v33 = vpack.c.bf16 %v1208_v26, %v1207_v29 }
 0x281   : > { %v3800_v3 = vpop.f32.mrf.mxu1 }
 0x282   : > { %v5191_v5 = vadd.f32 %v3800_v3, %v5182_v0  ;;  %v1211_v13 = vmax.f32 %v5188_v4, 0.0 }
 0x283   : > { %v1123_v6 = vpop.f32.mrf.mxu1 }
 0x284   : > { %v1214_v9 = vmax.f32 %v5191_v5, 0.0  ;;  %v5199_v10 = vadd.f32 %v5182_v0, %v1123_v6 }
 0x285   : > { %v5201_v11 = vpop.f32.mrf.mxu1 }
 0x286   : > { %v1238_v14 = vpack.c.bf16 %v1214_v9, %v1213_v8  ;;  %v1212_v15 = vmax.f32 %v5199_v10, 0.0 }
 0x287   : > { %v5212_v16 = vpop.f32.mrf.mxu1 }
 0x288   : > { %v1237_v19 = vpack.c.bf16 %v1212_v15, %v1211_v13  ;;  %3817 = vmatprep.subr.bf16.mxu0 %v1238_v14 }
 0x289   : > { %v5222_v20 = vpop.f32.mrf.mxu1  ;;  %3818 = vmatpush3.bf16.msra.mxu0 %v1238_v14 }
 0x28a   : > { %3819 = vmatprep.subr.bf16.mxu0 %v1237_v19 }
 0x28b   : > { %v5228_v23 = vpop.f32.mrf.mxu1 }
 0x28d   : > { %v5238_v27 = vpop.f32.mrf.mxu1  ;;  %3820 = vmatpush3.bf16.msra.mxu0 %v1237_v19  ;;  %v4243_v19 = vld [vmem:[%s5093_s0 + $0x8] sm:$0xff]  }
 0x28e   : > { %3821 = vmatprep.subr.bf16.mxu0 %v1236_v25 }
 0x28f   : > { %v5244_v30 = vpop.f32.mrf.mxu1 }
 0x291   : > { %v3808_v34 = vpop.f32.mrf.mxu1  ;;  %3822 = vmatpush3.bf16.msra.mxu0 %v1236_v25  ;;  %v4244_v25 = vld [vmem:[%s5093_s0 + $0x10] sm:$0xff]  }
 0x292   : > { %3823 = vmatprep.subr.bf16.mxu0 %v1235_v33 }
 0x293   : > { %v5258_v38 = vpop.f32.mrf.mxu1 }
 0x295   : > { %v3811_v42 = vpop.f32.mrf.mxu1  ;;  %3824 = vmatpush3.bf16.msra.mxu0 %v1235_v33 }
 0x296   : > { %3825 = vmatprep.subr.bf16.mxu0 %v1234_v40  ;;  %v5317_v33 = vadd.f32 %v3811_v42, %v5182_v0 }
 0x297   : > { %v1168_v45 = vpop.f32.mrf.mxu1 }
 0x299   : > { %v3812_v49 = vpop.f32.mrf.mxu1  ;;  %3826 = vmatpush3.bf16.msra.mxu0 %v1234_v40 }
 0x29a   : > { %3827 = vmatprep.subr.bf16.mxu0 %v1233_v48  ;;  %v5307_v1 = vadd.f32 %v3812_v49, %v5182_v0 }
 0x29b   : > { %v1171_v54 = vpop.f32.mrf.mxu1 }
 0x29d   : > { %v3815_v57 = vpop.f32.mrf.mxu1  ;;  %3828 = vmatpush3.bf16.msra.mxu0 %v1233_v48 }
 0x29e   : > { %3829 = vmatprep.subr.bf16.mxu0 %v1232_v55  ;;  %v5298_v59 = vadd.f32 %v3815_v57, %v5182_v0  ;;  %v5327_v57 = vadd.f32 %v5182_v0, %v1171_v54 }
 0x29f   : > { %v1184_v58 = vpop.f32.mrf.mxu1 }
 0x2a0   : > { %v5301_v61 = vadd.f32 %v5182_v0, %v1184_v58  ;;  %v6422_v3 = vmax.f32 %v5298_v59, 0.0  ;;  %v6426_v58 = vmax.f32 %v5317_v33, 0.0 }
 0x2a1   : > { %v3816_v60 = vpop.f32.mrf.mxu1  ;;  %3830 = vmatpush3.bf16.msra.mxu0 %v1232_v55  ;;  %v6424_v55 = vmax.f32 %v5307_v1, 0.0 }
 0x2a2   : > { %v5304_v62 = vadd.f32 %v3816_v60, %v5182_v0  ;;  %3831 = vmatprep.subr.bf16.mxu0 %v1231_v53  ;;  %v6423_v40 = vmax.f32 %v5301_v61, 0.0  ;;  %v5338_v60 = vadd.f32 %v3808_v34, %v5182_v0 }
 0x2a3   : > { %v1187_v63 = vpop.f32.mrf.mxu1  ;;  %v1244_v54 = vpack.c.bf16 %v6424_v55, %v6426_v58  ;;  %v5385_v55 = vadd.f32 %v5182_v0, %v5228_v23  ;;  %v4249_v58 = vld [vmem:[%s5093_s0 + $0x38] sm:$0xff]  }
 0x2a4   : > { %v6420_v6 = vmax.f32 %v5304_v62, 0.0  ;;  %v5312_v14 = vadd.f32 %v5182_v0, %v1187_v63  ;;  %v6425_v63 = vmax.f32 %v5327_v57, 0.0  ;;  %v6428_v34 = vmax.f32 %v5338_v60, 0.0 }
 0x2a5   : > { %3832 = vmatpush3.bf16.msra.mxu0 %v1231_v53  ;;  %v5335_v53 = vadd.f32 %v5182_v0, %v1168_v45 }
 0x2a6   : > { %v1246_v48 = vpack.c.bf16 %v6420_v6, %v6422_v3  ;;  %v6421_v49 = vmax.f32 %v5312_v14, 0.0  ;;  %v5355_v6 = vadd.f32 %v5182_v0, %v5258_v38  ;;  %v5368_v3 = vadd.f32 %v5222_v20, %v5182_v0 }
 0x2a7   : > { %v6427_v45 = vmax.f32 %v5335_v53, 0.0 }
 0x2a8   : > { %v1245_v42 = vpack.c.bf16 %v6421_v49, %v6423_v40  ;;  %3834 = vmatmul.mubr.bf16.vlgmr.msra.gmra.mxu0 %v4243_v19  ;;  %3849 = vmatprep.subr.bf16.mxu1 %v1246_v48  ;;  %v4245_v19 = vld [vmem:[%s5093_s0 + $0x18] sm:$0xff]   ;;  %v5364_v49 = vadd.f32 %v5182_v0, %v5244_v30  ;;  %v5379_v30 = vadd.f32 %v5201_v11, %v5182_v0  ;;  %v6432_v20 = vmax.f32 %v5368_v3, 0.0 }
 0x2a9   : > { %3850 = vmatpush3.bf16.msra.mxu1 %v1246_v48  ;;  %3837 = vmatprep.mubr.bf16.mxu0 %v4244_v25  ;;  %v4246_v48 = vld [vmem:[%s5093_s0 + $0x20] sm:$0xff]   ;;  %v5349_v25 = vadd.f32 %v5238_v27, %v5182_v0 }
 0x2aa   : > { %3851 = vmatprep.subr.bf16.mxu1 %v1245_v42  ;;  %v6431_v40 = vmax.f32 %v5364_v49, 0.0  ;;  %v1217_v11 = vmax.f32 %v5379_v30, 0.0  ;;  %v6483_v30 = vmax.f32 %v5368_v3, 0.0 }
 0x2ab   : > { %v6430_v27 = vmax.f32 %v5349_v25, 0.0 }
 0x2ac   : > { %v1240_v23 = vpack.c.bf16 %v6432_v20, %v1217_v11 }
 0x2ad   : > { %3852 = vmatpush3.bf16.msra.mxu1 %v1245_v42  ;;  %v1243_v42 = vpack.c.bf16 %v6425_v63, %v6427_v45  ;;  %v1242_v38 = vpack.c.bf16 %v6428_v34, %v6430_v27  ;;  %v5394_v63 = vadd.f32 %v5182_v0, %v5212_v16  ;;  %v4251_v16 = vld [vmem:[%s5093_s0 + $0x48] sm:$0xff]   ;;  %v5413_v45 = vld [vmem:[%s5093_s0 + $0x60] sm:$0xff]  }
 0x2ae   : > { %3853 = vmatprep.subr.bf16.mxu1 %v1244_v54  ;;  %v5418_v34 = vld [vmem:[%s5093_s0 + $0x68] sm:$0xff]  }
 0x2b0   : > { %3838 = vmatmul.mubr.bf16.gmra.mxu0 %v4245_v19  ;;  %v6429_v19 = vmax.f32 %v5355_v6, 0.0 }
 0x2b1   : > { %3854 = vmatpush3.bf16.msra.mxu1 %v1244_v54  ;;  %3841 = vmatprep.mubr.bf16.mxu0 %v4246_v48  ;;  %v4247_v54 = vld [vmem:[%s5093_s0 + $0x28] sm:$0xff]   ;;  %v4248_v48 = vld [vmem:[%s5093_s0 + $0x30] sm:$0xff]  }
 0x2b2   : > { %3855 = vmatprep.subr.bf16.mxu1 %v1243_v42 }
 0x2b5   : > { %3856 = vmatpush3.bf16.msra.mxu1 %v1243_v42  ;;  %v1241_v42 = vpack.c.bf16 %v6429_v19, %v6431_v40  ;;  %v5421_v19 = vld [vmem:[%s5093_s0 + $0x70] sm:$0xff]  }
 0x2b6   : > { %3857 = vmatprep.subr.bf16.mxu1 %v1242_v38 }
 0x2b8   : > { %3842 = vmatmul.mubr.bf16.gmra.mxu0 %v4247_v54  ;;  %v6433_v54 = vmax.f32 %v5385_v55, 0.0 }
 0x2b9   : > { %3858 = vmatpush3.bf16.msra.mxu1 %v1242_v38  ;;  %3845 = vmatprep.mubr.bf16.mxu0 %v4248_v48  ;;  %v1215_v38 = vmax.f32 %v5394_v63, 0.0  ;;  %v4252_v48 = vld [vmem:[%s5093_s0 + $0x50] sm:$0xff]   ;;  %v6482_v63 = vmax.f32 %v5385_v55, 0.0  ;;  %v6484_v55 = vmax.f32 %v5364_v49, 0.0 }
 0x2ba   : > { %3859 = vmatprep.subr.bf16.mxu1 %v1241_v42 }
 0x2bb   : > { %v1239_v0 = vpack.c.bf16 %v6433_v54, %v1215_v38 }
 0x2bd   : > { %3860 = vmatpush3.bf16.msra.mxu1 %v1241_v42  ;;  %v5410_v42 = vld [vmem:[%s5093_s0 + $0x58] sm:$0xff]  }
 0x2be   : > { %3861 = vmatprep.subr.bf16.mxu1 %v1240_v23 }
 0x2c0   : > { %3846 = vmatmul.mubr.bf16.gmra.mxu0 %v4249_v58  ;;  %v5426_v58 = vld [vmem:[%s5093_s0 + $0x78] sm:$0xff]  }
 0x2c1   : > { %3862 = vmatpush3.bf16.msra.mxu1 %v1240_v23  ;;  %v4258_v23 = vld [vmem:[#allocation10 + $0x78] sm:$0xff]  }
 0x2c2   : > { %3863 = vmatprep.subr.bf16.mxu1 %v1239_v0  ;;  %3881 = vmatprep.subr.bf16.mxu0 %v4258_v23 }
 0x2c3   : > { %3882 = vmatpush3.bf16.msra.mxu0 %v4258_v23 }
 0x2c5   : > { %3864 = vmatpush3.bf16.msra.mxu1 %v1239_v0  ;;  %v4259_v0 = vld [vmem:[#allocation10 + $0x70] sm:$0xff]  }
 0x2c6   : > { %3883 = vmatprep.subr.bf16.mxu0 %v4259_v0 }
 0x2c7   : > { %3884 = vmatpush3.bf16.msra.mxu0 %v4259_v0 }
 0x2c8   : > { %3866 = vmatmul.mubr.bf16.vlgmr.msra.gmra.mxu1 %v4251_v16 }
 0x2c9   : > { %3869 = vmatprep.mubr.bf16.mxu1 %v4252_v48 }
 0x2d0   : > { %3870 = vmatmul.mubr.bf16.gmra.mxu1 %v5410_v42 }
 0x2d1   : > { %3873 = vmatprep.mubr.bf16.mxu1 %v5413_v45 }
 0x2d8   : > { %3874 = vmatmul.mubr.bf16.gmra.mxu1 %v5418_v34 }
 0x2d9   : > { %3877 = vmatprep.mubr.bf16.mxu1 %v5421_v19 }
 0x2e0   : > { %3878 = vmatmul.mubr.bf16.gmra.mxu1 %v5426_v58 }
 0x2e1   : > { %3945 = vmatprep.mubr.bf16.mxu1 %v5169_v50 }
 0x368   : > { %v3835_v16 = vpop.f32.mrf.mxu0 }
 0x369   : > { %v5432_v48 = vadd.f32 %v3835_v16, %v1201_v51 }
 0x36a   : > { %v1345_v27 = vpop.f32.mrf.mxu0 }
 0x36b   : > { %v5436_v40 = vadd.f32 %v1345_v27, %v1199_v35  ;;  %v1604_v20 = vmul.f32 %v5432_v48, %v5432_v48 }
 0x36c   : > { %v3836_v50 = vpop.f32.mrf.mxu0 }
 0x36d   : > { %v5442_v54 = vadd.f32 %v3836_v50, %v1202_v46  ;;  %1638 = vadd.xlane.f32.xlu1 %v1604_v20  ;;  %v1602_v23 = vmul.f32 %v5436_v40, %v5436_v40 }
 0x36e   : > { %v1348_v43 = vpop.f32.mrf.mxu0 }
 0x36f   : > { %v5448_v51 = vadd.f32 %v1348_v43, %v1200_v56  ;;  %1634 = vadd.xlane.f32.xlu0 %v1602_v23  ;;  %v1605_v52 = vmul.f32 %v5442_v54, %v5442_v54  ;;  %v4260_v23 = vld [vmem:[#allocation10 + $0x68] sm:$0xff]   ;;  %v4261_v43 = vld [vmem:[#allocation10 + $0x60] sm:$0xff]  }
 0x370   : > { %v3839_v35 = vpop.f32.mrf.mxu0  ;;  %3885 = vmatprep.subr.bf16.mxu0 %v4260_v23 }
 0x371   : > { %1640 = vadd.xlane.f32.xlu1 %v1605_v52  ;;  %v1603_v39 = vmul.f32 %v5448_v51, %v5448_v51  ;;  %v5460_v47 = vadd.f32 %v3839_v35, %v1205_v36  ;;  %3886 = vmatpush3.bf16.msra.mxu0 %v4260_v23 }
 0x372   : > { %v1361_v46 = vpop.f32.mrf.mxu0  ;;  %3887 = vmatprep.subr.bf16.mxu0 %v4261_v43 }
 0x373   : > { %v5456_v27 = vadd.f32 %v1361_v46, %v1203_v44  ;;  %1636 = vadd.xlane.f32.xlu0 %v1603_v39  ;;  %v1608_v28 = vmul.f32 %v5460_v47, %v5460_v47  ;;  %v4262_v39 = vld [vmem:[#allocation10 + $0x58] sm:$0xff]  }
 0x374   : > { %v3840_v20 = vpop.f32.mrf.mxu0 }
 0x375   : > { %v1606_v56 = vmul.f32 %v5456_v27, %v5456_v27  ;;  %v5470_v37 = vadd.f32 %v3840_v20, %v1206_v31  ;;  %3888 = vmatpush3.bf16.msra.mxu0 %v4261_v43 }
 0x376   : > { %v1364_v0 = vpop.f32.mrf.mxu0  ;;  %3889 = vmatprep.subr.bf16.mxu0 %v4262_v39 }
 0x377   : > { %v5466_v16 = vadd.f32 %v1364_v0, %v1204_v41  ;;  %1642 = vadd.xlane.f32.xlu0 %v1606_v56  ;;  %v1609_v31 = vmul.f32 %v5470_v37, %v5470_v37  ;;  %v4263_v0 = vld [vmem:[#allocation10 + $0x50] sm:$0xff]  }
 0x378   : > { %v3843_v50 = vpop.f32.mrf.mxu0 }
 0x379   : > { %v1607_v36 = vmul.f32 %v5466_v16, %v5466_v16  ;;  %v5482_v24 = vadd.f32 %v3843_v50, %v1209_v21  ;;  %3890 = vmatpush3.bf16.msra.mxu0 %v4262_v39 }
 0x37a   : > { %v1377_v44 = vpop.f32.mrf.mxu0  ;;  %3891 = vmatprep.subr.bf16.mxu0 %v4263_v0 }
 0x37b   : > { %v5478_v32 = vadd.f32 %v1377_v44, %v1207_v29  ;;  %1646 = vadd.xlane.f32.xlu0 %v1608_v28  ;;  %1644 = vadd.xlane.f32.xlu1 %v1607_v36  ;;  %v1612_v21 = vmul.f32 %v5482_v24, %v5482_v24  ;;  %v4264_v28 = vld [vmem:[#allocation10 + $0x48] sm:$0xff]  }
 0x37c   : > { %v3844_v41 = vpop.f32.mrf.mxu0 }
 0x37d   : > { %v1610_v52 = vmul.f32 %v5478_v32, %v5478_v32  ;;  %v5494_v12 = vadd.f32 %v3844_v41, %v1210_v17  ;;  %3892 = vmatpush3.bf16.msra.mxu0 %v4263_v0  ;;  %v4265_v41 = vld [vmem:[#allocation10 + $0x40] sm:$0xff]  }
 0x37e   : > { %v1380_v35 = vpop.f32.mrf.mxu0  ;;  %3893 = vmatprep.subr.bf16.mxu0 %v4264_v28 }
 0x37f   : > { %v5490_v22 = vadd.f32 %v1380_v35, %v1208_v26  ;;  %1648 = vadd.xlane.f32.xlu1 %v1609_v31  ;;  %1650 = vadd.xlane.f32.xlu0 %v1610_v52  ;;  %v1613_v17 = vmul.f32 %v5494_v12, %v5494_v12 }
 0x380   : > { %v3847_v29 = vpop.f32.mrf.mxu0 }
 0x381   : > { %v1611_v46 = vmul.f32 %v5490_v22, %v5490_v22  ;;  %v5506_v7 = vadd.f32 %v3847_v29, %v1213_v8  ;;  %3894 = vmatpush3.bf16.msra.mxu0 %v4264_v28  ;;  %v6488_v28 = vmax.f32 %v5335_v53, 0.0 }
 0x382   : > { %v1393_v20 = vpop.f32.mrf.mxu0  ;;  %3895 = vmatprep.subr.bf16.mxu0 %v4265_v41 }
 0x383   : > { %v5502_v18 = vadd.f32 %v1393_v20, %v1211_v13  ;;  %1654 = vadd.xlane.f32.xlu0 %v1612_v21  ;;  %1652 = vadd.xlane.f32.xlu1 %v1611_v46  ;;  %v1616_v8 = vmul.f32 %v5506_v7, %v5506_v7  ;;  %v6485_v46 = vmax.f32 %v5349_v25, 0.0 }
 0x384   : > { %v3848_v26 = vpop.f32.mrf.mxu0 }
 0x385   : > { %v1614_v56 = vmul.f32 %v5502_v18, %v5502_v18  ;;  %v5518_v2 = vadd.f32 %v3848_v26, %v1214_v9  ;;  %3896 = vmatpush3.bf16.msra.mxu0 %v4265_v41 }
 0x386   : > { %v1396_v50 = vpop.f32.mrf.mxu0 }
 0x387   : > { %v5514_v4 = vadd.f32 %v1396_v50, %v1212_v15  ;;  %1656 = vadd.xlane.f32.xlu1 %v1613_v17  ;;  %1658 = vadd.xlane.f32.xlu0 %v1614_v56  ;;  %v1617_v44 = vmul.f32 %v5518_v2, %v5518_v2  ;;  %v6486_v56 = vmax.f32 %v5355_v6, 0.0  ;;  %v6487_v50 = vmax.f32 %v5338_v60, 0.0 }
 0x388   : > { %v3867_v13 = vpop.f32.mrf.mxu1 }
 0x389   : > { %v1615_v23 = vmul.f32 %v5514_v4, %v5514_v4  ;;  %v5530_v5 = vadd.f32 %v3867_v13, %v1217_v11 }
 0x38a   : > { %v1507_v36 = vpop.f32.mrf.mxu1 }
 0x38b   : > { %v5526_v10 = vadd.f32 %v1507_v36, %v1215_v38  ;;  %1662 = vadd.xlane.f32.xlu0 %v1616_v8  ;;  %1660 = vadd.xlane.f32.xlu1 %v1615_v23  ;;  %v1620_v52 = vmul.f32 %v5530_v5, %v5530_v5 }
 0x38c   : > { %v3868_v15 = vpop.f32.mrf.mxu1 }
 0x38d   : > { %v1618_v9 = vmul.f32 %v5526_v10, %v5526_v10  ;;  %v5542_v11 = vadd.f32 %v3868_v15, %v6483_v30  ;;  %v6489_v15 = vmax.f32 %v5317_v33, 0.0 }
 0x38e   : > { %v1510_v43 = vpop.f32.mrf.mxu1 }
 0x38f   : > { %v5538_v38 = vadd.f32 %v1510_v43, %v6482_v63  ;;  %1666 = vadd.xlane.f32.xlu0 %v1618_v9  ;;  %1664 = vadd.xlane.f32.xlu1 %v1617_v44  ;;  %v1621_v26 = vmul.f32 %v5542_v11, %v5542_v11  ;;  %v6490_v43 = vmax.f32 %v5327_v57, 0.0 }
 0x390   : > { %v3871_v31 = vpop.f32.mrf.mxu1 }
 0x391   : > { %v1619_v35 = vmul.f32 %v5538_v38, %v5538_v38  ;;  %v5554_v3 = vadd.f32 %v3871_v31, %v6485_v46  ;;  %v6491_v31 = vmax.f32 %v5307_v1, 0.0 }
 0x392   : > { %v1523_v29 = vpop.f32.mrf.mxu1 }
 0x393   : > { %v5550_v39 = vadd.f32 %v1523_v29, %v6484_v55  ;;  %1670 = vadd.xlane.f32.xlu0 %v1620_v52  ;;  %1668 = vadd.xlane.f32.xlu1 %v1619_v35  ;;  %v1624_v25 = vmul.f32 %v5554_v3, %v5554_v3  ;;  %v6492_v29 = vmax.f32 %v5301_v61, 0.0  ;;  %v6495_v61 = vmax.f32 %v5304_v62, 0.0 }
 0x394   : > { %v3872_v21 = vpop.f32.mrf.mxu1 }
 0x395   : > { %v1622_v20 = vmul.f32 %v5550_v39, %v5550_v39  ;;  %v5566_v13 = vadd.f32 %v3872_v21, %v6487_v50  ;;  %v6493_v21 = vmax.f32 %v5298_v59, 0.0 }
 0x396   : > { %v1526_v17 = vpop.f32.mrf.mxu1 }
 0x397   : > { %v5562_v0 = vadd.f32 %v1526_v17, %v6486_v56  ;;  %1674 = vadd.xlane.f32.xlu0 %v1622_v20  ;;  %1672 = vadd.xlane.f32.xlu1 %v1621_v26  ;;  %v1625_v44 = vmul.f32 %v5566_v13, %v5566_v13  ;;  %v6494_v17 = vmax.f32 %v5312_v14, 0.0 }
 0x398   : > { %v3875_v49 = vpop.f32.mrf.mxu1 }
 0x399   : > { %v1623_v8 = vmul.f32 %v5562_v0, %v5562_v0  ;;  %v5578_v9 = vadd.f32 %v3875_v49, %v6489_v15 }
 0x39a   : > { %v1539_v23 = vpop.f32.mrf.mxu1 }
 0x39b   : > { %v5574_v36 = vadd.f32 %v1539_v23, %v6488_v28  ;;  %1678 = vadd.xlane.f32.xlu0 %v1624_v25  ;;  %1676 = vadd.xlane.f32.xlu1 %v1623_v8  ;;  %v1628_v33 = vmul.f32 %v5578_v9, %v5578_v9 }
 0x39c   : > { %v3876_v6 = vpop.f32.mrf.mxu1 }
 0x39d   : > { %v1626_v60 = vmul.f32 %v5574_v36, %v5574_v36  ;;  %v5590_v30 = vadd.f32 %v3876_v6, %v6491_v31 }
 0x39e   : > { %v1542_v41 = vpop.f32.mrf.mxu1 }
 0x39f   : > { %v5586_v63 = vadd.f32 %v1542_v41, %v6490_v43  ;;  %1682 = vadd.xlane.f32.xlu0 %v1626_v60  ;;  %1680 = vadd.xlane.f32.xlu1 %v1625_v44  ;;  %v1629_v20 = vmul.f32 %v5590_v30, %v5590_v30 }
 0x3a0   : > { %v3879_v53 = vpop.f32.mrf.mxu1 }
 0x3a1   : > { %v1627_v52 = vmul.f32 %v5586_v63, %v5586_v63  ;;  %v5602_v46 = vadd.f32 %v3879_v53, %v6493_v21 }
 0x3a2   : > { %v1555_v35 = vpop.f32.mrf.mxu1 }
 0x3a3   : > { %v5598_v55 = vadd.f32 %v1555_v35, %v6492_v29  ;;  %1686 = vadd.xlane.f32.xlu0 %v1628_v33  ;;  %1684 = vadd.xlane.f32.xlu1 %v1627_v52  ;;  %v1632_v59 = vmul.f32 %v5602_v46, %v5602_v46 }
 0x3a4   : > { %v3880_v57 = vpop.f32.mrf.mxu1 }
 0x3a5   : > { %v1630_v1 = vmul.f32 %v5598_v55, %v5598_v55  ;;  %v5614_v49 = vadd.f32 %v3880_v57, %v6495_v61 }
 0x3a6   : > { %v1558_v26 = vpop.f32.mrf.mxu1 }
 0x3a7   : > { %v5610_v56 = vadd.f32 %v1558_v26, %v6494_v17  ;;  %1690 = vadd.xlane.f32.xlu0 %v1630_v1  ;;  %1688 = vadd.xlane.f32.xlu1 %v1629_v20  ;;  %v1633_v25 = vmul.f32 %v5614_v49, %v5614_v49 }
 0x3a9   : > { %v1631_v50 = vmul.f32 %v5610_v56, %v5610_v56 }
 0x3ab   : > { %1694 = vadd.xlane.f32.xlu0 %v1632_v59  ;;  %1692 = vadd.xlane.f32.xlu1 %v1631_v50 }
 0x3af   : > { %1696 = vadd.xlane.f32.xlu1 %v1633_v25 }
 0x3f6   : > { %v1639_v14 = vpop.xlane.xlu1 %1638 }
 0x3f7   : > { %v1700_v28 = vmax.f32 %v1639_v14, 1e-24 }
 0x3f8   : > { %v1635_v8 = vpop.xlane.xlu0 %1634 }
 0x3f9   : > { %v1698_v23 = vmax.f32 %v1635_v8, 1e-24 }
 0x3fa   : > { %v1641_v6 = vpop.xlane.xlu1 %1640 }
 0x3fb   : > { %v1701_v62 = vmax.f32 %v1641_v6, 1e-24  ;;  %4306 = vrsqrt.f32 %v1698_v23 }
 0x3fc   : > { %v1637_v15 = vpop.xlane.xlu0 %1636 }
 0x3fd   : > { %4308 = vrsqrt.f32 %v1701_v62  ;;  %v1699_v60 = vmax.f32 %v1637_v15, 1e-24 }
 0x3fe   : > { %4310 = vrsqrt.f32 %v1700_v28 }
 0x3ff   : > { %4312 = vrsqrt.f32 %v1699_v60 }
 0x400   : > { %v1643_v44 = vpop.xlane.xlu0 %1642 }
 0x401   : > { %v1702_v41 = vmax.f32 %v1643_v44, 1e-24 }
 0x403   : > { %4314 = vrsqrt.f32 %v1702_v41 }
 0x404   : > { %v1647_v43 = vpop.xlane.xlu0 %1646  ;;  %v1645_v53 = vpop.xlane.xlu1 %1644 }
 0x405   : > { %v1704_v31 = vmax.f32 %v1647_v43, 1e-24  ;;  %v1703_v33 = vmax.f32 %v1645_v53, 1e-24 }
 0x407   : > { %4316 = vrsqrt.f32 %v1703_v33 }
 0x408   : > { %v1649_v52 = vpop.xlane.xlu1 %1648  ;;  %v1651_v35 = vpop.xlane.xlu0 %1650  ;;  %4318 = vrsqrt.f32 %v1704_v31 }
 0x409   : > { %v4307_v29 = vpop.eup %4306  ;;  %v1705_v57 = vmax.f32 %v1649_v52, 1e-24  ;;  %v1706_v1 = vmax.f32 %v1651_v35, 1e-24 }
 0x40a   : > { %v4309_v21 = vpop.eup %4308  ;;  %v1762_v14 = vmul.f32 %v4307_v29, %v5436_v40 }
 0x40b   : > { %v4311_v20 = vpop.eup %4310  ;;  %4320 = vrsqrt.f32 %v1705_v57  ;;  %v1765_v59 = vmul.f32 %v4309_v21, %v5442_v54 }
 0x40c   : > { %v4313_v26 = vpop.eup %4312  ;;  %v1655_v17 = vpop.xlane.xlu0 %1654  ;;  %4322 = vrsqrt.f32 %v1706_v1  ;;  %v1764_v23 = vmul.f32 %v4311_v20, %v5432_v48 }
 0x40d   : > { %v1653_v61 = vpop.xlane.xlu1 %1652  ;;  %v1708_v50 = vmax.f32 %v1655_v17, 1e-24  ;;  %v1763_v8 = vmul.f32 %v4313_v26, %v5448_v51 }
 0x40e   : > { %v1707_v25 = vmax.f32 %v1653_v61, 1e-24  ;;  %v1795_v15 = vpack.c.bf16 %v1765_v59, %v1764_v23 }
 0x40f   : > { %v1794_v28 = vpack.c.bf16 %v1763_v8, %v1762_v14 }
 0x410   : > { %4324 = vrsqrt.f32 %v1707_v25  ;;  %v1659_v62 = vpop.xlane.xlu0 %1658  ;;  %v4315_v54 = vpop.eup %4314 }
 0x411   : > { %v1657_v6 = vpop.xlane.xlu1 %1656  ;;  %4326 = vrsqrt.f32 %v1708_v50  ;;  %3897 = vmatprep.mubr.bf16.mxu0 %v1794_v28  ;;  %v1710_v44 = vmax.f32 %v1659_v62, 1e-24  ;;  %v1766_v48 = vmul.f32 %v4315_v54, %v5456_v27 }
 0x412   : > { %v1709_v60 = vmax.f32 %v1657_v6, 1e-24  ;;  %3898 = vmatmul.mubr.bf16.vlgmr.msra.gmra.mxu0 %v1795_v15 }
 0x414   : > { %4328 = vrsqrt.f32 %v1709_v60  ;;  %v1663_v41 = vpop.xlane.xlu0 %1662  ;;  %v4317_v40 = vpop.eup %4316 }
 0x415   : > { %v1661_v43 = vpop.xlane.xlu1 %1660  ;;  %v4319_v51 = vpop.eup %4318  ;;  %4330 = vrsqrt.f32 %v1710_v44  ;;  %v1712_v31 = vmax.f32 %v1663_v41, 1e-24  ;;  %v1767_v33 = vmul.f32 %v4317_v40, %v5466_v16 }
 0x416   : > { %v1711_v53 = vmax.f32 %v1661_v43, 1e-24  ;;  %v1768_v1 = vmul.f32 %v4319_v51, %v5460_v47 }
 0x417   : > { %v1796_v57 = vpack.c.bf16 %v1767_v33, %v1766_v48 }
 0x418   : > { %v4321_v52 = vpop.eup %4320  ;;  %4332 = vrsqrt.f32 %v1711_v53  ;;  %v1667_v35 = vpop.xlane.xlu0 %1666 }
 0x419   : > { %v1665_v29 = vpop.xlane.xlu1 %1664  ;;  %v1769_v20 = vmul.f32 %v4321_v52, %v5470_v37  ;;  %4334 = vrsqrt.f32 %v1712_v31  ;;  %v1714_v26 = vmax.f32 %v1667_v35, 1e-24  ;;  %3901 = vmatprep.mubr.bf16.mxu0 %v1796_v57  ;;  %v4323_v17 = vpop.eup %4322 }
 0x41a   : > { %v1713_v21 = vmax.f32 %v1665_v29, 1e-24  ;;  %v1770_v8 = vmul.f32 %v4323_v17, %v5478_v32 }
 0x41b   : > { %v1797_v61 = vpack.c.bf16 %v1769_v20, %v1768_v1 }
 0x41c   : > { %4336 = vrsqrt.f32 %v1713_v21  ;;  %v1671_v59 = vpop.xlane.xlu0 %1670 }
 0x41d   : > { %v1669_v27 = vpop.xlane.xlu1 %1668  ;;  %v4325_v50 = vpop.eup %4324  ;;  %3902 = vmatmul.mubr.bf16.gmra.mxu0 %v1797_v61  ;;  %4338 = vrsqrt.f32 %v1714_v26  ;;  %v1716_v14 = vmax.f32 %v1671_v59, 1e-24 }
 0x41e   : > { %v1715_v16 = vmax.f32 %v1669_v27, 1e-24  ;;  %v4327_v25 = vpop.eup %4326  ;;  %v1771_v47 = vmul.f32 %v4325_v50, %v5490_v22 }
 0x41f   : > { %v1772_v15 = vmul.f32 %v4327_v25, %v5482_v24 }
 0x420   : > { %4340 = vrsqrt.f32 %v1715_v16  ;;  %v1675_v37 = vpop.xlane.xlu0 %1674  ;;  %v1798_v6 = vpack.c.bf16 %v1771_v47, %v1770_v8 }
 0x421   : > { %v4329_v23 = vpop.eup %4328  ;;  %v1673_v28 = vpop.xlane.xlu1 %1672  ;;  %4342 = vrsqrt.f32 %v1716_v14  ;;  %v1718_v44 = vmax.f32 %v1675_v37, 1e-24 }
 0x422   : > { %v1717_v62 = vmax.f32 %v1673_v28, 1e-24  ;;  %v1773_v60 = vmul.f32 %v4329_v23, %v5494_v12  ;;  %3905 = vmatprep.mubr.bf16.mxu0 %v1798_v6  ;;  %v4331_v54 = vpop.eup %4330 }
 0x423   : > { %v1774_v51 = vmul.f32 %v4331_v54, %v5502_v18 }
 0x424   : > { %v1799_v41 = vpack.c.bf16 %v1773_v60, %v1772_v15  ;;  %4344 = vrsqrt.f32 %v1717_v62  ;;  %v1679_v43 = vpop.xlane.xlu0 %1678 }
 0x425   : > { %v1677_v32 = vpop.xlane.xlu1 %1676  ;;  %v4333_v40 = vpop.eup %4332  ;;  %4346 = vrsqrt.f32 %v1718_v44  ;;  %v1720_v53 = vmax.f32 %v1679_v43, 1e-24 }
 0x426   : > { %v1719_v22 = vmax.f32 %v1677_v32, 1e-24  ;;  %3906 = vmatmul.mubr.bf16.gmra.mxu0 %v1799_v41  ;;  %v1775_v31 = vmul.f32 %v4333_v40, %v5514_v4  ;;  %v4335_v24 = vpop.eup %4334 }
 0x427   : > { %v1776_v57 = vmul.f32 %v4335_v24, %v5506_v7 }
 0x428   : > { %4348 = vrsqrt.f32 %v1719_v22  ;;  %v1683_v12 = vpop.xlane.xlu0 %1682  ;;  %v1800_v33 = vpack.c.bf16 %v1775_v31, %v1774_v51 }
 0x429   : > { %v1681_v48 = vpop.xlane.xlu1 %1680  ;;  %v4337_v52 = vpop.eup %4336  ;;  %4350 = vrsqrt.f32 %v1720_v53  ;;  %v1722_v29 = vmax.f32 %v1683_v12, 1e-24 }
 0x42a   : > { %v1721_v35 = vmax.f32 %v1681_v48, 1e-24  ;;  %3909 = vmatprep.mubr.bf16.mxu0 %v1800_v33  ;;  %v1777_v21 = vmul.f32 %v4337_v52, %v5518_v2  ;;  %v4339_v1 = vpop.eup %4338 }
 0x42b   : > { %v1778_v59 = vmul.f32 %v4339_v1, %v5526_v10 }
 0x42c   : > { %4352 = vrsqrt.f32 %v1721_v35  ;;  %v1687_v20 = vpop.xlane.xlu0 %1686  ;;  %v1801_v26 = vpack.c.bf16 %v1777_v21, %v1776_v57 }
 0x42d   : > { %v1685_v18 = vpop.xlane.xlu1 %1684  ;;  %v4341_v4 = vpop.eup %4340  ;;  %4354 = vrsqrt.f32 %v1722_v29  ;;  %v1724_v61 = vmax.f32 %v1687_v20, 1e-24 }
 0x42e   : > { %v1723_v17 = vmax.f32 %v1685_v18, 1e-24  ;;  %3910 = vmatmul.mubr.bf16.gmra.mxu0 %v1801_v26  ;;  %v1779_v27 = vmul.f32 %v4341_v4, %v5538_v38  ;;  %v4343_v50 = vpop.eup %4342 }
 0x42f   : > { %v1780_v47 = vmul.f32 %v4343_v50, %v5530_v5 }
 0x430   : > { %4356 = vrsqrt.f32 %v1723_v17  ;;  %v1691_v16 = vpop.xlane.xlu0 %1690  ;;  %v1802_v25 = vpack.c.bf16 %v1779_v27, %v1778_v59 }
 0x431   : > { %v1689_v7 = vpop.xlane.xlu1 %1688  ;;  %v4345_v2 = vpop.eup %4344  ;;  %4358 = vrsqrt.f32 %v1724_v61  ;;  %v1726_v8 = vmax.f32 %v1691_v16, 1e-24 }
 0x432   : > { %v1725_v14 = vmax.f32 %v1689_v7, 1e-24  ;;  %3913 = vmatprep.mubr.bf16.mxu0 %v1802_v25  ;;  %v1781_v23 = vmul.f32 %v4345_v2, %v5542_v11  ;;  %v4347_v37 = vpop.eup %4346 }
 0x433   : > { %v1782_v60 = vmul.f32 %v4347_v37, %v5550_v39 }
 0x434   : > { %4360 = vrsqrt.f32 %v1725_v14  ;;  %v1695_v28 = vpop.xlane.xlu0 %1694  ;;  %v1803_v6 = vpack.c.bf16 %v1781_v23, %v1780_v47 }
 0x435   : > { %v1693_v10 = vpop.xlane.xlu1 %1692  ;;  %v4349_v38 = vpop.eup %4348  ;;  %v1728_v62 = vmax.f32 %v1695_v28, 1e-24  ;;  %4362 = vrsqrt.f32 %v1726_v8 }
 0x436   : > { %v1727_v15 = vmax.f32 %v1693_v10, 1e-24  ;;  %3914 = vmatmul.mubr.bf16.gmra.mxu0 %v1803_v6  ;;  %v1783_v44 = vmul.f32 %v4349_v38, %v5562_v0  ;;  %v4351_v54 = vpop.eup %4350 }
 0x437   : > { %v1784_v32 = vmul.f32 %v4351_v54, %v5554_v3 }
 0x438   : > { %4364 = vrsqrt.f32 %v1727_v15  ;;  %v1804_v5 = vpack.c.bf16 %v1783_v44, %v1782_v60 }
 0x439   : > { %v1697_v41 = vpop.xlane.xlu1 %1696  ;;  %v4353_v43 = vpop.eup %4352  ;;  %4366 = vrsqrt.f32 %v1728_v62 }
 0x43a   : > { %v1729_v11 = vmax.f32 %v1697_v41, 1e-24  ;;  %3917 = vmatprep.mubr.bf16.mxu0 %v1804_v5  ;;  %v1785_v40 = vmul.f32 %v4353_v43, %v5566_v13  ;;  %v4355_v22 = vpop.eup %4354 }
 0x43b   : > { %v1786_v39 = vmul.f32 %v4355_v22, %v5574_v36 }
 0x43c   : > { %4368 = vrsqrt.f32 %v1729_v11  ;;  %v1805_v53 = vpack.c.bf16 %v1785_v40, %v1784_v32 }
 0x43d   : > { %v4357_v51 = vpop.eup %4356 }
 0x43e   : > { %3918 = vmatmul.mubr.bf16.gmra.mxu0 %v1805_v53  ;;  %v1787_v0 = vmul.f32 %v4357_v51, %v5586_v63  ;;  %v4359_v31 = vpop.eup %4358 }
 0x43f   : > { %v1788_v48 = vmul.f32 %v4359_v31, %v5578_v9 }
 0x440   : > { %v1806_v24 = vpack.c.bf16 %v1787_v0, %v1786_v39 }
 0x441   : > { %v4361_v12 = vpop.eup %4360 }
 0x442   : > { %3921 = vmatprep.mubr.bf16.mxu0 %v1806_v24  ;;  %v1789_v33 = vmul.f32 %v4361_v12, %v5590_v30  ;;  %v4363_v3 = vpop.eup %4362 }
 0x443   : > { %v1790_v29 = vmul.f32 %v4363_v3, %v5598_v55 }
 0x444   : > { %v1807_v52 = vpack.c.bf16 %v1789_v33, %v1788_v48 }
 0x445   : > { %v4365_v13 = vpop.eup %4364 }
 0x446   : > { %v4367_v35 = vpop.eup %4366  ;;  %3922 = vmatmul.mubr.bf16.gmra.mxu0 %v1807_v52  ;;  %v1791_v57 = vmul.f32 %v4365_v13, %v5610_v56 }
 0x447   : > { %v1792_v63 = vmul.f32 %v4367_v35, %v5602_v46 }
 0x448   : > { %v1808_v21 = vpack.c.bf16 %v1791_v57, %v1790_v29 }
 0x449   : > { %v4369_v36 = vpop.eup %4368 }
 0x44a   : > { %v1793_v1 = vmul.f32 %v4369_v36, %v5614_v49  ;;  %3925 = vmatprep.mubr.bf16.mxu0 %v1808_v21  ;;  %v5663_v49 = vld [vmem:[%s6401_s6 + $0x1] ss:$0 sm:$0xff] }
 0x44c   : > { %v1809_v20 = vpack.c.bf16 %v1793_v1, %v1792_v63 }
 0x44e   : > { %3926 = vmatmul.mubr.bf16.gmra.mxu0 %v1809_v20 }
 0x4d2   : > { %v5654_v9 = vpop.f32.mrf.mxu0 }
 0x4d3   : > { %v5751_v21 = vadd.f32 %v5654_v9, %v5663_v49 }
 0x4d4   : > { %v5656_v30 = vpop.f32.mrf.mxu0 }
 0x4d5   : > { %v2046_v9 = vmax.f32 %v5751_v21, 0.0 }
 0x4d6   : > { %v3900_v18 = vpop.f32.mrf.mxu0 }
 0x4d7   : > { %v5742_v35 = vadd.f32 %v3900_v18, %v5663_v49 }
 0x4d8   : > { %v5658_v26 = vpop.f32.mrf.mxu0 }
 0x4d9   : > { %v2047_v20 = vmax.f32 %v5742_v35, 0.0  ;;  %v5757_v18 = vadd.f32 %v5663_v49, %v5658_v26 }
 0x4db   : > { %v2077_v26 = vpack.c.bf16 %v2047_v20, %v2046_v9 }
 0x4dd   : > { %v3903_v4 = vpop.f32.mrf.mxu0 }
 0x4de   : > { %v5722_v39 = vadd.f32 %v3903_v4, %v5663_v49 }
 0x4df   : > { %v1933_v55 = vpop.f32.mrf.mxu0 }
 0x4e0   : > { %v2050_v3 = vmax.f32 %v5722_v39, 0.0  ;;  %v5737_v52 = vadd.f32 %v5663_v49, %v1933_v55 }
 0x4e1   : > { %v3904_v17 = vpop.f32.mrf.mxu0 }
 0x4e2   : > { %v5712_v40 = vadd.f32 %v3904_v17, %v5663_v49  ;;  %v2048_v63 = vmax.f32 %v5737_v52, 0.0  ;;  %v5766_v17 = vadd.f32 %v5663_v49, %v5656_v30 }
 0x4e3   : > { %v1936_v56 = vpop.f32.mrf.mxu0 }
 0x4e4   : > { %v2051_v24 = vmax.f32 %v5712_v40, 0.0  ;;  %v5729_v12 = vadd.f32 %v5663_v49, %v1936_v56 }
 0x4e6   : > { %v3907_v61 = vpop.f32.mrf.mxu0  ;;  %v2079_v29 = vpack.c.bf16 %v2051_v24, %v2050_v3  ;;  %v2049_v57 = vmax.f32 %v5729_v12, 0.0 }
 0x4e7   : > { %v5685_v6 = vadd.f32 %v3907_v61, %v5663_v49  ;;  %v2045_v61 = vmax.f32 %v5757_v18, 0.0 }
 0x4e8   : > { %v1949_v59 = vpop.f32.mrf.mxu0  ;;  %v2078_v4 = vpack.c.bf16 %v2049_v57, %v2048_v63 }
 0x4e9   : > { %v2054_v43 = vmax.f32 %v5685_v6, 0.0  ;;  %v5707_v11 = vadd.f32 %v5663_v49, %v1949_v59 }
 0x4ea   : > { %v3908_v27 = vpop.f32.mrf.mxu0 }
 0x4eb   : > { %v5675_v47 = vadd.f32 %v3908_v27, %v5663_v49  ;;  %v2052_v0 = vmax.f32 %v5707_v11, 0.0  ;;  %v2044_v27 = vmax.f32 %v5766_v17, 0.0 }
 0x4ec   : > { %v1952_v46 = vpop.f32.mrf.mxu0 }
 0x4ed   : > { %v2055_v44 = vmax.f32 %v5675_v47, 0.0  ;;  %v5697_v54 = vadd.f32 %v5663_v49, %v1952_v46  ;;  %v2076_v30 = vpack.c.bf16 %v2045_v61, %v2044_v27 }
 0x4ee   : > { %v3911_v50 = vpop.f32.mrf.mxu0 }
 0x4ef   : > { %v5666_v7 = vadd.f32 %v3911_v50, %v5663_v49  ;;  %v2081_v22 = vpack.c.bf16 %v2055_v44, %v2054_v43  ;;  %v2053_v53 = vmax.f32 %v5697_v54, 0.0 }
 0x4f0   : > { %v1965_v16 = vpop.f32.mrf.mxu0 }
 0x4f1   : > { %v5669_v2 = vadd.f32 %v5663_v49, %v1965_v16  ;;  %v6443_v23 = vmax.f32 %v5666_v7, 0.0  ;;  %v2080_v48 = vpack.c.bf16 %v2053_v53, %v2052_v0 }
 0x4f2   : > { %v3912_v25 = vpop.f32.mrf.mxu0 }
 0x4f3   : > { %v5672_v14 = vadd.f32 %v3912_v25, %v5663_v49  ;;  %v2056_v38 = vmax.f32 %v5669_v2, 0.0 }
 0x4f4   : > { %v1968_v8 = vpop.f32.mrf.mxu0 }
 0x4f5   : > { %v6439_v37 = vmax.f32 %v5672_v14, 0.0  ;;  %v5680_v28 = vadd.f32 %v5663_v49, %v1968_v8 }
 0x4f6   : > { %v5682_v10 = vpop.f32.mrf.mxu0 }
 0x4f7   : > { %v2083_v62 = vpack.c.bf16 %v6439_v37, %v6443_v23  ;;  %v6445_v15 = vmax.f32 %v5680_v28, 0.0 }
 0x4f8   : > { %v5693_v60 = vpop.f32.mrf.mxu0 }
 0x4f9   : > { %v2082_v41 = vpack.c.bf16 %v6445_v15, %v2056_v38  ;;  %3929 = vmatprep.subr.bf16.mxu1 %v2083_v62  ;;  %v5875_v23 = vadd.f32 %v5663_v49, %v5693_v60  ;;  %v4441_v60 = vld [vmem:[%s5093_s0 + $0x40] sm:$0xff]   ;;  %v4443_v15 = vld [vmem:[%s5093_s0 + $0x50] sm:$0xff]  }
 0x4fa   : > { %v5703_v5 = vpop.f32.mrf.mxu0  ;;  %3930 = vmatpush3.bf16.msra.mxu1 %v2083_v62 }
 0x4fb   : > { %3931 = vmatprep.subr.bf16.mxu1 %v2082_v41 }
 0x4fc   : > { %v5709_v32 = vpop.f32.mrf.mxu0 }
 0x4fe   : > { %v5719_v51 = vpop.f32.mrf.mxu0  ;;  %3932 = vmatpush3.bf16.msra.mxu1 %v2082_v41 }
 0x4ff   : > { %3933 = vmatprep.subr.bf16.mxu1 %v2081_v22 }
 0x500   : > { %v5725_v31 = vpop.f32.mrf.mxu0 }
 0x501   : > { %v5845_v37 = vadd.f32 %v5663_v49, %v5725_v31 }
 0x502   : > { %v3920_v33 = vpop.f32.mrf.mxu0  ;;  %3934 = vmatpush3.bf16.msra.mxu1 %v2081_v22 }
 0x503   : > { %3935 = vmatprep.subr.bf16.mxu1 %v2080_v48  ;;  %v2064_v31 = vmax.f32 %v5845_v37, 0.0 }
 0x504   : > { %v5739_v13 = vpop.f32.mrf.mxu0 }
 0x506   : > { %v3923_v36 = vpop.f32.mrf.mxu0  ;;  %3936 = vmatpush3.bf16.msra.mxu1 %v2080_v48 }
 0x507   : > { %3937 = vmatprep.subr.bf16.mxu1 %v2079_v29 }
 0x508   : > { %v2013_v1 = vpop.f32.mrf.mxu0 }
 0x50a   : > { %v3924_v55 = vpop.f32.mrf.mxu0  ;;  %3938 = vmatpush3.bf16.msra.mxu1 %v2079_v29 }
 0x50b   : > { %3939 = vmatprep.subr.bf16.mxu1 %v2078_v4  ;;  %v5788_v41 = vadd.f32 %v3924_v55, %v5663_v49 }
 0x50c   : > { %v2016_v56 = vpop.f32.mrf.mxu0 }
 0x50e   : > { %v3927_v59 = vpop.f32.mrf.mxu0  ;;  %3940 = vmatpush3.bf16.msra.mxu1 %v2078_v4  ;;  %v5796_v4 = vadd.f32 %v3923_v36, %v5663_v49 }
 0x50f   : > { %3941 = vmatprep.subr.bf16.mxu1 %v2077_v26  ;;  %v5779_v50 = vadd.f32 %v3927_v59, %v5663_v49 }
 0x510   : > { %v2029_v46 = vpop.f32.mrf.mxu0 }
 0x511   : > { %v5782_v25 = vadd.f32 %v5663_v49, %v2029_v46  ;;  %v6435_v22 = vmax.f32 %v5779_v50, 0.0  ;;  %v6438_v46 = vmax.f32 %v5788_v41, 0.0 }
 0x512   : > { %v3928_v16 = vpop.f32.mrf.mxu0  ;;  %3942 = vmatpush3.bf16.msra.mxu1 %v2077_v26 }
 0x513   : > { %v5785_v8 = vadd.f32 %v3928_v16, %v5663_v49  ;;  %3943 = vmatprep.subr.bf16.mxu1 %v2076_v30  ;;  %v6437_v26 = vmax.f32 %v5782_v25, 0.0  ;;  %v5806_v16 = vadd.f32 %v5663_v49, %v2016_v56  ;;  %v5819_v56 = vadd.f32 %v3920_v33, %v5663_v49 }
 0x514   : > { %v2032_v62 = vpop.f32.mrf.mxu0  ;;  %v5834_v33 = vadd.f32 %v5663_v49, %v5739_v13  ;;  %v5849_v13 = vadd.f32 %v5703_v5, %v5663_v49  ;;  %v5864_v5 = vadd.f32 %v5663_v49, %v5709_v32 }
 0x515   : > { %v6434_v48 = vmax.f32 %v5785_v8, 0.0  ;;  %v5793_v29 = vadd.f32 %v5663_v49, %v2032_v62  ;;  %v4435_v62 = vld [vmem:[%s5093_s0 + $0x10] sm:$0xff]  }
 0x516   : > { %3944 = vmatpush3.bf16.msra.mxu1 %v2076_v30  ;;  %v4434_v30 = vld [vmem:[%s5093_s0 + $0x8] sm:$0xff]  }
 0x517   : > { %v2091_v55 = vpack.c.bf16 %v6434_v48, %v6435_v22  ;;  %v6436_v59 = vmax.f32 %v5793_v29, 0.0  ;;  %v6442_v48 = vmax.f32 %v5796_v4, 0.0  ;;  %v5816_v22 = vadd.f32 %v5663_v49, %v2013_v1 }
 0x518   : > { %v2067_v1 = vmax.f32 %v5819_v56, 0.0 }
 0x519   : > { %v2090_v36 = vpack.c.bf16 %v6436_v59, %v6437_v26  ;;  %3946 = vmatmul.mubr.bf16.vlgmr.msra.gmra.mxu1 %v4434_v30  ;;  %3961 = vmatprep.subr.bf16.mxu1 %v2091_v55  ;;  %v2089_v30 = vpack.c.bf16 %v6438_v46, %v6442_v48  ;;  %v6441_v59 = vmax.f32 %v5816_v22, 0.0  ;;  %v4436_v46 = vld [vmem:[%s5093_s0 + $0x18] sm:$0xff]  }
 0x51a   : > { %3962 = vmatpush3.bf16.msra.mxu1 %v2091_v55  ;;  %3949 = vmatprep.mubr.bf16.mxu1 %v4435_v62  ;;  %v6440_v55 = vmax.f32 %v5806_v16, 0.0  ;;  %v5828_v62 = vadd.f32 %v5719_v51, %v5663_v49  ;;  %v4437_v51 = vld [vmem:[%s5093_s0 + $0x20] sm:$0xff]  }
 0x51b   : > { %3963 = vmatprep.subr.bf16.mxu1 %v2090_v36 }
 0x51c   : > { %v2088_v26 = vpack.c.bf16 %v6440_v55, %v6441_v59  ;;  %v2063_v55 = vmax.f32 %v5849_v13, 0.0 }
 0x51e   : > { %3964 = vmatpush3.bf16.msra.mxu1 %v2090_v36  ;;  %v2066_v36 = vmax.f32 %v5828_v62, 0.0 }
 0x51f   : > { %3965 = vmatprep.subr.bf16.mxu1 %v2089_v30 }
 0x521   : > { %3950 = vmatmul.mubr.bf16.gmra.mxu1 %v4436_v46  ;;  %v2087_v46 = vpack.c.bf16 %v2067_v1, %v2066_v36 }
 0x522   : > { %3966 = vmatpush3.bf16.msra.mxu1 %v2089_v30  ;;  %3953 = vmatprep.mubr.bf16.mxu1 %v4437_v51  ;;  %v6444_v30 = vmax.f32 %v5834_v33, 0.0  ;;  %v5858_v51 = vadd.f32 %v5682_v10, %v5663_v49  ;;  %v4439_v10 = vld [vmem:[%s5093_s0 + $0x30] sm:$0xff]   ;;  %v4440_v49 = vld [vmem:[%s5093_s0 + $0x38] sm:$0xff]  }
 0x523   : > { %3967 = vmatprep.subr.bf16.mxu1 %v2088_v26 }
 0x524   : > { %v2086_v59 = vpack.c.bf16 %v6444_v30, %v2064_v31  ;;  %v2062_v48 = vmax.f32 %v5858_v51, 0.0  ;;  %v4442_v30 = vld [vmem:[%s5093_s0 + $0x48] sm:$0xff]  }
 0x526   : > { %3968 = vmatpush3.bf16.msra.mxu1 %v2088_v26  ;;  %v4438_v26 = vld [vmem:[%s5093_s0 + $0x28] sm:$0xff]   ;;  %v2085_v32 = vpack.c.bf16 %v2063_v55, %v2062_v48  ;;  %s3535_s0 = sshll.u32 %s4865_s21, 4  ;;  %s4765_s21 = smov [#allocation18]  }
 0x527   : > { %3969 = vmatprep.subr.bf16.mxu1 %v2087_v46  ;;  %s6352_s12 = scalar_lea.hbm %s6409_s14, %s3535_s0 }
 0x529   : > { %3954 = vmatmul.mubr.bf16.gmra.mxu1 %v4438_v26  ;;  %v2061_v26 = vmax.f32 %v5864_v5, 0.0 }
 0x52a   : > { %3970 = vmatpush3.bf16.msra.mxu1 %v2087_v46  ;;  %3957 = vmatprep.mubr.bf16.mxu1 %v4439_v10  ;;  %v2060_v46 = vmax.f32 %v5875_v23, 0.0 }
 0x52b   : > { %3971 = vmatprep.subr.bf16.mxu1 %v2086_v59 }
 0x52c   : > { %v2084_v10 = vpack.c.bf16 %v2061_v26, %v2060_v46 }
 0x52e   : > { %3972 = vmatpush3.bf16.msra.mxu1 %v2086_v59 }
 0x52f   : > { %3973 = vmatprep.subr.bf16.mxu1 %v2085_v32 }
 0x531   : > { %3958 = vmatmul.mubr.bf16.gmra.mxu1 %v4440_v49 }
 0x532   : > { %3974 = vmatpush3.bf16.msra.mxu1 %v2085_v32  ;;  %3977 = vmatprep.mubr.bf16.mxu1 %v4441_v60 }
 0x533   : > { %3975 = vmatprep.subr.bf16.mxu1 %v2084_v10 }
 0x536   : > { %3976 = vmatpush3.bf16.msra.mxu1 %v2084_v10 }
 0x539   : > { %3978 = vmatmul.mubr.bf16.vlgmr.msra.gmra.mxu1 %v4442_v30 }
 0x53a   : > { %3981 = vmatprep.mubr.bf16.mxu1 %v4443_v15 }
 0x541   : > { %3982 = vmatmul.mubr.bf16.gmra.mxu1 %v5410_v42 }
 0x542   : > { %3985 = vmatprep.mubr.bf16.mxu1 %v5413_v45 }
 0x549   : > { %3986 = vmatmul.mubr.bf16.gmra.mxu1 %v5418_v34 }
 0x54a   : > { %3989 = vmatprep.mubr.bf16.mxu1 %v5421_v19 }
 0x551   : > { %3990 = vmatmul.mubr.bf16.gmra.mxu1 %v5426_v58 }
 0x5d9   : > { %v3947_v59 = vpop.f32.mrf.mxu1 }
 0x5da   : > { %v5898_v32 = vadd.f32 %v3947_v59, %v2046_v9 }
 0x5db   : > { %v2126_v10 = vpop.f32.mrf.mxu1 }
 0x5dc   : > { %v5902_v30 = vadd.f32 %v2126_v10, %v2044_v27  ;;  %v2320_v42 = vmul.f32 %v5898_v32, %v5898_v32 }
 0x5dd   : > { %v3948_v45 = vpop.f32.mrf.mxu1 }
 0x5de   : > { %2354 = vadd.xlane.f32.xlu0 %v2320_v42  ;;  %v5908_v19 = vadd.f32 %v3948_v45, %v2047_v20  ;;  %v2318_v15 = vmul.f32 %v5902_v30, %v5902_v30 }
 0x5df   : > { %v2129_v34 = vpop.f32.mrf.mxu1 }
 0x5e0   : > { %v5912_v58 = vadd.f32 %v2129_v34, %v2045_v61  ;;  %v2321_v35 = vmul.f32 %v5908_v19, %v5908_v19 }
 0x5e1   : > { %v3951_v21 = vpop.f32.mrf.mxu1 }
 0x5e2   : > { %2350 = vadd.xlane.f32.xlu0 %v2318_v15  ;;  %v2319_v9 = vmul.f32 %v5912_v58, %v5912_v58  ;;  %v5920_v27 = vadd.f32 %v3951_v21, %v2050_v3 }
 0x5e3   : > { %v2142_v17 = vpop.f32.mrf.mxu1 }
 0x5e4   : > { %2352 = vadd.xlane.f32.xlu1 %v2319_v9  ;;  %v5926_v61 = vadd.f32 %v2142_v17, %v2048_v63  ;;  %v2324_v49 = vmul.f32 %v5920_v27, %v5920_v27 }
 0x5e5   : > { %v3952_v20 = vpop.f32.mrf.mxu1 }
 0x5e6   : > { %2356 = vadd.xlane.f32.xlu0 %v2321_v35  ;;  %v5932_v39 = vadd.f32 %v3952_v20, %v2051_v24  ;;  %v2322_v3 = vmul.f32 %v5926_v61, %v5926_v61 }
 0x5e7   : > { %v2145_v18 = vpop.f32.mrf.mxu1 }
 0x5e8   : > { %v5938_v52 = vadd.f32 %v2145_v18, %v2049_v57  ;;  %v2325_v63 = vmul.f32 %v5932_v39, %v5932_v39 }
 0x5e9   : > { %v3955_v60 = vpop.f32.mrf.mxu1 }
 0x5ea   : > { %2362 = vadd.xlane.f32.xlu0 %v2324_v49  ;;  %v2323_v24 = vmul.f32 %v5938_v52, %v5938_v52 }
 0x5eb   : > { %v2158_v59 = vpop.f32.mrf.mxu1 }
 0x5ec   : > { %v5944_v40 = vadd.f32 %v2158_v59, %v2052_v0 }
 0x5ed   : > { %v3956_v10 = vpop.f32.mrf.mxu1 }
 0x5ee   : > { %2358 = vadd.xlane.f32.xlu0 %v2322_v3  ;;  %v2326_v12 = vmul.f32 %v5944_v40, %v5944_v40  ;;  %v5990_v59 = vadd.f32 %v3956_v10, %v2055_v44  ;;  %v6496_v3 = vmax.f32 %v5680_v28, 0.0 }
 0x5ef   : > { %v2161_v42 = vpop.f32.mrf.mxu1 }
 0x5f0   : > { %v5962_v20 = vadd.f32 %v2161_v42, %v2053_v53  ;;  %v5978_v53 = vadd.f32 %v3955_v60, %v2054_v43  ;;  %v2329_v47 = vmul.f32 %v5990_v59, %v5990_v59 }
 0x5f1   : > { %v3959_v45 = vpop.f32.mrf.mxu1 }
 0x5f2   : > { %2364 = vadd.xlane.f32.xlu0 %v2325_v63  ;;  %v2328_v6 = vmul.f32 %v5978_v53, %v5978_v53  ;;  %v6498_v63 = vmax.f32 %v5666_v7, 0.0 }
 0x5f3   : > { %v2174_v34 = vpop.f32.mrf.mxu1 }
 0x5f4   : > { %v6002_v60 = vadd.f32 %v2174_v34, %v2056_v38  ;;  %v6497_v38 = vmax.f32 %v5834_v33, 0.0  ;;  %v6026_v34 = vadd.f32 %v3959_v45, %v6498_v63  ;;  %v6501_v45 = vmax.f32 %v5816_v22, 0.0  ;;  %v4268_v63 = vld [vmem:[#allocation12 + $0x28] sm:$0xff]  }
 0x5f5   : > { %v3960_v15 = vpop.f32.mrf.mxu1 }
 0x5f6   : > { %2360 = vadd.xlane.f32.xlu0 %v2323_v24  ;;  %v2330_v2 = vmul.f32 %v6002_v60, %v6002_v60  ;;  %v6499_v24 = vmax.f32 %v5796_v4, 0.0  ;;  %v2332_v7 = vmul.f32 %v6026_v34, %v6026_v34 }
 0x5f7   : > { %v2177_v21 = vpop.f32.mrf.mxu1 }
 0x5f8   : > { %v6014_v10 = vadd.f32 %v2177_v21, %v6496_v3 }
 0x5f9   : > { %v3979_v57 = vpop.f32.mrf.mxu1 }
 0x5fa   : > { %v5952_v9 = vadd.f32 %v3979_v57, %v2062_v48  ;;  %2366 = vadd.xlane.f32.xlu0 %v2326_v12  ;;  %v2331_v28 = vmul.f32 %v6014_v10, %v6014_v10  ;;  %v6500_v57 = vmax.f32 %v5672_v14, 0.0  ;;  %v6502_v14 = vmax.f32 %v5788_v41, 0.0 }
 0x5fb   : > { %v2223_v17 = vpop.f32.mrf.mxu1 }
 0x5fc   : > { %v5956_v11 = vadd.f32 %v2223_v17, %v2060_v46  ;;  %v2336_v0 = vmul.f32 %v5952_v9, %v5952_v9  ;;  %v6038_v17 = vadd.f32 %v3960_v15, %v6500_v57  ;;  %v4274_v57 = vld [vmem:[#allocation12] sm:$0xff]  }
 0x5fd   : > { %v3980_v35 = vpop.f32.mrf.mxu1 }
 0x5fe   : > { %v5966_v18 = vadd.f32 %v3980_v35, %v2063_v55  ;;  %2386 = vadd.xlane.f32.xlu1 %v2336_v0  ;;  %v2334_v48 = vmul.f32 %v5956_v11, %v5956_v11  ;;  %v2327_v55 = vmul.f32 %v5962_v20, %v5962_v20 }
 0x5ff   : > { %v2226_v51 = vpop.f32.mrf.mxu1 }
 0x600   : > { %v5972_v23 = vadd.f32 %v2226_v51, %v2061_v26  ;;  %2382 = vadd.xlane.f32.xlu0 %v2334_v48  ;;  %v2337_v46 = vmul.f32 %v5966_v18, %v5966_v18  ;;  %v2333_v48 = vmul.f32 %v6038_v17, %v6038_v17 }
 0x601   : > { %v3983_v54 = vpop.f32.mrf.mxu1 }
 0x602   : > { %2388 = vadd.xlane.f32.xlu1 %v2337_v46  ;;  %v5984_v49 = vadd.f32 %v3983_v54, %v2066_v36  ;;  %v2335_v5 = vmul.f32 %v5972_v23, %v5972_v23  ;;  %v6503_v46 = vmax.f32 %v5806_v16, 0.0 }
 0x603   : > { %v2239_v13 = vpop.f32.mrf.mxu1 }
 0x604   : > { %2368 = vadd.xlane.f32.xlu0 %v2327_v55  ;;  %v5996_v43 = vadd.f32 %v2239_v13, %v2064_v31  ;;  %v2340_v62 = vmul.f32 %v5984_v49, %v5984_v49 }
 0x605   : > { %v3984_v26 = vpop.f32.mrf.mxu1 }
 0x606   : > { %2384 = vadd.xlane.f32.xlu1 %v2335_v5  ;;  %v6008_v44 = vadd.f32 %v3984_v26, %v2067_v1  ;;  %v2338_v37 = vmul.f32 %v5996_v43, %v5996_v43  ;;  %v6504_v5 = vmax.f32 %v5779_v50, 0.0  ;;  %v6506_v50 = vmax.f32 %v5793_v29, 0.0 }
 0x607   : > { %v2242_v36 = vpop.f32.mrf.mxu1 }
 0x608   : > { %2370 = vadd.xlane.f32.xlu0 %v2328_v6  ;;  %v6020_v42 = vadd.f32 %v2242_v36, %v6497_v38  ;;  %v2341_v56 = vmul.f32 %v6008_v44, %v6008_v44  ;;  %v6507_v38 = vmax.f32 %v5785_v8, 0.0  ;;  %v4271_v8 = vld [vmem:[#allocation12 + $0x10] sm:$0xff]  }
 0x609   : > { %v3987_v31 = vpop.f32.mrf.mxu1 }
 0x60a   : > { %2394 = vadd.xlane.f32.xlu1 %v2340_v62  ;;  %v6032_v21 = vadd.f32 %v3987_v31, %v6499_v24  ;;  %v2339_v33 = vmul.f32 %v6020_v42, %v6020_v42  ;;  %v6505_v62 = vmax.f32 %v5782_v25, 0.0  ;;  %v4763_v31 = vmov 0.0   ;;  %v4270_v24 = vld [vmem:[#allocation12 + $0x18] sm:$0xff]  }
 0x60b   : > { %v2255_v1 = vpop.f32.mrf.mxu1  ;;  %4013 = vmatprep.subr.bf16.mxu1 %v4763_v31  ;;  %3993 = vmatprep.subr.bf16.mxu0 %v4763_v31 }
 0x60c   : > { %2372 = vadd.xlane.f32.xlu0 %v2329_v47  ;;  %v6044_v0 = vadd.f32 %v2255_v1, %v6501_v45  ;;  %v2344_v4 = vmul.f32 %v6032_v21, %v6032_v21  ;;  %v4266_v47 = vld [vmem:[#allocation12 + $0x38] sm:$0xff]   ;;  %4029 = vmatprep.mubr.msk.bf16.mxu1 %vm4764_vm0, %v4763_v31  ;;  %v4276_v45 = vld [vmem:[#allocation12 + $0x68] sm:$0xff]  }
 0x60d   : > { %v3988_v12 = vpop.f32.mrf.mxu1  ;;  %4014 = vmatpush3.bf16.msra.mxu1 %v4266_v47  ;;  %4009 = vmatprep.mubr.msk.bf16.mxu0 %vm4764_vm0, %v4763_v31 }
 0x60e   : > { %2390 = vadd.xlane.f32.xlu1 %v2338_v37  ;;  %v6052_v15 = vadd.f32 %v3988_v12, %v6502_v14  ;;  %v2342_v51 = vmul.f32 %v6044_v0, %v6044_v0  ;;  %4015 = vmatprep.subr.bf16.mxu1 %v4763_v31  ;;  %v4273_v12 = vld [vmem:[#allocation12 + $0x78] sm:$0xff]   ;;  %v4280_v14 = vld [vmem:[#allocation12 + $0x48] sm:$0xff]  }
 0x60f   : > { %v2258_v35 = vpop.f32.mrf.mxu1  ;;  %3994 = vmatpush3.bf16.msra.mxu0 %v4273_v12 }
 0x610   : > { %2374 = vadd.xlane.f32.xlu0 %v2330_v2  ;;  %v6058_v54 = vadd.f32 %v2258_v35, %v6503_v46  ;;  %v2345_v55 = vmul.f32 %v6052_v15, %v6052_v15  ;;  %v4267_v2 = vld [vmem:[#allocation12 + $0x30] sm:$0xff]   ;;  %3995 = vmatprep.subr.bf16.mxu0 %v4763_v31  ;;  %v4278_v35 = vld [vmem:[#allocation12 + $0x58] sm:$0xff]  }
 0x611   : > { %v3991_v22 = vpop.f32.mrf.mxu1  ;;  %4016 = vmatpush3.bf16.msra.mxu1 %v4267_v2  ;;  %v2510_v2 = vlaneseq }
 0x612   : > { %2396 = vadd.xlane.f32.xlu1 %v2341_v56  ;;  %v6064_v41 = vadd.f32 %v3991_v22, %v6504_v5  ;;  %v2343_v26 = vmul.f32 %v6058_v54, %v6058_v54  ;;  %4017 = vmatprep.subr.bf16.mxu1 %v4763_v31 }
 0x613   : > { %v2271_v13 = vpop.f32.mrf.mxu1 }
 0x614   : > { %2376 = vadd.xlane.f32.xlu0 %v2331_v28  ;;  %v6070_v36 = vadd.f32 %v2271_v13, %v6505_v62  ;;  %v2348_v16 = vmul.f32 %v6064_v41, %v6064_v41  ;;  %v4269_v28 = vld [vmem:[#allocation12 + $0x20] sm:$0xff]  }
 0x615   : > { %v3992_v6 = vpop.f32.mrf.mxu1  ;;  %4018 = vmatpush3.bf16.msra.mxu1 %v4268_v63  ;;  %v6113_v63 = vshrl.u32 %v2510_v2, 7 }
 0x616   : > { %2392 = vadd.xlane.f32.xlu1 %v2339_v33  ;;  %v2346_v25 = vmul.f32 %v6070_v36, %v6070_v36  ;;  %v6086_v56 = vadd.f32 %v3992_v6, %v6507_v38  ;;  %4019 = vmatprep.subr.bf16.mxu1 %v4763_v31  ;;  %v4272_v33 = vld [vmem:[#allocation12 + $0x8] sm:$0xff]  }
 0x617   : > { %v2274_v37 = vpop.f32.mrf.mxu1 }
 0x618   : > { %2378 = vadd.xlane.f32.xlu0 %v2332_v7  ;;  %v6079_v3 = vadd.f32 %v2274_v37, %v6506_v50  ;;  %v2349_v29 = vmul.f32 %v6086_v56, %v6086_v56  ;;  %v4275_v7 = vld [vmem:[#allocation12 + $0x70] sm:$0xff]  }
 0x619   : > { %4020 = vmatpush3.bf16.msra.mxu1 %v4269_v28  ;;  %3996 = vmatpush3.bf16.msra.mxu0 %v4275_v7  ;;  %v6118_v7 = vstv %s2528_s5  ;;  %s4668_s5 = sshll.u32 %s4765_s21, 4  ;;  %s4669_s5 = int_to_ptr.vmem [resolvable:$false] %s4668_s5 }
 0x61a   : > { %2402 = vadd.xlane.f32.xlu1 %v2344_v4  ;;  %v2347_v1 = vmul.f32 %v6079_v3, %v6079_v3  ;;  %4021 = vmatprep.subr.bf16.mxu1 %v4763_v31  ;;  %v4277_v4 = vld [vmem:[#allocation12 + $0x60] sm:$0xff]   ;;  %vm2532_vm2 = vcmp.lt.s32.totalorder %v6113_v63, %v6118_v7  ;;  %s4670_s7 = scalar_lea.vmem %s4669_s5, 32  ;;  %p4671_p12 = scmp.lt.s32.totalorder %s6354_s30, %s4669_s5 }
 0x61b   : > { %3997 = vmatprep.subr.bf16.mxu0 %v4763_v31  ;;  %p4672_p2 = scmp.lt.s32.totalorder %s4670_s7, %s4664_s15 }
 0x61c   : > { %2380 = vadd.xlane.f32.xlu0 %v2333_v48  ;;  %v4279_v48 = vld [vmem:[#allocation12 + $0x50] sm:$0xff]  }
 0x61d   : > { %4022 = vmatpush3.bf16.msra.mxu1 %v4270_v24  ;;  %3998 = vmatpush3.bf16.msra.mxu0 %v4276_v45  ;;  %v6116_v24 = vadd.s32 8, %v6113_v63  ;;  %p4673_p3 = por %p4672_p2, %p4671_p12 }
 0x61e   : > { %2398 = vadd.xlane.f32.xlu1 %v2342_v51  ;;  %4023 = vmatprep.subr.bf16.mxu1 %v4763_v31  ;;  %v4281_v51 = vld [vmem:[#allocation12 + $0x40] sm:$0xff]  }
 0x61f   : > { %3999 = vmatprep.subr.bf16.mxu0 %v4763_v31  ;;  %vm2533_vm1 = vcmp.lt.s32.totalorder %v6116_v24, %v6118_v7  ;;  %p4674_p7 = pnand %p4673_p3, %p4667_p4 }
 0x621   : > { %4024 = vmatpush3.bf16.msra.mxu1 %v4271_v8  ;;  %4000 = vmatpush3.bf16.msra.mxu0 %v4277_v4 }
 0x622   : > { %2404 = vadd.xlane.f32.xlu1 %v2345_v55  ;;  %4025 = vmatprep.subr.bf16.mxu1 %v4763_v31 }
 0x623   : > { %4001 = vmatprep.subr.bf16.mxu0 %v4763_v31 }
 0x625   : > { %4026 = vmatpush3.bf16.msra.mxu1 %v4272_v33  ;;  %4002 = vmatpush3.bf16.msra.mxu0 %v4278_v35 }
 0x626   : > { %2400 = vadd.xlane.f32.xlu1 %v2343_v26  ;;  %4027 = vmatprep.subr.bf16.mxu1 %v4763_v31 }
 0x627   : > { %4003 = vmatprep.subr.bf16.mxu0 %v4763_v31 }
 0x629   : > { %4028 = vmatpush3.bf16.msra.mxu1 %v4274_v57  ;;  %4004 = vmatpush3.bf16.msra.mxu0 %v4279_v48 }
 0x62a   : > { %2410 = vadd.xlane.f32.xlu1 %v2348_v16  ;;  %4053 = vmatprep.subr.bf16.mxu1 %v4763_v31 }
 0x62b   : > { %4005 = vmatprep.subr.bf16.mxu0 %v4763_v31 }
 0x62d   : > { %4006 = vmatpush3.bf16.msra.mxu0 %v4280_v14  ;;  %v6124_v14 = vadd.s32 16, %v6113_v63 }
 0x62e   : > { %2406 = vadd.xlane.f32.xlu1 %v2346_v25  ;;  %4007 = vmatprep.subr.bf16.mxu0 %v4763_v31 }
 0x62f   : > { %vm2534_vm3 = vcmp.lt.s32.totalorder %v6124_v14, %v6118_v7 }
 0x631   : > { %4008 = vmatpush3.bf16.msra.mxu0 %v4281_v51 }
 0x632   : > { %2408 = vadd.xlane.f32.xlu1 %v2347_v1  ;;  %4033 = vmatprep.subr.bf16.mxu0 %v4763_v31 }
 0x636   : > { %2412 = vadd.xlane.f32.xlu1 %v2349_v29 }
 0x667   : > { %v2355_v22 = vpop.xlane.xlu0 %2354 }
 0x668   : > { %v2416_v47 = vmax.f32 %v2355_v22, 1e-24 }
 0x66b   : > { %v2351_v46 = vpop.xlane.xlu0 %2350 }
 0x66c   : > { %v2414_v62 = vmax.f32 %v2351_v46, 1e-24 }
 0x66d   : > { %v2353_v5 = vpop.xlane.xlu1 %2352 }
 0x66e   : > { %v2415_v6 = vmax.f32 %v2353_v5, 1e-24 }
 0x66f   : > { %v2357_v55 = vpop.xlane.xlu0 %2356 }
 0x670   : > { %4370 = vrsqrt.f32 %v2415_v6  ;;  %v2417_v50 = vmax.f32 %v2357_v55, 1e-24 }
 0x671   : > { %4372 = vrsqrt.f32 %v2414_v62 }
 0x672   : > { %4374 = vrsqrt.f32 %v2416_v47 }
 0x673   : > { %v2363_v13 = vpop.xlane.xlu0 %2362  ;;  %4376 = vrsqrt.f32 %v2417_v50  ;;  %v6136_v50 = vadd.s32 32, %v6113_v63 }
 0x674   : > { %v2420_v33 = vmax.f32 %v2363_v13, 1e-24 }
 0x675   : > { %vm2536_vm5 = vcmp.lt.s32.totalorder %v6136_v50, %v6118_v7 }
 0x677   : > { %v2359_v26 = vpop.xlane.xlu0 %2358 }
 0x678   : > { %v2418_v25 = vmax.f32 %v2359_v26, 1e-24 }
 0x67a   : > { %4378 = vrsqrt.f32 %v2418_v25 }
 0x67b   : > { %v2365_v16 = vpop.xlane.xlu0 %2364 }
 0x67c   : > { %v2421_v4 = vmax.f32 %v2365_v16, 1e-24 }
 0x67d   : > { %v4371_v28 = vpop.eup %4370 }
 0x67e   : > { %v4373_v12 = vpop.eup %4372  ;;  %v2479_v45 = vmul.f32 %v4371_v28, %v5912_v58 }
 0x67f   : > { %v2361_v37 = vpop.xlane.xlu0 %2360  ;;  %v4375_v48 = vpop.eup %4374  ;;  %v2478_v51 = vmul.f32 %v4373_v12, %v5902_v30 }
 0x680   : > { %v2419_v38 = vmax.f32 %v2361_v37, 1e-24  ;;  %v2581_v55 = vsel %vm2533_vm1, %v2479_v45, 0.0  ;;  %v2480_v58 = vmul.f32 %v4375_v48, %v5898_v32  ;;  %v4377_v6 = vpop.eup %4376  ;;  %v6133_v37 = vadd.s32 24, %v6113_v63 }
 0x681   : > { %v2580_v62 = vsel %vm2532_vm2, %v2478_v51, 0.0 }
 0x682   : > { %4380 = vrsqrt.f32 %v2419_v38  ;;  %v2596_v47 = vadd.f32 %v2581_v55, %v2580_v62  ;;  %v2582_v38 = vsel %vm2534_vm3, %v2480_v58, 0.0  ;;  %vm2535_vm4 = vcmp.lt.s32.totalorder %v6133_v37, %v6118_v7 }
 0x683   : > { %v2367_v1 = vpop.xlane.xlu0 %2366  ;;  %4382 = vrsqrt.f32 %v2420_v33  ;;  %v2481_v33 = vmul.f32 %v4377_v6, %v5908_v19  ;;  %v6155_v58 = vadd.s32 48, %v6113_v63 }
 0x684   : > { %v2422_v22 = vmax.f32 %v2367_v1, 1e-24  ;;  %4384 = vrsqrt.f32 %v2421_v4  ;;  %v6141_v1 = vadd.s32 40, %v6113_v63  ;;  %v2597_v4 = vadd.f32 %v2596_v47, %v2582_v38 }
 0x685   : > { %vm2538_vm7 = vcmp.lt.s32.totalorder %v6155_v58, %v6118_v7 }
 0x686   : > { %4386 = vrsqrt.f32 %v2422_v22  ;;  %vm2537_vm6 = vcmp.lt.s32.totalorder %v6141_v1, %v6118_v7 }
 0x687   : > { %v2387_v29 = vpop.xlane.xlu1 %2386  ;;  %v4379_v16 = vpop.eup %4378 }
 0x688   : > { %v2432_v28 = vmax.f32 %v2387_v29, 1e-24  ;;  %v2482_v12 = vmul.f32 %v4379_v16, %v5926_v61  ;;  %v2583_v29 = vsel %vm2535_vm4, %v2481_v33, 0.0 }
 0x689   : > { %v2383_v8 = vpop.xlane.xlu0 %2382 }
 0x68a   : > { %v2430_v5 = vmax.f32 %v2383_v8, 1e-24  ;;  %v2584_v22 = vsel %vm2536_vm5, %v2482_v12, 0.0 }
 0x68b   : > { %v2389_v57 = vpop.xlane.xlu1 %2388 }
 0x68d   : > { %v2369_v35 = vpop.xlane.xlu0 %2368 }
 0x68e   : > { %v2423_v30 = vmax.f32 %v2369_v35, 1e-24  ;;  %v2433_v35 = vmax.f32 %v2389_v57, 1e-24 }
 0x68f   : > { %v2385_v46 = vpop.xlane.xlu1 %2384  ;;  %v4381_v2 = vpop.eup %4380 }
 0x690   : > { %v2431_v13 = vmax.f32 %v2385_v46, 1e-24  ;;  %v2483_v51 = vmul.f32 %v4381_v2, %v5938_v52  ;;  %v4383_v55 = vpop.eup %4382 }
 0x691   : > { %v2371_v26 = vpop.xlane.xlu0 %2370  ;;  %v4385_v62 = vpop.eup %4384 }
 0x692   : > { %4388 = vrsqrt.f32 %v2431_v13  ;;  %v2424_v25 = vmax.f32 %v2371_v26, 1e-24  ;;  %v2598_v13 = vadd.f32 %v2597_v4, %v2583_v29  ;;  %v2585_v52 = vsel %vm2537_vm6, %v2483_v51, 0.0 }
 0x693   : > { %v6138_v32 = vpop.xlane.xlu1 %2394  ;;  %4390 = vrsqrt.f32 %v2430_v5  ;;  %v6160_v26 = vadd.s32 56, %v6113_v63  ;;  %v4387_v38 = vpop.eup %4386  ;;  %v6182_v29 = vadd.s32 80, %v6113_v63 }
 0x694   : > { %4392 = vrsqrt.f32 %v2423_v30  ;;  %v2599_v5 = vadd.f32 %v2598_v13, %v2584_v22  ;;  %v2484_v30 = vmul.f32 %v4383_v55, %v5920_v27  ;;  %v2485_v27 = vmul.f32 %v4385_v62, %v5932_v39 }
 0x695   : > { %v2373_v8 = vpop.xlane.xlu0 %2372  ;;  %4394 = vrsqrt.f32 %v2424_v25  ;;  %v6166_v25 = vadd.s32 64, %v6113_v63  ;;  %vm2539_vm8 = vcmp.lt.s32.totalorder %v6160_v26, %v6118_v7  ;;  %v2486_v55 = vmul.f32 %v4387_v38, %v5944_v40 }
 0x696   : > { %v2425_v45 = vmax.f32 %v2373_v8, 1e-24  ;;  %4396 = vrsqrt.f32 %v2432_v28  ;;  %v2600_v47 = vadd.f32 %v2599_v5, %v2585_v52  ;;  %v6168_v28 = vstv %s2530_s18 }
 0x697   : > { %v2391_v48 = vpop.xlane.xlu1 %2390  ;;  %v6171_v8 = vadd.s32 72, %v6113_v63  ;;  %vm2540_vm9 = vcmp.lt.s32.totalorder %v6166_v25, %v6118_v7  ;;  %vm2620_vm10 = vcmp.lt.s32.totalorder %v6124_v14, %v6168_v28  ;;  %vm2618_vm11 = vcmp.lt.s32.totalorder %v6113_v63, %v6168_v28 }
 0x698   : > { %v2434_v19 = vmax.f32 %v2391_v48, 1e-24  ;;  %4398 = vrsqrt.f32 %v2425_v45  ;;  %v2436_v48 = vmax.f32 %v6138_v32, 1e-24  ;;  %vm2619_vm13 = vcmp.lt.s32.totalorder %v6116_v24, %v6168_v28 }
 0x699   : > { %v2375_v61 = vpop.xlane.xlu0 %2374  ;;  %4400 = vrsqrt.f32 %v2433_v35  ;;  %v2586_v35 = vsel %vm2538_vm7, %v2484_v30, 0.0  ;;  %vm2541_vm12 = vcmp.lt.s32.totalorder %v6171_v8, %v6118_v7  ;;  %vm2621_vm14 = vcmp.lt.s32.totalorder %v6133_v37, %v6168_v28 }
 0x69a   : > { %v2426_v46 = vmax.f32 %v2375_v61, 1e-24  ;;  %v2601_v61 = vadd.f32 %v2600_v47, %v2586_v35  ;;  %vm2542_vm15 = vcmp.lt.s32.totalorder %v6182_v29, %v6118_v7  ;;  %v6205_v40 = vadd.s32 88, %v6113_v63 }
 0x69b   : > { %v6157_v57 = vpop.xlane.xlu1 %2396  ;;  %vm2622_vm2 = vcmp.lt.s32.totalorder %v6136_v50, %v6168_v28  ;;  %vm2623_vm5 = vcmp.lt.s32.totalorder %v6141_v1, %v6168_v28 }
 0x69c   : > { %4402 = vrsqrt.f32 %v2426_v46  ;;  %v2587_v46 = vsel %vm2539_vm8, %v2485_v27, 0.0  ;;  %v2437_v13 = vmax.f32 %v6157_v57, 1e-24  ;;  %v6208_v57 = vadd.s32 96, %v6113_v63 }
 0x69d   : > { %4404 = vrsqrt.f32 %v2434_v19  ;;  %v2377_v6 = vpop.xlane.xlu0 %2376  ;;  %vm2543_vm1 = vcmp.lt.s32.totalorder %v6205_v40, %v6118_v7  ;;  %vm2624_vm8 = vcmp.lt.s32.totalorder %v6155_v58, %v6168_v28 }
 0x69e   : > { %v2427_v16 = vmax.f32 %v2377_v6, 1e-24  ;;  %vm2544_vm3 = vcmp.lt.s32.totalorder %v6208_v57, %v6118_v7 }
 0x69f   : > { %v2393_v2 = vpop.xlane.xlu1 %2392  ;;  %v4389_v12 = vpop.eup %4388 }
 0x6a0   : > { %4406 = vrsqrt.f32 %v2427_v16  ;;  %v2435_v33 = vmax.f32 %v2393_v2, 1e-24  ;;  %v4391_v4 = vpop.eup %4390  ;;  %v2495_v39 = vmul.f32 %v4389_v12, %v5972_v23  ;;  %v2602_v16 = vadd.f32 %v2601_v61, %v2587_v46 }
 0x6a1   : > { %v2379_v45 = vpop.xlane.xlu0 %2378  ;;  %v4393_v19 = vpop.eup %4392  ;;  %v2494_v6 = vmul.f32 %v4391_v4, %v5956_v11  ;;  %v2588_v12 = vsel %vm2540_vm9, %v2486_v55, 0.0  ;;  %vm2625_vm9 = vcmp.lt.s32.totalorder %v6160_v26, %v6168_v28 }
 0x6a2   : > { %4408 = vrsqrt.f32 %v2435_v33  ;;  %v2428_v51 = vmax.f32 %v2379_v45, 1e-24  ;;  %v4395_v32 = vpop.eup %4394  ;;  %v2487_v23 = vmul.f32 %v4393_v19, %v5962_v20  ;;  %v2667_v2 = vsel %vm2619_vm13, %v2495_v39, 0.0 }
 0x6a3   : > { %v6184_v22 = vpop.xlane.xlu1 %2402  ;;  %v4397_v5 = vpop.eup %4396  ;;  %v2488_v20 = vmul.f32 %v4395_v32, %v5978_v53  ;;  %v6219_v45 = vadd.s32 104, %v6113_v63  ;;  %v2666_v24 = vsel %vm2618_vm11, %v2494_v6, 0.0  ;;  %vm2627_vm11 = vcmp.lt.s32.totalorder %v6171_v8, %v6168_v28 }
 0x6a4   : > { %4410 = vrsqrt.f32 %v2428_v51  ;;  %v2496_v27 = vmul.f32 %v4397_v5, %v5952_v9  ;;  %v2589_v53 = vsel %vm2541_vm12, %v2487_v23, 0.0  ;;  %v2682_v51 = vadd.f32 %v2667_v2, %v2666_v24 }
 0x6a5   : > { %v2381_v52 = vpop.xlane.xlu0 %2380  ;;  %4412 = vrsqrt.f32 %v2436_v48  ;;  %v4399_v30 = vpop.eup %4398  ;;  %v2603_v48 = vadd.f32 %v2602_v16, %v2588_v12  ;;  %v6231_v9 = vadd.s32 112, %v6113_v63  ;;  %v2590_v61 = vsel %vm2542_vm15, %v2488_v20, 0.0 }
 0x6a6   : > { %v2429_v62 = vmax.f32 %v2381_v52, 1e-24  ;;  %v4401_v11 = vpop.eup %4400  ;;  %v2489_v35 = vmul.f32 %v4399_v30, %v5990_v59  ;;  %v2668_v52 = vsel %vm2620_vm10, %v2496_v27, 0.0  ;;  %vm2545_vm4 = vcmp.lt.s32.totalorder %v6219_v45, %v6118_v7 }
 0x6a7   : > { %v2399_v47 = vpop.xlane.xlu1 %2398  ;;  %v2497_v32 = vmul.f32 %v4401_v11, %v5966_v18  ;;  %v2604_v46 = vadd.f32 %v2603_v48, %v2589_v53  ;;  %vm2546_vm6 = vcmp.lt.s32.totalorder %v6231_v9, %v6118_v7  ;;  %vm2626_vm10 = vcmp.lt.s32.totalorder %v6166_v25, %v6168_v28 }
 0x6a8   : > { %4414 = vrsqrt.f32 %v2429_v62  ;;  %v2438_v38 = vmax.f32 %v2399_v47, 1e-24  ;;  %v2591_v5 = vsel %vm2543_vm1, %v2489_v35, 0.0  ;;  %vm2628_vm12 = vcmp.lt.s32.totalorder %v6182_v29, %v6168_v28 }
 0x6a9   : > { %v4403_v33 = vpop.eup %4402  ;;  %4416 = vrsqrt.f32 %v2437_v13  ;;  %v2440_v13 = vmax.f32 %v6184_v22, 1e-24  ;;  %v2605_v62 = vadd.f32 %v2604_v46, %v2590_v61  ;;  %v6259_v22 = vadd.s32 120, %v6113_v63 }
 0x6aa   : > { %v4405_v4 = vpop.eup %4404  ;;  %4418 = vrsqrt.f32 %v2438_v38  ;;  %v2490_v59 = vmul.f32 %v4403_v33, %v6002_v60  ;;  %v2683_v60 = vadd.f32 %v2682_v51, %v2668_v52  ;;  %v2669_v16 = vsel %vm2621_vm14, %v2497_v32, 0.0 }
 0x6ab   : > { %v2405_v19 = vpop.xlane.xlu1 %2404  ;;  %v2498_v55 = vmul.f32 %v4405_v4, %v5996_v43  ;;  %v2606_v47 = vadd.f32 %v2605_v62, %v2591_v5  ;;  %4420 = vrsqrt.f32 %v2440_v13  ;;  %vm2547_vm7 = vcmp.lt.s32.totalorder %v6259_v22, %v6118_v7 }
 0x6ac   : > { %v2592_v43 = vsel %vm2544_vm3, %v2490_v59, 0.0  ;;  %v2441_v63 = vmax.f32 %v2405_v19, 1e-24  ;;  %v2684_v38 = vadd.f32 %v2683_v60, %v2669_v16  ;;  %vm2629_vm13 = vcmp.lt.s32.totalorder %v6205_v40, %v6168_v28 }
 0x6ad   : > { %v4407_v39 = vpop.eup %4406  ;;  %v2670_v11 = vsel %vm2622_vm2, %v2498_v55, 0.0  ;;  %v2607_v33 = vadd.f32 %v2606_v47, %v2592_v43  ;;  %vm2630_vm14 = vcmp.lt.s32.totalorder %v6208_v57, %v6168_v28  ;;  %vm2631_vm15 = vcmp.lt.s32.totalorder %v6219_v45, %v6168_v28 }
 0x6ae   : > { %v2491_v6 = vmul.f32 %v4407_v39, %v6014_v10  ;;  %v2685_v4 = vadd.f32 %v2684_v38, %v2670_v11  ;;  %vm2632_vm1 = vcmp.lt.s32.totalorder %v6231_v9, %v6168_v28  ;;  %vm2633_vm2 = vcmp.lt.s32.totalorder %v6259_v22, %v6168_v28  ;;  %v4283_v28 = vld [vmem:[#allocation13 + $0x30] sm:$0xff]   ;;  %v4285_v22 = vld [vmem:[#allocation13 + $0x20] sm:$0xff]  }
 0x6af   : > { %v4409_v23 = vpop.eup %4408  ;;  %v2401_v18 = vpop.xlane.xlu1 %2400 }
 0x6b0   : > { %v2499_v14 = vmul.f32 %v4409_v23, %v6020_v42  ;;  %v2439_v10 = vmax.f32 %v2401_v18, 1e-24  ;;  %v2593_v2 = vsel %vm2545_vm4, %v2491_v6, 0.0 }
 0x6b1   : > { %v4411_v30 = vpop.eup %4410  ;;  %v2608_v24 = vadd.f32 %v2607_v33, %v2593_v2 }
 0x6b2   : > { %v2492_v42 = vmul.f32 %v4411_v30, %v6026_v34  ;;  %4422 = vrsqrt.f32 %v2439_v10  ;;  %v4413_v20 = vpop.eup %4412  ;;  %v2671_v37 = vsel %vm2623_vm5, %v2499_v14, 0.0 }
 0x6b3   : > { %v2411_v12 = vpop.xlane.xlu1 %2410  ;;  %v2500_v53 = vmul.f32 %v4413_v20, %v5984_v49  ;;  %4424 = vrsqrt.f32 %v2441_v63  ;;  %v2686_v1 = vadd.f32 %v2685_v4, %v2671_v37 }
 0x6b4   : > { %v2594_v50 = vsel %vm2546_vm6, %v2492_v42, 0.0  ;;  %v2444_v59 = vmax.f32 %v2411_v12, 1e-24 }
 0x6b5   : > { %v4415_v27 = vpop.eup %4414  ;;  %v2609_v51 = vadd.f32 %v2608_v24, %v2594_v50  ;;  %v2672_v46 = vsel %vm2624_vm8, %v2500_v53, 0.0 }
 0x6b6   : > { %v4417_v34 = vpop.eup %4416  ;;  %v2493_v35 = vmul.f32 %v4415_v27, %v6038_v17  ;;  %v2687_v49 = vadd.f32 %v2686_v1, %v2672_v46  ;;  %v4291_v46 = vld [vmem:[#allocation15 + $0x30] sm:$0xff]  }
 0x6b7   : > { %v4419_v48 = vpop.eup %4418  ;;  %v2407_v19 = vpop.xlane.xlu1 %2406  ;;  %v2501_v7 = vmul.f32 %v4417_v34, %v6008_v44 }
 0x6b8   : > { %v2595_v61 = vsel %vm2547_vm7, %v2493_v35, 0.0  ;;  %v2442_v39 = vmax.f32 %v2407_v19, 1e-24  ;;  %v2502_v55 = vmul.f32 %v4419_v48, %v6044_v0  ;;  %v4421_v5 = vpop.eup %4420  ;;  %v4286_v19 = vld [vmem:[#allocation13 + $0x18] sm:$0xff]  }
 0x6b9   : > { %v2610_v32 = vadd.f32 %v2609_v51, %v2595_v61  ;;  %v2673_v6 = vsel %vm2625_vm9, %v2501_v7, 0.0  ;;  %v2504_v14 = vmul.f32 %v4421_v5, %v6032_v21  ;;  %v4282_v51 = vld [vmem:[#allocation13 + $0x38] sm:$0xff]   ;;  %v4287_v61 = vld [vmem:[#allocation13 + $0x10] sm:$0xff]   ;;  %v4292_v7 = vld [vmem:[#allocation15 + $0x28] sm:$0xff]  }
 0x6ba   : > { %4426 = vrsqrt.f32 %v2442_v39  ;;  %v2674_v23 = vsel %vm2626_vm10, %v2502_v55, 0.0  ;;  %v2688_v60 = vadd.f32 %v2687_v49, %v2673_v6  ;;  %v4289_v39 = vld [vmem:[#allocation13] sm:$0xff]   ;;  %v4294_v49 = vld [vmem:[#allocation15 + $0x18] sm:$0xff]  }
 0x6bb   : > { %v2409_v17 = vpop.xlane.xlu1 %2408  ;;  %v2611_v58 = vrot.slane %v2610_v32, 4  ;;  %4428 = vrsqrt.f32 %v2444_v59  ;;  %v2676_v2 = vsel %vm2628_vm12, %v2504_v14, 0.0  ;;  %v4288_v59 = vld [vmem:[#allocation13 + $0x8] sm:$0xff]   ;;  %v4293_v55 = vld [vmem:[#allocation15 + $0x20] sm:$0xff]  }
 0x6bc   : > { %v2443_v13 = vmax.f32 %v2409_v17, 1e-24  ;;  %v2689_v25 = vadd.f32 %v2688_v60, %v2674_v23  ;;  %v4295_v17 = vld [vmem:[#allocation15 + $0x10] sm:$0xff]   ;;  %v4300_v14 = vld [vmem:[#allocation16 + $0x28] sm:$0xff]  }
 0x6bd   : > { %v2612_v52 = vadd.f32 %v2611_v58, %v2610_v32  ;;  %v4290_v32 = vld [vmem:[#allocation15 + $0x38] sm:$0xff]  }
 0x6be   : > { %4430 = vrsqrt.f32 %v2443_v13 }
 0x6bf   : > { %v4423_v44 = vpop.eup %4422  ;;  %v2413_v0 = vpop.xlane.xlu1 %2412  ;;  %v2613_v26 = vrot.slane %v2612_v52, 2 }
 0x6c0   : > { %v2503_v62 = vmul.f32 %v4423_v44, %v6058_v54  ;;  %v2445_v18 = vmax.f32 %v2413_v0, 1e-24  ;;  %v4425_v30 = vpop.eup %4424 }
 0x6c1   : > { %v2614_v43 = vadd.f32 %v2613_v26, %v2612_v52  ;;  %v2505_v8 = vmul.f32 %v4425_v30, %v6052_v15  ;;  %v4302_v30 = vld [vmem:[#allocation16 + $0x18] sm:$0xff]  }
 0x6c2   : > { %v2675_v10 = vsel %vm2627_vm11, %v2503_v62, 0.0  ;;  %4432 = vrsqrt.f32 %v2445_v18  ;;  %v4296_v62 = vld [vmem:[#allocation15 + $0x8] sm:$0xff]   ;;  %v4297_v18 = vld [vmem:[#allocation15] sm:$0xff]  }
 0x6c3   : > { %v2690_v16 = vadd.f32 %v2689_v25, %v2675_v10  ;;  %v2615_v47 = vrot.slane %v2614_v43, 1  ;;  %v2677_v29 = vsel %vm2629_vm13, %v2505_v8, 0.0  ;;  %v4298_v25 = vld [vmem:[#allocation16 + $0x38] sm:$0xff]   ;;  %v4301_v10 = vld [vmem:[#allocation16 + $0x20] sm:$0xff]  }
 0x6c5   : > { %v2616_v11 = vadd.f32 %v2615_v47, %v2614_v43  ;;  %v2691_v54 = vadd.f32 %v2690_v16, %v2676_v2  ;;  %v4299_v43 = vld [vmem:[#allocation16 + $0x30] sm:$0xff]   ;;  %v2931_v47 = vld [vmem:[%s6404_s9] sm:$0x1] }
 0x6c6   : > { %v4303_v16 = vld [vmem:[#allocation16 + $0x10] sm:$0xff]  }
 0x6c7   : > { %v4427_v42 = vpop.eup %4426  ;;  %v2703_v21 = vpack.c.bf16 %v2616_v11, %v2616_v11  ;;  %v2692_v15 = vadd.f32 %v2691_v54, %v2677_v29  ;;  %v4305_v29 = vld [vmem:[#allocation16] sm:$0xff]  }
 0x6c8   : > { %v2506_v63 = vmul.f32 %v4427_v42, %v6070_v36  ;;  %v4429_v20 = vpop.eup %4428 }
 0x6c9   : > { %4030 = vmatmul.mubr.bf16.vlgmr.msra.gmra.mxu1 %v2703_v21  ;;  %v2508_v40 = vmul.f32 %v4429_v20, %v6064_v41  ;;  %v4304_v20 = vld [vmem:[#allocation16 + $0x8] sm:$0xff]  }
 0x6ca   : > { %v2678_v38 = vsel %vm2630_vm14, %v2506_v63, 0.0  ;;  %4069 = vmatprep.mubr.msk.bf16.mxu1 %vm4764_vm0, %v4763_v31  ;;  %4054 = vmatpush3.bf16.msra.mxu1 %v4290_v32 }
 0x6cb   : > { %v4431_v33 = vpop.eup %4430  ;;  %v2693_v36 = vadd.f32 %v2692_v15, %v2678_v38  ;;  %v2680_v27 = vsel %vm2632_vm1, %v2508_v40, 0.0  ;;  %4055 = vmatprep.subr.bf16.mxu1 %v4763_v31  ;;  %v3038_v38 = vld [vmem:[%s6406_s11] sm:$0x1] }
 0x6cc   : > { %v2507_v12 = vmul.f32 %v4431_v33, %v6079_v3 }
 0x6ce   : > { %v2679_v57 = vsel %vm2631_vm15, %v2507_v12, 0.0  ;;  %4056 = vmatpush3.bf16.msra.mxu1 %v4291_v46 }
 0x6cf   : > { %v4433_v37 = vpop.eup %4432  ;;  %v2694_v50 = vadd.f32 %v2693_v36, %v2679_v57  ;;  %4057 = vmatprep.subr.bf16.mxu1 %v4763_v31 }
 0x6d0   : > { %v2509_v4 = vmul.f32 %v4433_v37, %v6086_v56  ;;  %v4284_v56 = vld [vmem:[#allocation13 + $0x28] sm:$0xff]  }
 0x6d1   : > { %v2695_v24 = vadd.f32 %v2694_v50, %v2680_v27 }
 0x6d2   : > { %v2681_v34 = vsel %vm2633_vm2, %v2509_v4, 0.0  ;;  %4058 = vmatpush3.bf16.msra.mxu1 %v4292_v7 }
 0x6d3   : > { %v2696_v45 = vadd.f32 %v2695_v24, %v2681_v34  ;;  %4059 = vmatprep.subr.bf16.mxu1 %v4763_v31 }
 0x6d5   : > { %v2697_v53 = vrot.slane %v2696_v45, 4 }
 0x6d6   : > { %4060 = vmatpush3.bf16.msra.mxu1 %v4293_v55 }
 0x6d7   : > { %v2698_v41 = vadd.f32 %v2697_v53, %v2696_v45  ;;  %4061 = vmatprep.subr.bf16.mxu1 %v4763_v31 }
 0x6d9   : > { %v2699_v35 = vrot.slane %v2698_v41, 2 }
 0x6da   : > { %4062 = vmatpush3.bf16.msra.mxu1 %v4294_v49 }
 0x6db   : > { %v2700_v3 = vadd.f32 %v2699_v35, %v2698_v41  ;;  %4063 = vmatprep.subr.bf16.mxu1 %v4763_v31 }
 0x6dd   : > { %v2701_v48 = vrot.slane %v2700_v3, 1 }
 0x6de   : > { %4064 = vmatpush3.bf16.msra.mxu1 %v4295_v17 }
 0x6df   : > { %v2702_v1 = vadd.f32 %v2701_v48, %v2700_v3  ;;  %4065 = vmatprep.subr.bf16.mxu1 %v4763_v31 }
 0x6e1   : > { %v2720_v9 = vpack.c.bf16 %v2702_v1, %v2702_v1 }
 0x6e2   : > { %4066 = vmatpush3.bf16.msra.mxu1 %v4296_v62 }
 0x6e3   : > { %4010 = vmatmul.mubr.bf16.vlgmr.msra.gmra.mxu0 %v2720_v9  ;;  %4067 = vmatprep.subr.bf16.mxu1 %v4763_v31 }
 0x6e4   : > { %4049 = vmatprep.mubr.msk.bf16.mxu0 %vm4764_vm0, %v4763_v31  ;;  %4034 = vmatpush3.bf16.msra.mxu0 %v4282_v51 }
 0x6e5   : > { %4035 = vmatprep.subr.bf16.mxu0 %v4763_v31 }
 0x6e6   : > { %4068 = vmatpush3.bf16.msra.mxu1 %v4297_v18 }
 0x6e8   : > { %4036 = vmatpush3.bf16.msra.mxu0 %v4283_v28 }
 0x6e9   : > { %4037 = vmatprep.subr.bf16.mxu0 %v4763_v31 }
 0x6ec   : > { %4038 = vmatpush3.bf16.msra.mxu0 %v4284_v56 }
 0x6ed   : > { %4039 = vmatprep.subr.bf16.mxu0 %v4763_v31 }
 0x6f0   : > { %4040 = vmatpush3.bf16.msra.mxu0 %v4285_v22 }
 0x6f1   : > { %4041 = vmatprep.subr.bf16.mxu0 %v4763_v31 }
 0x6f4   : > { %4042 = vmatpush3.bf16.msra.mxu0 %v4286_v19 }
 0x6f5   : > { %4043 = vmatprep.subr.bf16.mxu0 %v4763_v31 }
 0x6f8   : > { %4044 = vmatpush3.bf16.msra.mxu0 %v4287_v61 }
 0x6f9   : > { %4045 = vmatprep.subr.bf16.mxu0 %v4763_v31 }
 0x6fc   : > { %4046 = vmatpush3.bf16.msra.mxu0 %v4288_v59 }
 0x6fd   : > { %4047 = vmatprep.subr.bf16.mxu0 %v4763_v31 }
 0x700   : > { %4048 = vmatpush3.bf16.msra.mxu0 %v4289_v39 }
 0x701   : > { %4073 = vmatprep.subr.bf16.mxu0 %v4763_v31 }
 0x789   : > { %v2908_v58 = vpop.f32.mrf.mxu1 }
 0x78b   : > { %v4031_v13 = vpop.f32.mrf.mxu1 }
 0x78d   : > { %v2911_v52 = vpop.f32.mrf.mxu1 }
 0x78f   : > { %v4032_v5 = vpop.f32.mrf.mxu1 }
 0x7a3   : > { %v2820_v6 = vpop.f32.mrf.mxu0 }
 0x7a4   : > { %v2909_v23 = vadd.f32 %v2908_v58, %v2820_v6 }
 0x7a5   : > { %v4011_v44 = vpop.f32.mrf.mxu0 }
 0x7a6   : > { %v2914_v60 = vpack.c.bf16 %v2909_v23, %v2909_v23 }
 0x7a7   : > { %v2823_v0 = vpop.f32.mrf.mxu0 }
 0x7a8   : > { %4050 = vmatmul.mubr.bf16.vlgmr.msra.gmra.mxu0 %v2914_v60 }
 0x7a9   : > { %v4012_v26 = vpop.f32.mrf.mxu0  ;;  %4089 = vmatprep.mubr.msk.bf16.mxu0 %vm4764_vm0, %v4763_v31  ;;  %4074 = vmatpush3.bf16.msra.mxu0 %v4298_v25 }
 0x7aa   : > { %4075 = vmatprep.subr.bf16.mxu0 %v4763_v31 }
 0x7ad   : > { %4076 = vmatpush3.bf16.msra.mxu0 %v4299_v43 }
 0x7ae   : > { %4077 = vmatprep.subr.bf16.mxu0 %v4763_v31 }
 0x7b1   : > { %4078 = vmatpush3.bf16.msra.mxu0 %v4300_v14 }
 0x7b2   : > { %4079 = vmatprep.subr.bf16.mxu0 %v4763_v31 }
 0x7b5   : > { %4080 = vmatpush3.bf16.msra.mxu0 %v4301_v10 }
 0x7b6   : > { %4081 = vmatprep.subr.bf16.mxu0 %v4763_v31 }
 0x7b9   : > { %4082 = vmatpush3.bf16.msra.mxu0 %v4302_v30 }
 0x7ba   : > { %4083 = vmatprep.subr.bf16.mxu0 %v4763_v31 }
 0x7bd   : > { %4084 = vmatpush3.bf16.msra.mxu0 %v4303_v16 }
 0x7be   : > { %4085 = vmatprep.subr.bf16.mxu0 %v4763_v31 }
 0x7c1   : > { %4086 = vmatpush3.bf16.msra.mxu0 %v4304_v20 }
 0x7c2   : > { %4087 = vmatprep.subr.bf16.mxu0 %v4763_v31  ;;  %v3145_v31 = vld [vmem:[%s6408_s13] sm:$0x1] }
 0x7c5   : > { %4088 = vmatpush3.bf16.msra.mxu0 %v4305_v29 }
 0x868   : > { %v3014_v11 = vpop.f32.mrf.mxu0 }
 0x869   : > { %v3015_v2 = vadd.f32 %v3014_v11, %v2931_v47 }
 0x86a   : > { %v4051_v8 = vpop.f32.mrf.mxu0 }
 0x86b   : > { %v3020_v42 = vmax.f32 %v3015_v2, 0.0 }
 0x86c   : > { %v3017_v54 = vpop.f32.mrf.mxu0 }
 0x86d   : > { %v3021_v21 = vpack.c.bf16 %v3020_v42, %v3020_v42 }
 0x86e   : > { %v4052_v63 = vpop.f32.mrf.mxu0 }
 0x86f   : > { %4070 = vmatmul.mubr.bf16.vlgmr.msra.gmra.mxu1 %v3021_v21 }
 0x92f   : > { %v3121_v33 = vpop.f32.mrf.mxu1 }
 0x930   : > { %v3122_v15 = vadd.f32 %v3121_v33, %v3038_v38 }
 0x931   : > { %v4071_v40 = vpop.f32.mrf.mxu1 }
 0x932   : > { %v3127_v12 = vmax.f32 %v3122_v15, 0.0 }
 0x933   : > { %v3124_v36 = vpop.f32.mrf.mxu1 }
 0x934   : > { %v3128_v57 = vpack.c.bf16 %v3127_v12, %v3127_v12 }
 0x935   : > { %v4072_v37 = vpop.f32.mrf.mxu1 }
 0x936   : > { %4090 = vmatmul.mubr.bf16.vlgmr.msra.gmra.mxu0 %v3128_v57 }
 0x9f6   : > { %v3228_v50 = vpop.f32.mrf.mxu0 }
 0x9f7   : > { %v3229_v27 = vadd.f32 %v3228_v50, %v3145_v31 }
 0x9f8   : > { %v4091_v4 = vpop.f32.mrf.mxu0 }
 0x9f9   : > { %3234 = vst [vmem:[%s589_s20] sm:$0x1] %v3229_v27 }
 0x9fa   : > { %v3231_v24 = vpop.f32.mrf.mxu0 }
 0x9fb   : > { %4677 = shalt.err (!%p4674_p7)
}
 0x9fc   : > { %s4678_s18 = scalar_lea.hbm %s6352_s12, 16  ;;  %s4682_s24 = scalar_lea.hbm %s6409_s14, 32 }
 0x9fd   : > { %p4679_p6 = scmp.ne.s32.totalorder %s6352_s12, %s4678_s18  ;;  %p4683_p10 = scmp.lt.s32.totalorder %s6352_s12, %s6409_s14 }
 0x9fe   : > { %p4684_p11 = scmp.lt.s32.totalorder %s4682_s24, %s4678_s18 }
 0x9ff   : > { %p4680_p0 = pnand %p4679_p6, %p6508_p9 }
 0xa00   : > { %p4685_p13 = por %p4684_p11, %p4683_p10 }
 0xa01   : > { %p4681_p8 = pneg %p4680_p0 }
 0xa03   : > { %p4686_p5 = pnand %p4685_p13, %p4681_p8 }
 0xa05   : > { %4689 = shalt.err (!%p4686_p5)
}
 0xa06   : > { %4121 = dma.vmem_to_hbm [thread:$0]  (%p6508_p9), %s6354_s30, 16, %s6352_s12, %s3236_s26   ;;  %v4092_v34 = vpop.f32.mrf.mxu0 }
 0xa07 PF: > { %s3260_s8 = sand.u32 1, %s4738_s16   ;;  %p6509_p1 = scmp.ne.s32.totalorder %s6468_s3, 0 }
 0xa08   : > { %p6510_p4 = scmp.ge.s32.totalorder %s4750_s19, 2  ;;  %s3261_s22 = scalar_lea.sflag [#allocation6], %s3260_s8 }
 0xa0a   : > { %p4150_p12 = pnand %p6510_p4, %p6509_p1 }
 0xa0c   : > { %p4151_p2 = pneg %p4150_p12 }
 0xa0e   : > { %4733 = dma.done.wait (%p4151_p2), %s3261_s22, 16  }
 0xa0f   : > { %4735 = vsyncadd (%p4151_p2), %s3261_s22, 4294967280  ;;  %s6511_s19 = sld [smem:[#allocation28_spill]]  ;;  %s6514_s16 = smov %s4742_s17 }
 0xa10   : > { %s6512_s0 = sld [smem:[#allocation27_spill]] }
 0xa11   : > { %s6513_s18 = sld [smem:[#allocation29_spill]] }
 0xa15   : > { %p37_p3 = scmp.ge.s32.totalorder %s6511_s19, 4  }
 0xa16   : > { %s6515_s17 = smov %s6512_s0 }
 0xa17   :  { %39 = sbr.rel (!%p37_p3) target bundleno = 22 (0x16), region = 158 }
 0xa1c   :  { %3265 = vsyncpa [#allocation5], 1 }
 0xa1d   :  { %3267 = vsyncpa [#allocation5 + $0x1], 1 }
 0xa1e   :  { %3268 = vsyncpa [#allocation8], 1 }
 0xa1f   :  { %3270 = vsyncpa [#allocation8 + $0x1], 1 }
 0xa20   :  { %3271 = vsyncpa [#allocation11], 1 }
 0xa21   :  { %3272 = vsyncpa [#allocation14], 1 }
 0xa22   :  { %3273 = vsyncpa [#allocation17], 1 }
 0xa23   :  { %3274 = vsyncpa [#allocation6], 1 }
 0xa24   :  { %3276 = vsyncpa [#allocation6 + $0x1], 1 }

</bundles_post_ra>
